<compile_context>
chip_gen: v6e
topology: v6e:2x2x1
jax: 0.10.0
libtpu: 0.0.40
codegen_flags: <defaults>
</compile_context>

<pallas_src>
import functools

import jax
import jax.numpy as jnp
import numpy as np
from jax.experimental import pallas as pl
from jax.experimental.pallas import tpu as pltpu

LATENT_DIM = 20
IN_DIM = 784
HID = 400

# Lane-aligned (multiple-of-128) padded feature dims.
LAT_PAD = 128
IN_PAD = 896
HID_PAD = 512


def _round_up(x, m):
    return (x + m - 1) // m * m


# ----------------------------------------------------------------------------
# Fused VAE kernel: encoder -> reparameterize (k samples) -> decoder
# ----------------------------------------------------------------------------
def _vae_fused_kernel(x_ref, eps_ref,
                      w1_ref, b1_ref, w2_ref, b2_ref,
                      w31_ref, b31_ref, w32_ref, b32_ref,
                      w4_ref, b4_ref, w5_ref, b5_ref, w6_ref, b6_ref,
                      mu_ref, std_ref, z_ref, logits_ref):
    # ---- encoder (bf16 matmuls, f32 accumulation, f32 elementwise) ----
    x = x_ref[...]                                               # (TB, IN_PAD) bf16
    h = jnp.dot(x, w1_ref[...], preferred_element_type=jnp.float32)
    h = jnp.maximum(h + b1_ref[...], 0.0)
    h = jnp.dot(h.astype(jnp.bfloat16), w2_ref[...],
                preferred_element_type=jnp.float32)
    h = jnp.maximum(h + b2_ref[...], 0.0)
    h_bf = h.astype(jnp.bfloat16)

    mu = jnp.dot(h_bf, w31_ref[...],
                 preferred_element_type=jnp.float32) + b31_ref[...]
    # Original module: std = fc32(h).exp()  (log-std parameterization)
    std = jnp.exp(jnp.dot(h_bf, w32_ref[...],
                          preferred_element_type=jnp.float32) + b32_ref[...])
    mu_ref[...] = mu
    std_ref[...] = std

    # ---- k samples: reparameterize + decode (k is static at trace time) ----
    k = eps_ref.shape[0]
    for s in range(k):
        z = mu + std * eps_ref[s]                                # (TB, LAT_PAD) f32
        z_ref[s] = z
        hd = jnp.dot(z.astype(jnp.bfloat16), w4_ref[...],
                     preferred_element_type=jnp.float32)
        hd = jnp.maximum(hd + b4_ref[...], 0.0)
        hd = jnp.dot(hd.astype(jnp.bfloat16), w5_ref[...],
                     preferred_element_type=jnp.float32)
        hd = jnp.maximum(hd + b5_ref[...], 0.0)
        logits_ref[s] = (jnp.dot(hd.astype(jnp.bfloat16), w6_ref[...],
                                 preferred_element_type=jnp.float32)
                         + b6_ref[...])


# ----------------------------------------------------------------------------
# Parameter padding (done once, outside the kernel): zero-pad to lane-aligned
# dims, cast weights to bf16, keep biases f32.  Zero rows/cols contribute
# nothing to the contractions, so results over the logical dims are unchanged.
# ----------------------------------------------------------------------------
def _pad_params(p):
    def pad_w(w, rin, cout):
        wp = jnp.zeros((rin, cout), jnp.float32)
        wp = wp.at[: w.shape[0], : w.shape[1]].set(w)
        return wp.astype(jnp.bfloat16)

    def pad_b(b, cout):
        bp = jnp.zeros((1, cout), jnp.float32)
        return bp.at[:, : b.shape[1]].set(b)

    return dict(
        w1=pad_w(p["w1"], IN_PAD, HID_PAD),   b1=pad_b(p["b1"], HID_PAD),
        w2=pad_w(p["w2"], HID_PAD, HID_PAD),  b2=pad_b(p["b2"], HID_PAD),
        w31=pad_w(p["w31"], HID_PAD, LAT_PAD), b31=pad_b(p["b31"], LAT_PAD),
        w32=pad_w(p["w32"], HID_PAD, LAT_PAD), b32=pad_b(p["b32"], LAT_PAD),
        w4=pad_w(p["w4"], LAT_PAD, HID_PAD),  b4=pad_b(p["b4"], HID_PAD),
        w5=pad_w(p["w5"], HID_PAD, HID_PAD),  b5=pad_b(p["b5"], HID_PAD),
        w6=pad_w(p["w6"], HID_PAD, IN_PAD),   b6=pad_b(p["b6"], IN_PAD),
    )


# ----------------------------------------------------------------------------
# Forward wrapper: mirrors VAE.forward -> ((mu, std), bernoulli_logits, z)
# ----------------------------------------------------------------------------
@functools.partial(jax.jit, static_argnames=("k",))
def vae_forward(params, x, eps, k=1):
    """x: any shape flattening to (-1, 784); eps: (k, B, LATENT_DIM) N(0,1)."""
    x_flat = x.reshape(-1, IN_DIM)
    B = x_flat.shape[0]

    # Batch tile: big enough to amortize per-step overhead, small enough to fit
    # the 64 MiB v7x VMEM budget comfortably (double-buffered tiles + weights).
    TB = 512 if B >= 512 else _round_up(B, 8)
    Bp = _round_up(B, TB)
    grid = (Bp // TB,)

    # Pad inputs to lane-aligned / tile-aligned shapes.
    xp = jnp.zeros((Bp, IN_PAD), jnp.bfloat16)
    xp = xp.at[:B, :IN_DIM].set(x_flat.astype(jnp.bfloat16))
    epsp = jnp.zeros((k, Bp, LAT_PAD), jnp.float32)
    epsp = epsp.at[:, :B, :LATENT_DIM].set(eps.astype(jnp.float32))

    pp = _pad_params(params)
    weight_args = (pp["w1"], pp["b1"], pp["w2"], pp["b2"],
                   pp["w31"], pp["b31"], pp["w32"], pp["b32"],
                   pp["w4"], pp["b4"], pp["w5"], pp["b5"],
                   pp["w6"], pp["b6"])

    # Weights / biases: constant index_map -> stay VMEM-resident across steps.
    def _const(i):
        return (0, 0)

    weight_specs = [
        pl.BlockSpec(shape, _const) for shape in (
            (IN_PAD, HID_PAD), (1, HID_PAD),
            (HID_PAD, HID_PAD), (1, HID_PAD),
            (HID_PAD, LAT_PAD), (1, LAT_PAD),
            (HID_PAD, LAT_PAD), (1, LAT_PAD),
            (LAT_PAD, HID_PAD), (1, HID_PAD),
            (HID_PAD, HID_PAD), (1, HID_PAD),
            (HID_PAD, IN_PAD), (1, IN_PAD),
        )
    ]
    in_specs = [
        pl.BlockSpec((TB, IN_PAD), lambda i: (i, 0)),          # x tile
        pl.BlockSpec((k, TB, LAT_PAD), lambda i: (0, i, 0)),   # eps tile
    ] + weight_specs

    out_specs = (
        pl.BlockSpec((TB, LAT_PAD), lambda i: (i, 0)),         # mu
        pl.BlockSpec((TB, LAT_PAD), lambda i: (i, 0)),         # std
        pl.BlockSpec((k, TB, LAT_PAD), lambda i: (0, i, 0)),   # z
        pl.BlockSpec((k, TB, IN_PAD), lambda i: (0, i, 0)),    # logits
    )
    out_shapes = (
        jax.ShapeDtypeStruct((Bp, LAT_PAD), jnp.float32),
        jax.ShapeDtypeStruct((Bp, LAT_PAD), jnp.float32),
        jax.ShapeDtypeStruct((k, Bp, LAT_PAD), jnp.float32),
        jax.ShapeDtypeStruct((k, Bp, IN_PAD), jnp.float32),
    )

    # Advisory cost estimate for the XLA scheduler.
    enc_flops = 2 * Bp * (IN_PAD * HID_PAD + HID_PAD * HID_PAD
                          + 2 * HID_PAD * LAT_PAD)
    dec_flops = 2 * k * Bp * (LAT_PAD * HID_PAD + HID_PAD * HID_PAD
                              + HID_PAD * IN_PAD)
    weight_bytes = sum(int(np.prod(w.shape)) * w.dtype.itemsize
                       for w in weight_args)
    bytes_accessed = (xp.size * 2 + epsp.size * 4 + weight_bytes
                      + 2 * Bp * LAT_PAD * 4            # mu, std
                      + k * Bp * (LAT_PAD + IN_PAD) * 4)  # z, logits
    cost = pl.CostEstimate(flops=enc_flops + dec_flops,
                           transcendentals=Bp * LAT_PAD,
                           bytes_accessed=bytes_accessed)

    mu_p, std_p, z_p, logits_p = pl.pallas_call(
        _vae_fused_kernel,
        grid=grid,
        in_specs=in_specs,
        out_specs=out_specs,
        out_shape=out_shapes,
        compiler_params=pltpu.CompilerParams(
            dimension_semantics=("parallel",),
            vmem_limit_bytes=48 << 20),
        cost_estimate=cost,
    )(xp, epsp, *weight_args)

    mu = mu_p[:B, :LATENT_DIM]
    std = std_p[:B, :LATENT_DIM]
    z = z_p[:, :B, :LATENT_DIM]
    logits = logits_p[:, :B, :IN_DIM]
    return (mu, std), logits, z


# ----------------------------------------------------------------------------
# Pure-JAX reference (f32) for correctness checking.
# ----------------------------------------------------------------------------
def vae_forward_ref(params, x, eps, k=1):
    x_flat = x.reshape(-1, IN_DIM)
    h = jax.nn.relu(x_flat @ params["w1"] + params["b1"])
    h = jax.nn.relu(h @ params["w2"] + params["b2"])
    mu = h @ params["w31"] + params["b31"]
    std = jnp.exp(h @ params["w32"] + params["b32"])
    z = mu[None] + std[None] * eps
    hd = jax.nn.relu(z @ params["w4"] + params["b4"])
    hd = jax.nn.relu(hd @ params["w5"] + params["b5"])
    logits = hd @ params["w6"] + params["b6"]
    return (mu, std), logits, z


# ----------------------------------------------------------------------------
# Deterministic parameter init (PyTorch nn.Linear default: U(-1/sqrt(fan_in), +))
# Weights stored as (in_features, out_features)  -> y = x @ W + b.
# ----------------------------------------------------------------------------
def init_params(key):
    def linear(key, fan_in, fan_out):
        kw, kb = jax.random.split(key)
        bound = 1.0 / jnp.sqrt(fan_in)
        w = jax.random.uniform(kw, (fan_in, fan_out), jnp.float32, -bound, bound)
        b = jax.random.uniform(kb, (1, fan_out), jnp.float32, -bound, bound)
        return w, b

    keys = jax.random.split(key, 7)
    p = {}
    p["w1"], p["b1"] = linear(keys[0], IN_DIM, HID)
    p["w2"], p["b2"] = linear(keys[1], HID, HID)
    p["w31"], p["b31"] = linear(keys[2], HID, LATENT_DIM)
    p["w32"], p["b32"] = linear(keys[3], HID, LATENT_DIM)
    p["w4"], p["b4"] = linear(keys[4], LATENT_DIM, HID)
    p["w5"], p["b5"] = linear(keys[5], HID, HID)
    p["w6"], p["b6"] = linear(keys[6], HID, IN_DIM)
    return p


if __name__ == "__main__":
    key = jax.random.PRNGKey(0)
    k_params, k_x, k_eps = jax.random.split(key, 3)

    B, K = 2, 1
    params = init_params(k_params)
    x = jax.random.uniform(k_x, (B, 1, 28, 28), jnp.float32)         # NCHW image
    eps = jax.random.normal(k_eps, (K, B, LATENT_DIM), jnp.float32)  # rsample noise

    (mu, std), logits, z = vae_forward(params, x, eps, k=K)
    jax.block_until_ready((mu, std, logits, z))

    # Shape / sanity checks (mirrors VAE.forward outputs).
    assert mu.shape == (B, LATENT_DIM)
    assert std.shape == (B, LATENT_DIM)
    assert z.shape == (K, B, LATENT_DIM)
    assert logits.shape == (K, B, IN_DIM)
    assert bool(jnp.all(std > 0.0))
    assert bool(jnp.all(jnp.isfinite(logits)))

    # Numerical check vs. f32 reference (loose tolerance: bf16 MXU inputs).
    (mu_r, std_r), logits_r, z_r = vae_forward_ref(params, x, eps, k=K)
    np.testing.assert_allclose(np.asarray(mu), np.asarray(mu_r), rtol=0.1, atol=0.1)
    np.testing.assert_allclose(np.asarray(std), np.asarray(std_r), rtol=0.1, atol=0.1)
    np.testing.assert_allclose(np.asarray(z), np.asarray(z_r), rtol=0.1, atol=0.1)
    np.testing.assert_allclose(np.asarray(logits), np.asarray(logits_r), rtol=0.1, atol=0.1)

    print("KERNEL_OK")
</pallas_src>

<mosaic_0001>
module attributes {stable_mosaic.version = 11 : i64} {
  func.func @_vae_fused_kernel(%arg0: i32, %arg1: memref<8x896xbf16, #tpu.memory_space<vmem>>, %arg2: memref<1x8x128xf32, #tpu.memory_space<vmem>>, %arg3: memref<896x512xbf16, #tpu.memory_space<vmem>>, %arg4: memref<1x512xf32, #tpu.memory_space<vmem>>, %arg5: memref<512x512xbf16, #tpu.memory_space<vmem>>, %arg6: memref<1x512xf32, #tpu.memory_space<vmem>>, %arg7: memref<512x128xbf16, #tpu.memory_space<vmem>>, %arg8: memref<1x128xf32, #tpu.memory_space<vmem>>, %arg9: memref<512x128xbf16, #tpu.memory_space<vmem>>, %arg10: memref<1x128xf32, #tpu.memory_space<vmem>>, %arg11: memref<128x512xbf16, #tpu.memory_space<vmem>>, %arg12: memref<1x512xf32, #tpu.memory_space<vmem>>, %arg13: memref<512x512xbf16, #tpu.memory_space<vmem>>, %arg14: memref<1x512xf32, #tpu.memory_space<vmem>>, %arg15: memref<512x896xbf16, #tpu.memory_space<vmem>>, %arg16: memref<1x896xf32, #tpu.memory_space<vmem>>, %arg17: memref<8x128xf32, #tpu.memory_space<vmem>>, %arg18: memref<8x128xf32, #tpu.memory_space<vmem>>, %arg19: memref<1x8x128xf32, #tpu.memory_space<vmem>>, %arg20: memref<1x8x896xf32, #tpu.memory_space<vmem>>) attributes {dimension_semantics = [#tpu.dimension_semantics<parallel>], iteration_bounds = array<i64: 1>, scalar_prefetch = 0 : i64, scratch_operands = 0 : i64, tpu.core_type = #tpu.core_type<tc>, window_params = [{transform_indices = @transform_0, window_bounds = array<i64: 8, 896>}, {transform_indices = @transform_1, window_bounds = array<i64: 1, 8, 128>}, {pipeline_mode = #tpu.pipeline_mode<synchronous>, transform_indices = @transform_2, window_bounds = array<i64: 896, 512>}, {pipeline_mode = #tpu.pipeline_mode<synchronous>, transform_indices = @transform_3, window_bounds = array<i64: 1, 512>}, {pipeline_mode = #tpu.pipeline_mode<synchronous>, transform_indices = @transform_4, window_bounds = array<i64: 512, 512>}, {pipeline_mode = #tpu.pipeline_mode<synchronous>, transform_indices = @transform_5, window_bounds = array<i64: 1, 512>}, {pipeline_mode = #tpu.pipeline_mode<synchronous>, transform_indices = @transform_6, window_bounds = array<i64: 512, 128>}, {pipeline_mode = #tpu.pipeline_mode<synchronous>, transform_indices = @transform_7, window_bounds = array<i64: 1, 128>}, {pipeline_mode = #tpu.pipeline_mode<synchronous>, transform_indices = @transform_8, window_bounds = array<i64: 512, 128>}, {pipeline_mode = #tpu.pipeline_mode<synchronous>, transform_indices = @transform_9, window_bounds = array<i64: 1, 128>}, {pipeline_mode = #tpu.pipeline_mode<synchronous>, transform_indices = @transform_10, window_bounds = array<i64: 128, 512>}, {pipeline_mode = #tpu.pipeline_mode<synchronous>, transform_indices = @transform_11, window_bounds = array<i64: 1, 512>}, {pipeline_mode = #tpu.pipeline_mode<synchronous>, transform_indices = @transform_12, window_bounds = array<i64: 512, 512>}, {pipeline_mode = #tpu.pipeline_mode<synchronous>, transform_indices = @transform_13, window_bounds = array<i64: 1, 512>}, {pipeline_mode = #tpu.pipeline_mode<synchronous>, transform_indices = @transform_14, window_bounds = array<i64: 512, 896>}, {pipeline_mode = #tpu.pipeline_mode<synchronous>, transform_indices = @transform_15, window_bounds = array<i64: 1, 896>}, {transform_indices = @transform_16, window_bounds = array<i64: 8, 128>}, {transform_indices = @transform_17, window_bounds = array<i64: 8, 128>}, {transform_indices = @transform_18, window_bounds = array<i64: 1, 8, 128>}, {transform_indices = @transform_19, window_bounds = array<i64: 1, 8, 896>}]} {
    %c0 = arith.constant 0 : index
    %c0_0 = arith.constant 0 : index
    %0 = vector.load %arg1[%c0, %c0_0] : memref<8x896xbf16, #tpu.memory_space<vmem>>, vector<8x896xbf16>
    %c0_1 = arith.constant 0 : index
    %c0_2 = arith.constant 0 : index
    %1 = vector.load %arg3[%c0_1, %c0_2] : memref<896x512xbf16, #tpu.memory_space<vmem>>, vector<896x512xbf16>
    %cst = arith.constant dense<0.000000e+00> : vector<8x512xf32>
    %2 = tpu.matmul %0, %1, %cst {dimension_numbers = #tpu.dot_dimension_numbers<[1], [0], [0], [1], [0, 0, 1, 1], [], []>} : vector<8x896xbf16>, vector<896x512xbf16>, vector<8x512xf32> -> vector<8x512xf32>
    %c0_3 = arith.constant 0 : index
    %c0_4 = arith.constant 0 : index
    %3 = vector.load %arg4[%c0_3, %c0_4] : memref<1x512xf32, #tpu.memory_space<vmem>>, vector<1x512xf32>
    %4 = vector.broadcast %3 : vector<1x512xf32> to vector<8x512xf32>
    %5 = arith.addf %2, %4 : vector<8x512xf32>
    %cst_5 = arith.constant 0.000000e+00 : f32
    %6 = vector.broadcast %cst_5 : f32 to vector<8x512xf32>
    %7 = arith.maximumf %5, %6 : vector<8x512xf32>
    %8 = arith.truncf %7 : vector<8x512xf32> to vector<8x512xbf16>
    %c0_6 = arith.constant 0 : index
    %c0_7 = arith.constant 0 : index
    %9 = vector.load %arg5[%c0_6, %c0_7] : memref<512x512xbf16, #tpu.memory_space<vmem>>, vector<512x512xbf16>
    %cst_8 = arith.constant dense<0.000000e+00> : vector<8x512xf32>
    %10 = tpu.matmul %8, %9, %cst_8 {dimension_numbers = #tpu.dot_dimension_numbers<[1], [0], [0], [1], [0, 0, 1, 1], [], []>} : vector<8x512xbf16>, vector<512x512xbf16>, vector<8x512xf32> -> vector<8x512xf32>
    %c0_9 = arith.constant 0 : index
    %c0_10 = arith.constant 0 : index
    %11 = vector.load %arg6[%c0_9, %c0_10] : memref<1x512xf32, #tpu.memory_space<vmem>>, vector<1x512xf32>
    %12 = vector.broadcast %11 : vector<1x512xf32> to vector<8x512xf32>
    %13 = arith.addf %10, %12 : vector<8x512xf32>
    %cst_11 = arith.constant 0.000000e+00 : f32
    %14 = vector.broadcast %cst_11 : f32 to vector<8x512xf32>
    %15 = arith.maximumf %13, %14 : vector<8x512xf32>
    %16 = arith.truncf %15 : vector<8x512xf32> to vector<8x512xbf16>
    %c0_12 = arith.constant 0 : index
    %c0_13 = arith.constant 0 : index
    %17 = vector.load %arg7[%c0_12, %c0_13] : memref<512x128xbf16, #tpu.memory_space<vmem>>, vector<512x128xbf16>
    %cst_14 = arith.constant dense<0.000000e+00> : vector<8x128xf32>
    %18 = tpu.matmul %16, %17, %cst_14 {dimension_numbers = #tpu.dot_dimension_numbers<[1], [0], [0], [1], [0, 0, 1, 1], [], []>} : vector<8x512xbf16>, vector<512x128xbf16>, vector<8x128xf32> -> vector<8x128xf32>
    %c0_15 = arith.constant 0 : index
    %c0_16 = arith.constant 0 : index
    %19 = vector.load %arg8[%c0_15, %c0_16] : memref<1x128xf32, #tpu.memory_space<vmem>>, vector<1x128xf32>
    %20 = vector.broadcast %19 : vector<1x128xf32> to vector<8x128xf32>
    %21 = arith.addf %18, %20 : vector<8x128xf32>
    %c0_17 = arith.constant 0 : index
    %c0_18 = arith.constant 0 : index
    %22 = vector.load %arg9[%c0_17, %c0_18] : memref<512x128xbf16, #tpu.memory_space<vmem>>, vector<512x128xbf16>
    %cst_19 = arith.constant dense<0.000000e+00> : vector<8x128xf32>
    %23 = tpu.matmul %16, %22, %cst_19 {dimension_numbers = #tpu.dot_dimension_numbers<[1], [0], [0], [1], [0, 0, 1, 1], [], []>} : vector<8x512xbf16>, vector<512x128xbf16>, vector<8x128xf32> -> vector<8x128xf32>
    %c0_20 = arith.constant 0 : index
    %c0_21 = arith.constant 0 : index
    %24 = vector.load %arg10[%c0_20, %c0_21] : memref<1x128xf32, #tpu.memory_space<vmem>>, vector<1x128xf32>
    %25 = vector.broadcast %24 : vector<1x128xf32> to vector<8x128xf32>
    %26 = arith.addf %23, %25 : vector<8x128xf32>
    %27 = math.exp %26 : vector<8x128xf32>
    %c0_22 = arith.constant 0 : index
    %c0_23 = arith.constant 0 : index
    %28 = vector.load %arg17[%c0_22, %c0_23] : memref<8x128xf32, #tpu.memory_space<vmem>>, vector<8x128xf32>
    tpu.vector_store %arg17[%c0_22, %c0_23], %21 {strides = array<i32>} : memref<8x128xf32, #tpu.memory_space<vmem>>, vector<8x128xf32>,
    %c0_24 = arith.constant 0 : index
    %c0_25 = arith.constant 0 : index
    %29 = vector.load %arg18[%c0_24, %c0_25] : memref<8x128xf32, #tpu.memory_space<vmem>>, vector<8x128xf32>
    tpu.vector_store %arg18[%c0_24, %c0_25], %27 {strides = array<i32>} : memref<8x128xf32, #tpu.memory_space<vmem>>, vector<8x128xf32>,
    %c0_26 = arith.constant 0 : index
    %c0_27 = arith.constant 0 : index
    %c0_28 = arith.constant 0 : index
    %30 = vector.load %arg2[%c0_26, %c0_27, %c0_28] : memref<1x8x128xf32, #tpu.memory_space<vmem>>, vector<1x8x128xf32>
    %31 = vector.shape_cast %30 : vector<1x8x128xf32> to vector<8x128xf32>
    %32 = arith.mulf %27, %31 : vector<8x128xf32>
    %33 = arith.addf %21, %32 : vector<8x128xf32>
    %c0_29 = arith.constant 0 : index
    %c0_30 = arith.constant 0 : index
    %c0_31 = arith.constant 0 : index
    %34 = vector.load %arg19[%c0_29, %c0_30, %c0_31] : memref<1x8x128xf32, #tpu.memory_space<vmem>>, vector<1x8x128xf32>
    %35 = vector.shape_cast %34 : vector<1x8x128xf32> to vector<8x128xf32>
    %36 = vector.shape_cast %33 : vector<8x128xf32> to vector<1x8x128xf32>
    tpu.vector_store %arg19[%c0_29, %c0_30, %c0_31], %36 {strides = array<i32>} : memref<1x8x128xf32, #tpu.memory_space<vmem>>, vector<1x8x128xf32>,
    %37 = arith.truncf %33 : vector<8x128xf32> to vector<8x128xbf16>
    %c0_32 = arith.constant 0 : index
    %c0_33 = arith.constant 0 : index
    %38 = vector.load %arg11[%c0_32, %c0_33] : memref<128x512xbf16, #tpu.memory_space<vmem>>, vector<128x512xbf16>
    %cst_34 = arith.constant dense<0.000000e+00> : vector<8x512xf32>
    %39 = tpu.matmul %37, %38, %cst_34 {dimension_numbers = #tpu.dot_dimension_numbers<[1], [0], [0], [1], [0, 0, 1, 1], [], []>} : vector<8x128xbf16>, vector<128x512xbf16>, vector<8x512xf32> -> vector<8x512xf32>
    %c0_35 = arith.constant 0 : index
    %c0_36 = arith.constant 0 : index
    %40 = vector.load %arg12[%c0_35, %c0_36] : memref<1x512xf32, #tpu.memory_space<vmem>>, vector<1x512xf32>
    %41 = vector.broadcast %40 : vector<1x512xf32> to vector<8x512xf32>
    %42 = arith.addf %39, %41 : vector<8x512xf32>
    %cst_37 = arith.constant 0.000000e+00 : f32
    %43 = vector.broadcast %cst_37 : f32 to vector<8x512xf32>
    %44 = arith.maximumf %42, %43 : vector<8x512xf32>
    %45 = arith.truncf %44 : vector<8x512xf32> to vector<8x512xbf16>
    %c0_38 = arith.constant 0 : index
    %c0_39 = arith.constant 0 : index
    %46 = vector.load %arg13[%c0_38, %c0_39] : memref<512x512xbf16, #tpu.memory_space<vmem>>, vector<512x512xbf16>
    %cst_40 = arith.constant dense<0.000000e+00> : vector<8x512xf32>
    %47 = tpu.matmul %45, %46, %cst_40 {dimension_numbers = #tpu.dot_dimension_numbers<[1], [0], [0], [1], [0, 0, 1, 1], [], []>} : vector<8x512xbf16>, vector<512x512xbf16>, vector<8x512xf32> -> vector<8x512xf32>
    %c0_41 = arith.constant 0 : index
    %c0_42 = arith.constant 0 : index
    %48 = vector.load %arg14[%c0_41, %c0_42] : memref<1x512xf32, #tpu.memory_space<vmem>>, vector<1x512xf32>
    %49 = vector.broadcast %48 : vector<1x512xf32> to vector<8x512xf32>
    %50 = arith.addf %47, %49 : vector<8x512xf32>
    %cst_43 = arith.constant 0.000000e+00 : f32
    %51 = vector.broadcast %cst_43 : f32 to vector<8x512xf32>
    %52 = arith.maximumf %50, %51 : vector<8x512xf32>
    %53 = arith.truncf %52 : vector<8x512xf32> to vector<8x512xbf16>
    %c0_44 = arith.constant 0 : index
    %c0_45 = arith.constant 0 : index
    %54 = vector.load %arg15[%c0_44, %c0_45] : memref<512x896xbf16, #tpu.memory_space<vmem>>, vector<512x896xbf16>
    %cst_46 = arith.constant dense<0.000000e+00> : vector<8x896xf32>
    %55 = tpu.matmul %53, %54, %cst_46 {dimension_numbers = #tpu.dot_dimension_numbers<[1], [0], [0], [1], [0, 0, 1, 1], [], []>} : vector<8x512xbf16>, vector<512x896xbf16>, vector<8x896xf32> -> vector<8x896xf32>
    %c0_47 = arith.constant 0 : index
    %c0_48 = arith.constant 0 : index
    %56 = vector.load %arg16[%c0_47, %c0_48] : memref<1x896xf32, #tpu.memory_space<vmem>>, vector<1x896xf32>
    %57 = vector.broadcast %56 : vector<1x896xf32> to vector<8x896xf32>
    %58 = arith.addf %55, %57 : vector<8x896xf32>
    %c0_49 = arith.constant 0 : index
    %c0_50 = arith.constant 0 : index
    %c0_51 = arith.constant 0 : index
    %59 = vector.load %arg20[%c0_49, %c0_50, %c0_51] : memref<1x8x896xf32, #tpu.memory_space<vmem>>, vector<1x8x896xf32>
    %60 = vector.shape_cast %59 : vector<1x8x896xf32> to vector<8x896xf32>
    %61 = vector.shape_cast %58 : vector<8x896xf32> to vector<1x8x896xf32>
    tpu.vector_store %arg20[%c0_49, %c0_50, %c0_51], %61 {strides = array<i32>} : memref<1x8x896xf32, #tpu.memory_space<vmem>>, vector<1x8x896xf32>,
    return
  }
  func.func @transform_0(%arg0: i32) -> (i32, i32) {
    %c0_i32 = arith.constant 0 : i32
    %c0_i32_0 = arith.constant 0 : i32
    return %arg0, %c0_i32 : i32, i32
  }
  func.func @transform_1(%arg0: i32) -> (i32, i32, i32) {
    %c0_i32 = arith.constant 0 : i32
    %c0_i32_0 = arith.constant 0 : i32
    %c0_i32_1 = arith.constant 0 : i32
    return %c0_i32, %arg0, %c0_i32_0 : i32, i32, i32
  }
  func.func @transform_2(%arg0: i32) -> (i32, i32) {
    %c0_i32 = arith.constant 0 : i32
    %c0_i32_0 = arith.constant 0 : i32
    %c0_i32_1 = arith.constant 0 : i32
    return %c0_i32, %c0_i32_0 : i32, i32
  }
  func.func @transform_3(%arg0: i32) -> (i32, i32) {
    %c0_i32 = arith.constant 0 : i32
    %c0_i32_0 = arith.constant 0 : i32
    %c0_i32_1 = arith.constant 0 : i32
    return %c0_i32, %c0_i32_0 : i32, i32
  }
  func.func @transform_4(%arg0: i32) -> (i32, i32) {
    %c0_i32 = arith.constant 0 : i32
    %c0_i32_0 = arith.constant 0 : i32
    %c0_i32_1 = arith.constant 0 : i32
    return %c0_i32, %c0_i32_0 : i32, i32
  }
  func.func @transform_5(%arg0: i32) -> (i32, i32) {
    %c0_i32 = arith.constant 0 : i32
    %c0_i32_0 = arith.constant 0 : i32
    %c0_i32_1 = arith.constant 0 : i32
    return %c0_i32, %c0_i32_0 : i32, i32
  }
  func.func @transform_6(%arg0: i32) -> (i32, i32) {
    %c0_i32 = arith.constant 0 : i32
    %c0_i32_0 = arith.constant 0 : i32
    %c0_i32_1 = arith.constant 0 : i32
    return %c0_i32, %c0_i32_0 : i32, i32
  }
  func.func @transform_7(%arg0: i32) -> (i32, i32) {
    %c0_i32 = arith.constant 0 : i32
    %c0_i32_0 = arith.constant 0 : i32
    %c0_i32_1 = arith.constant 0 : i32
    return %c0_i32, %c0_i32_0 : i32, i32
  }
  func.func @transform_8(%arg0: i32) -> (i32, i32) {
    %c0_i32 = arith.constant 0 : i32
    %c0_i32_0 = arith.constant 0 : i32
    %c0_i32_1 = arith.constant 0 : i32
    return %c0_i32, %c0_i32_0 : i32, i32
  }
  func.func @transform_9(%arg0: i32) -> (i32, i32) {
    %c0_i32 = arith.constant 0 : i32
    %c0_i32_0 = arith.constant 0 : i32
    %c0_i32_1 = arith.constant 0 : i32
    return %c0_i32, %c0_i32_0 : i32, i32
  }
  func.func @transform_10(%arg0: i32) -> (i32, i32) {
    %c0_i32 = arith.constant 0 : i32
    %c0_i32_0 = arith.constant 0 : i32
    %c0_i32_1 = arith.constant 0 : i32
    return %c0_i32, %c0_i32_0 : i32, i32
  }
  func.func @transform_11(%arg0: i32) -> (i32, i32) {
    %c0_i32 = arith.constant 0 : i32
    %c0_i32_0 = arith.constant 0 : i32
    %c0_i32_1 = arith.constant 0 : i32
    return %c0_i32, %c0_i32_0 : i32, i32
  }
  func.func @transform_12(%arg0: i32) -> (i32, i32) {
    %c0_i32 = arith.constant 0 : i32
    %c0_i32_0 = arith.constant 0 : i32
    %c0_i32_1 = arith.constant 0 : i32
    return %c0_i32, %c0_i32_0 : i32, i32
  }
  func.func @transform_13(%arg0: i32) -> (i32, i32) {
    %c0_i32 = arith.constant 0 : i32
    %c0_i32_0 = arith.constant 0 : i32
    %c0_i32_1 = arith.constant 0 : i32
    return %c0_i32, %c0_i32_0 : i32, i32
  }
  func.func @transform_14(%arg0: i32) -> (i32, i32) {
    %c0_i32 = arith.constant 0 : i32
    %c0_i32_0 = arith.constant 0 : i32
    %c0_i32_1 = arith.constant 0 : i32
    return %c0_i32, %c0_i32_0 : i32, i32
  }
  func.func @transform_15(%arg0: i32) -> (i32, i32) {
    %c0_i32 = arith.constant 0 : i32
    %c0_i32_0 = arith.constant 0 : i32
    %c0_i32_1 = arith.constant 0 : i32
    return %c0_i32, %c0_i32_0 : i32, i32
  }
  func.func @transform_16(%arg0: i32) -> (i32, i32) {
    %c0_i32 = arith.constant 0 : i32
    %c0_i32_0 = arith.constant 0 : i32
    return %arg0, %c0_i32 : i32, i32
  }
  func.func @transform_17(%arg0: i32) -> (i32, i32) {
    %c0_i32 = arith.constant 0 : i32
    %c0_i32_0 = arith.constant 0 : i32
    return %arg0, %c0_i32 : i32, i32
  }
  func.func @transform_18(%arg0: i32) -> (i32, i32, i32) {
    %c0_i32 = arith.constant 0 : i32
    %c0_i32_0 = arith.constant 0 : i32
    %c0_i32_1 = arith.constant 0 : i32
    return %c0_i32, %arg0, %c0_i32_0 : i32, i32, i32
  }
  func.func @transform_19(%arg0: i32) -> (i32, i32, i32) {
    %c0_i32 = arith.constant 0 : i32
    %c0_i32_0 = arith.constant 0 : i32
    %c0_i32_1 = arith.constant 0 : i32
    return %c0_i32, %arg0, %c0_i32_0 : i32, i32, i32
  }
}

</mosaic_0001>

<bundles_post_ra>
// kernel: vae_forward.1
= control target key start
LH: loop header
LB: loop body
LE: loop exit
PB: predicated region body
PF: predicated region fallthrough
CT: control target
= control target key end

     0   :  { %s11315_s2 = inlined_call_operand.vmem [shape: bf16[896,512], index: 2, kind: input, shape index: {}]   ;;  %s11316_s0 = inlined_call_operand.vmem [shape: bf16[8,896], index: 0, kind: input, shape index: {}]   ;;  %s11317_s4 = inlined_call_operand.vmem [shape: bf16[512,512], index: 4, kind: input, shape index: {}]   ;;  %s11318_s3 = inlined_call_operand.vmem [shape: f32[1,512], index: 3, kind: input, shape index: {}]   ;;  %s11319_s6 = inlined_call_operand.vmem [shape: bf16[512,128], index: 6, kind: input, shape index: {}]   ;;  %s11320_s8 = inlined_call_operand.vmem [shape: bf16[512,128], index: 8, kind: input, shape index: {}]   ;;  %s11321_s5 = inlined_call_operand.vmem [shape: f32[1,512], index: 5, kind: input, shape index: {}]   ;;  %s11322_s10 = inlined_call_operand.vmem [shape: bf16[128,512], index: 10, kind: input, shape index: {}]   ;;  %s11323_s12 = inlined_call_operand.vmem [shape: bf16[512,512], index: 12, kind: input, shape index: {}]   ;;  %s11324_s7 = inlined_call_operand.vmem [shape: f32[1,128], index: 7, kind: input, shape index: {}]   ;;  %s11325_s16 = inlined_call_operand.vmem [shape: f32[8,128], index: 16, kind: output, shape index: {0}]   ;;  %s11326_s9 = inlined_call_operand.vmem [shape: f32[1,128], index: 9, kind: input, shape index: {}]   ;;  %s11327_s1 = inlined_call_operand.vmem [shape: f32[1,8,128], index: 1, kind: input, shape index: {}]   ;;  %s11328_s17 = inlined_call_operand.vmem [shape: f32[8,128], index: 17, kind: output, shape index: {1}]   ;;  %s11329_s18 = inlined_call_operand.vmem [shape: f32[1,8,128], index: 18, kind: output, shape index: {2}]   ;;  %s11330_s14 = inlined_call_operand.vmem [shape: bf16[512,896], index: 14, kind: input, shape index: {}]   ;;  %s11331_s11 = inlined_call_operand.vmem [shape: f32[1,512], index: 11, kind: input, shape index: {}]   ;;  %s11332_s13 = inlined_call_operand.vmem [shape: f32[1,512], index: 13, kind: input, shape index: {}]   ;;  %s11333_s15 = inlined_call_operand.vmem [shape: f32[1,896], index: 15, kind: input, shape index: {}]   ;;  %s11334_s19 = inlined_call_operand.vmem [shape: f32[1,8,896], index: 19, kind: output, shape index: {3}]  }
   0x1   :  { %11338 = sst [smem:[#allocation2_spill]] %s11315_s2 }
   0x2   :  { %11339 = sst [smem:[#allocation3_spill]] %s11316_s0 }
   0x3   :  { %11340 = sst [smem:[#allocation4_spill]] %s11317_s4 }
   0x4   :  { %11341 = sst [smem:[#allocation5_spill]] %s11318_s3 }
   0x5   :  { %s11342_s20 = sld [smem:[#allocation2_spill]] }
   0x6   :  { %s11343_s26 = sld [smem:[#allocation3_spill]] }
   0x7   :  { %s11344_s4 = sld [smem:[#allocation4_spill]] }
   0xb   :  { %v7448_v0 = vld [vmem:[%s11342_s20 + $0xe4] ss:$16 sps:$4 sm:$0xff]   ;;  %v7452_v2 = vld [vmem:[%s11342_s20 + $0xe0] ss:$16 sps:$4 sm:$0xff]  }
   0xc   :  { %v7450_v1 = vld [vmem:[%s11342_s20 + $0x2e4] ss:$16 sps:$4 sm:$0xff]   ;;  %1453 = vmatprep.subr.bf16.mxu0 %v7448_v0  ;;  %v7453_v3 = vld [vmem:[%s11342_s20 + $0x2e0] ss:$16 sps:$4 sm:$0xff]   ;;  %v59_v48 = vld [vmem:[%s11343_s26 + $0x8] sm:$0xff] }
   0xd   :  { %1494 = vmatprep.subr.bf16.mxu1 %v7450_v1  ;;  %v7454_v4 = vld [vmem:[%s11342_s20 + $0xc4] ss:$16 sps:$4 sm:$0xff]   ;;  %1454 = vmatpush1.bf16.msra.mxu0 %v7452_v2  ;;  %v7458_v6 = vld [vmem:[%s11342_s20 + $0xc0] ss:$16 sps:$4 sm:$0xff]   ;;  %v8862_v51 = vcombine.high %v59_v48, %v59_v48 }
   0xe   :  { %1495 = vmatpush1.bf16.msra.mxu1 %v7453_v3  ;;  %v7456_v5 = vld [vmem:[%s11342_s20 + $0x2c4] ss:$16 sps:$4 sm:$0xff]   ;;  %1455 = vmatprep.subr.bf16.mxu0 %v7454_v4  ;;  %v7459_v7 = vld [vmem:[%s11342_s20 + $0x2c0] ss:$16 sps:$4 sm:$0xff]  }
   0xf   :  { %1496 = vmatprep.subr.bf16.mxu1 %v7456_v5  ;;  %v7460_v8 = vld [vmem:[%s11342_s20 + $0xa4] ss:$16 sps:$4 sm:$0xff]   ;;  %v7464_v10 = vld [vmem:[%s11342_s20 + $0xa0] ss:$16 sps:$4 sm:$0xff]   ;;  %1526 = vmatprep.mubr.bf16.mxu1 %v8862_v51 }
  0x10   :  { %v7462_v9 = vld [vmem:[%s11342_s20 + $0x2a4] ss:$16 sps:$4 sm:$0xff]   ;;  %v7465_v11 = vld [vmem:[%s11342_s20 + $0x2a0] ss:$16 sps:$4 sm:$0xff]  }
  0x11   :  { %1456 = vmatpush1.bf16.msra.mxu0 %v7458_v6  ;;  %v7466_v12 = vld [vmem:[%s11342_s20 + $0x84] ss:$16 sps:$4 sm:$0xff]   ;;  %v7470_v14 = vld [vmem:[%s11342_s20 + $0x80] ss:$16 sps:$4 sm:$0xff]  }
  0x12   :  { %1497 = vmatpush1.bf16.msra.mxu1 %v7459_v7  ;;  %1457 = vmatprep.subr.bf16.mxu0 %v7460_v8  ;;  %v7468_v13 = vld [vmem:[%s11342_s20 + $0x284] ss:$16 sps:$4 sm:$0xff]   ;;  %v7471_v15 = vld [vmem:[%s11342_s20 + $0x280] ss:$16 sps:$4 sm:$0xff]   ;;  %v8922_v7 = vcombine.low %v59_v48, %v59_v48  ;;  %v7608_v48 = vld [vmem:[%s11342_s20 + $0xcc] ss:$16 sps:$4 sm:$0xff]  }
  0x13   :  { %1498 = vmatprep.subr.bf16.mxu1 %v7462_v9  ;;  %v7472_v16 = vld [vmem:[%s11342_s20 + $0x64] ss:$16 sps:$4 sm:$0xff]   ;;  %v7476_v18 = vld [vmem:[%s11342_s20 + $0x60] ss:$16 sps:$4 sm:$0xff]  }
  0x14   :  { %v7474_v17 = vld [vmem:[%s11342_s20 + $0x264] ss:$16 sps:$4 sm:$0xff]   ;;  %v7477_v19 = vld [vmem:[%s11342_s20 + $0x260] ss:$16 sps:$4 sm:$0xff]  }
  0x15   :  { %1458 = vmatpush1.bf16.msra.mxu0 %v7464_v10  ;;  %v7478_v20 = vld [vmem:[%s11342_s20 + $0x44] ss:$16 sps:$4 sm:$0xff]   ;;  %v7482_v22 = vld [vmem:[%s11342_s20 + $0x40] ss:$16 sps:$4 sm:$0xff]  }
  0x16   :  { %1499 = vmatpush1.bf16.msra.mxu1 %v7465_v11  ;;  %1459 = vmatprep.subr.bf16.mxu0 %v7466_v12  ;;  %v7480_v21 = vld [vmem:[%s11342_s20 + $0x244] ss:$16 sps:$4 sm:$0xff]   ;;  %v7483_v23 = vld [vmem:[%s11342_s20 + $0x240] ss:$16 sps:$4 sm:$0xff]  }
  0x17   :  { %1500 = vmatprep.subr.bf16.mxu1 %v7468_v13  ;;  %v7484_v24 = vld [vmem:[%s11342_s20 + $0x24] ss:$16 sps:$4 sm:$0xff]   ;;  %v7488_v26 = vld [vmem:[%s11342_s20 + $0x20] ss:$16 sps:$4 sm:$0xff]  }
  0x18   :  { %v7486_v25 = vld [vmem:[%s11342_s20 + $0x224] ss:$16 sps:$4 sm:$0xff]   ;;  %v7489_v27 = vld [vmem:[%s11342_s20 + $0x220] ss:$16 sps:$4 sm:$0xff]  }
  0x19   :  { %1460 = vmatpush1.bf16.msra.mxu0 %v7470_v14  ;;  %v7490_v28 = vld [vmem:[%s11342_s20 + $0x4] ss:$16 sps:$4 sm:$0xff]   ;;  %v7494_v30 = vld [vmem:[%s11342_s20] ss:$16 sps:$4 sm:$0xff]  }
  0x1a   :  { %1501 = vmatpush1.bf16.msra.mxu1 %v7471_v15  ;;  %1461 = vmatprep.subr.bf16.mxu0 %v7472_v16  ;;  %v7492_v29 = vld [vmem:[%s11342_s20 + $0x204] ss:$16 sps:$4 sm:$0xff]   ;;  %v7495_v31 = vld [vmem:[%s11342_s20 + $0x200] ss:$16 sps:$4 sm:$0xff]   ;;  %v8609_v16 = vmov 0  }
  0x1b   :  { %1502 = vmatprep.subr.bf16.mxu1 %v7474_v17  ;;  %v7496_v32 = vld [vmem:[%s11342_s20 + $0x1e4] ss:$16 sps:$4 sm:$0xff]   ;;  %v7500_v34 = vld [vmem:[%s11342_s20 + $0x1e0] ss:$16 sps:$4 sm:$0xff]  }
  0x1c   :  { %v7498_v33 = vld [vmem:[%s11342_s20 + $0x3e4] ss:$16 sps:$4 sm:$0xff]   ;;  %v7501_v35 = vld [vmem:[%s11342_s20 + $0x3e0] ss:$16 sps:$4 sm:$0xff]  }
  0x1d   :  { %1462 = vmatpush1.bf16.msra.mxu0 %v7476_v18  ;;  %v7502_v36 = vld [vmem:[%s11342_s20 + $0x1c4] ss:$16 sps:$4 sm:$0xff]   ;;  %v7506_v38 = vld [vmem:[%s11342_s20 + $0x1c0] ss:$16 sps:$4 sm:$0xff]  }
  0x1e   :  { %1503 = vmatpush1.bf16.msra.mxu1 %v7477_v19  ;;  %1463 = vmatprep.subr.bf16.mxu0 %v7478_v20  ;;  %v7504_v37 = vld [vmem:[%s11342_s20 + $0x3c4] ss:$16 sps:$4 sm:$0xff]   ;;  %v7507_v39 = vld [vmem:[%s11342_s20 + $0x3c0] ss:$16 sps:$4 sm:$0xff]  }
  0x1f   :  { %1504 = vmatprep.subr.bf16.mxu1 %v7480_v21  ;;  %v7508_v40 = vld [vmem:[%s11342_s20 + $0x1a4] ss:$16 sps:$4 sm:$0xff]   ;;  %v7512_v42 = vld [vmem:[%s11342_s20 + $0x1a0] ss:$16 sps:$4 sm:$0xff]  }
  0x20   :  { %v7510_v41 = vld [vmem:[%s11342_s20 + $0x3a4] ss:$16 sps:$4 sm:$0xff]   ;;  %v7513_v43 = vld [vmem:[%s11342_s20 + $0x3a0] ss:$16 sps:$4 sm:$0xff]  }
  0x21   :  { %1464 = vmatpush1.bf16.msra.mxu0 %v7482_v22  ;;  %v7514_v44 = vld [vmem:[%s11342_s20 + $0x184] ss:$16 sps:$4 sm:$0xff]   ;;  %v7518_v49 = vld [vmem:[%s11342_s20 + $0x180] ss:$16 sps:$4 sm:$0xff]  }
  0x22   :  { %1505 = vmatpush1.bf16.msra.mxu1 %v7483_v23  ;;  %1465 = vmatprep.subr.bf16.mxu0 %v7484_v24  ;;  %v7516_v45 = vld [vmem:[%s11342_s20 + $0x384] ss:$16 sps:$4 sm:$0xff]   ;;  %v7519_v50 = vld [vmem:[%s11342_s20 + $0x380] ss:$16 sps:$4 sm:$0xff]  }
  0x23   :  { %1506 = vmatprep.subr.bf16.mxu1 %v7486_v25  ;;  %v58_v46 = vld [vmem:[%s11343_s26] sm:$0xff] }
  0x24   :  { %v8851_v47 = vcombine.high %v58_v46, %v58_v46  ;;  %v7520_v52 = vld [vmem:[%s11342_s20 + $0x164] ss:$16 sps:$4 sm:$0xff]   ;;  %v7524_v54 = vld [vmem:[%s11342_s20 + $0x160] ss:$16 sps:$4 sm:$0xff]   ;;  %v8920_v6 = vcombine.low %v58_v46, %v58_v46 }
  0x25   :  { %1466 = vmatpush1.bf16.msra.mxu0 %v7488_v26  ;;  %v7522_v53 = vld [vmem:[%s11342_s20 + $0x364] ss:$16 sps:$4 sm:$0xff]   ;;  %v7525_v55 = vld [vmem:[%s11342_s20 + $0x360] ss:$16 sps:$4 sm:$0xff]  }
  0x26   :  { %1507 = vmatpush1.bf16.msra.mxu1 %v7489_v27  ;;  %1467 = vmatprep.subr.bf16.mxu0 %v7490_v28  ;;  %v7526_v56 = vld [vmem:[%s11342_s20 + $0x144] ss:$16 sps:$4 sm:$0xff]   ;;  %v7530_v58 = vld [vmem:[%s11342_s20 + $0x140] ss:$16 sps:$4 sm:$0xff]  }
  0x27   :  { %1508 = vmatprep.subr.bf16.mxu1 %v7492_v29  ;;  %1485 = vmatprep.mubr.bf16.mxu0 %v8851_v47  ;;  %v7528_v57 = vld [vmem:[%s11342_s20 + $0x344] ss:$16 sps:$4 sm:$0xff]   ;;  %v7531_v59 = vld [vmem:[%s11342_s20 + $0x340] ss:$16 sps:$4 sm:$0xff]  }
  0x28   :  { %v7532_v60 = vld [vmem:[%s11342_s20 + $0x124] ss:$16 sps:$4 sm:$0xff]   ;;  %v7536_v62 = vld [vmem:[%s11342_s20 + $0x120] ss:$16 sps:$4 sm:$0xff]  }
  0x29   :  { %1468 = vmatpush1.bf16.msra.mxu0 %v7494_v30  ;;  %v7534_v61 = vld [vmem:[%s11342_s20 + $0x324] ss:$16 sps:$4 sm:$0xff]   ;;  %v7537_v63 = vld [vmem:[%s11342_s20 + $0x320] ss:$16 sps:$4 sm:$0xff]  }
  0x2a   :  { %1509 = vmatpush1.bf16.msra.mxu1 %v7495_v31  ;;  %1469 = vmatprep.subr.bf16.mxu0 %v7496_v32  ;;  %v7538_v0 = vld [vmem:[%s11342_s20 + $0x104] ss:$16 sps:$4 sm:$0xff]   ;;  %v7542_v2 = vld [vmem:[%s11342_s20 + $0x100] ss:$16 sps:$4 sm:$0xff]  }
  0x2b   :  { %1510 = vmatprep.subr.bf16.mxu1 %v7498_v33  ;;  %v7540_v1 = vld [vmem:[%s11342_s20 + $0x304] ss:$16 sps:$4 sm:$0xff]   ;;  %v7543_v3 = vld [vmem:[%s11342_s20 + $0x300] ss:$16 sps:$4 sm:$0xff]  }
  0x2c   :  { %v7550_v4 = vld [vmem:[%s11342_s20 + $0x4e4] ss:$16 sps:$4 sm:$0xff]   ;;  %v7548_v8 = vld [vmem:[%s11342_s20 + $0x4e0] ss:$16 sps:$4 sm:$0xff]  }
  0x2d   :  { %1470 = vmatpush2.bf16.msra.mxu0 %v7500_v34  ;;  %v7553_v5 = vld [vmem:[%s11342_s20 + $0x6e4] ss:$16 sps:$4 sm:$0xff]   ;;  %v7551_v9 = vld [vmem:[%s11342_s20 + $0x6e0] ss:$16 sps:$4 sm:$0xff]  }
  0x2e   :  { %1511 = vmatpush2.bf16.msra.mxu1 %v7501_v35  ;;  %1471 = vmatprep.subr.bf16.mxu0 %v7502_v36  ;;  %v7556_v10 = vld [vmem:[%s11342_s20 + $0x4c4] ss:$16 sps:$4 sm:$0xff]   ;;  %v7554_v12 = vld [vmem:[%s11342_s20 + $0x4c0] ss:$16 sps:$4 sm:$0xff]  }
  0x2f   :  { %1512 = vmatprep.subr.bf16.mxu1 %v7504_v37  ;;  %v7559_v11 = vld [vmem:[%s11342_s20 + $0x6c4] ss:$16 sps:$4 sm:$0xff]   ;;  %v7557_v13 = vld [vmem:[%s11342_s20 + $0x6c0] ss:$16 sps:$4 sm:$0xff]  }
  0x30   :  { %v7562_v14 = vld [vmem:[%s11342_s20 + $0x4a4] ss:$16 sps:$4 sm:$0xff]   ;;  %v7560_v17 = vld [vmem:[%s11342_s20 + $0x4a0] ss:$16 sps:$4 sm:$0xff]  }
  0x31   :  { %1472 = vmatpush2.bf16.msra.mxu0 %v7506_v38  ;;  %v7565_v15 = vld [vmem:[%s11342_s20 + $0x6a4] ss:$16 sps:$4 sm:$0xff]   ;;  %v7563_v18 = vld [vmem:[%s11342_s20 + $0x6a0] ss:$16 sps:$4 sm:$0xff]  }
  0x32   :  { %1513 = vmatpush2.bf16.msra.mxu1 %v7507_v39  ;;  %1473 = vmatprep.subr.bf16.mxu0 %v7508_v40  ;;  %v7568_v19 = vld [vmem:[%s11342_s20 + $0x484] ss:$16 sps:$4 sm:$0xff]   ;;  %v7566_v21 = vld [vmem:[%s11342_s20 + $0x480] ss:$16 sps:$4 sm:$0xff]  }
  0x33   :  { %1514 = vmatprep.subr.bf16.mxu1 %v7510_v41  ;;  %v7571_v20 = vld [vmem:[%s11342_s20 + $0x684] ss:$16 sps:$4 sm:$0xff]   ;;  %v7569_v22 = vld [vmem:[%s11342_s20 + $0x680] ss:$16 sps:$4 sm:$0xff]  }
  0x34   :  { %v7574_v23 = vld [vmem:[%s11342_s20 + $0x464] ss:$16 sps:$4 sm:$0xff]   ;;  %v7572_v25 = vld [vmem:[%s11342_s20 + $0x460] ss:$16 sps:$4 sm:$0xff]  }
  0x35   :  { %1474 = vmatpush2.bf16.msra.mxu0 %v7512_v42  ;;  %v7577_v24 = vld [vmem:[%s11342_s20 + $0x664] ss:$16 sps:$4 sm:$0xff]   ;;  %v7575_v26 = vld [vmem:[%s11342_s20 + $0x660] ss:$16 sps:$4 sm:$0xff]   ;;  %v7602_v42 = vld [vmem:[%s11342_s20 + $0xec] ss:$16 sps:$4 sm:$0xff]  }
  0x36   :  { %1515 = vmatpush2.bf16.msra.mxu1 %v7513_v43  ;;  %1475 = vmatprep.subr.bf16.mxu0 %v7514_v44  ;;  %v7580_v27 = vld [vmem:[%s11342_s20 + $0x444] ss:$16 sps:$4 sm:$0xff]   ;;  %v7578_v29 = vld [vmem:[%s11342_s20 + $0x440] ss:$16 sps:$4 sm:$0xff]   ;;  %v9039_v44 = vld [vmem:[%s11343_s26 + $0x18] ss:$0 sps:$4 sm:$0xff]  }
  0x37   :  { %1516 = vmatprep.subr.bf16.mxu1 %v7516_v45  ;;  %v7583_v28 = vld [vmem:[%s11342_s20 + $0x644] ss:$16 sps:$4 sm:$0xff]   ;;  %v7581_v30 = vld [vmem:[%s11342_s20 + $0x640] ss:$16 sps:$4 sm:$0xff]   ;;  %v7600_v45 = vld [vmem:[%s11342_s20 + $0xe8] ss:$16 sps:$4 sm:$0xff]  }
  0x38   :  { %v7586_v31 = vld [vmem:[%s11342_s20 + $0x424] ss:$16 sps:$4 sm:$0xff]   ;;  %v7584_v34 = vld [vmem:[%s11342_s20 + $0x420] ss:$16 sps:$4 sm:$0xff]  }
  0x39   :  { %1476 = vmatpush2.bf16.msra.mxu0 %v7518_v49  ;;  %v7589_v32 = vld [vmem:[%s11342_s20 + $0x624] ss:$16 sps:$4 sm:$0xff]   ;;  %v7587_v36 = vld [vmem:[%s11342_s20 + $0x620] ss:$16 sps:$4 sm:$0xff]  }
  0x3a   :  { %1517 = vmatpush2.bf16.msra.mxu1 %v7519_v50  ;;  %1477 = vmatprep.subr.bf16.mxu0 %v7520_v52  ;;  %v9002_v33 = vld [vmem:[%s11343_s26 + $0x10] sm:$0xff]  ;;  %v7606_v50 = vld [vmem:[%s11342_s20 + $0xc8] ss:$16 sps:$4 sm:$0xff]   ;;  %s11345_s26 = sld [smem:[#allocation5_spill]] }
  0x3b   :  { %1518 = vmatprep.subr.bf16.mxu1 %v7522_v53  ;;  %v9009_v35 = vcombine.high %v9002_v33, %v9002_v33  ;;  %v7592_v37 = vld [vmem:[%s11342_s20 + $0x404] ss:$16 sps:$4 sm:$0xff]   ;;  %v7590_v39 = vld [vmem:[%s11342_s20 + $0x400] ss:$16 sps:$4 sm:$0xff]   ;;  %v7614_v53 = vld [vmem:[%s11342_s20 + $0xac] ss:$16 sps:$4 sm:$0xff]  }
  0x3c   :  { %v7595_v38 = vld [vmem:[%s11342_s20 + $0x604] ss:$16 sps:$4 sm:$0xff]   ;;  %v7593_v40 = vld [vmem:[%s11342_s20 + $0x600] ss:$16 sps:$4 sm:$0xff]  }
  0x3d   :  { %1478 = vmatpush2.bf16.msra.mxu0 %v7524_v54  ;;  %v7598_v41 = vld [vmem:[%s11342_s20 + $0x5e4] ss:$16 sps:$4 sm:$0xff]   ;;  %v7596_v43 = vld [vmem:[%s11342_s20 + $0x5e0] ss:$16 sps:$4 sm:$0xff]  }
  0x3e   :  { %1519 = vmatpush2.bf16.msra.mxu1 %v7525_v55  ;;  %1479 = vmatprep.subr.bf16.mxu0 %v7526_v56  ;;  %v7605_v46 = vld [vmem:[%s11342_s20 + $0x5c4] ss:$16 sps:$4 sm:$0xff]   ;;  %v7603_v49 = vld [vmem:[%s11342_s20 + $0x5c0] ss:$16 sps:$4 sm:$0xff]   ;;  %v7612_v55 = vld [vmem:[%s11342_s20 + $0xa8] ss:$16 sps:$4 sm:$0xff]  }
  0x3f   :  { %1520 = vmatprep.subr.bf16.mxu1 %v7528_v57  ;;  %v7611_v52 = vld [vmem:[%s11342_s20 + $0x5a4] ss:$16 sps:$4 sm:$0xff]   ;;  %v7609_v54 = vld [vmem:[%s11342_s20 + $0x5a0] ss:$16 sps:$4 sm:$0xff]  }
  0x40   :  { %v7617_v56 = vld [vmem:[%s11342_s20 + $0x584] ss:$16 sps:$4 sm:$0xff]   ;;  %v7615_v57 = vld [vmem:[%s11342_s20 + $0x580] ss:$16 sps:$4 sm:$0xff]  }
  0x41   :  { %1480 = vmatpush2.bf16.msra.mxu0 %v7530_v58  ;;  %v7618_v58 = vld [vmem:[%s11342_s20 + $0x88] ss:$16 sps:$4 sm:$0xff]  }
  0x42   :  { %1521 = vmatpush2.bf16.msra.mxu1 %v7531_v59  ;;  %1481 = vmatprep.subr.bf16.mxu0 %v7532_v60  ;;  %v7623_v59 = vld [vmem:[%s11342_s20 + $0x564] ss:$16 sps:$4 sm:$0xff]   ;;  %v7626_v60 = vld [vmem:[%s11342_s20 + $0x6c] ss:$16 sps:$4 sm:$0xff]  }
  0x43   :  { %1522 = vmatprep.subr.bf16.mxu1 %v7534_v61  ;;  %v7621_v61 = vld [vmem:[%s11342_s20 + $0x560] ss:$16 sps:$4 sm:$0xff]  }
  0x45   :  { %1482 = vmatpush2.bf16.msra.mxu0 %v7536_v62  ;;  %v7624_v62 = vld [vmem:[%s11342_s20 + $0x68] ss:$16 sps:$4 sm:$0xff]  }
  0x46   :  { %1523 = vmatpush2.bf16.msra.mxu1 %v7537_v63  ;;  %1483 = vmatprep.subr.bf16.mxu0 %v7538_v0  ;;  %v7629_v63 = vld [vmem:[%s11342_s20 + $0x544] ss:$16 sps:$4 sm:$0xff]   ;;  %v7632_v0 = vld [vmem:[%s11342_s20 + $0x4c] ss:$16 sps:$4 sm:$0xff]  }
  0x47   :  { %1524 = vmatprep.subr.bf16.mxu1 %v7540_v1  ;;  %v7627_v1 = vld [vmem:[%s11342_s20 + $0x540] ss:$16 sps:$4 sm:$0xff]  }
  0x49   :  { %1484 = vmatpush2.bf16.msra.mxu0 %v7542_v2  ;;  %v7630_v2 = vld [vmem:[%s11342_s20 + $0x48] ss:$16 sps:$4 sm:$0xff]  }
  0x4a   :  { %1525 = vmatpush2.bf16.msra.mxu1 %v7543_v3  ;;  %1535 = vmatprep.subr.bf16.mxu0 %v7550_v4  ;;  %v7635_v3 = vld [vmem:[%s11342_s20 + $0x524] ss:$16 sps:$4 sm:$0xff]   ;;  %v7638_v4 = vld [vmem:[%s11342_s20 + $0x2c] ss:$16 sps:$4 sm:$0xff]  }
  0x4b   :  { %1576 = vmatprep.subr.bf16.mxu1 %v7553_v5  ;;  %v7633_v5 = vld [vmem:[%s11342_s20 + $0x520] ss:$16 sps:$4 sm:$0xff]  }
  0x4c   :  { %1486 = vmatmul.mubr.bf16.vlgmr.msra.gmra.mxu0 %v8920_v6 }
  0x4d   :  { %1527 = vmatmul.mubr.bf16.vlgmr.msra.gmra.mxu1 %v8922_v7  ;;  %1536 = vmatpush1.bf16.msra.mxu0 %v7548_v8  ;;  %v7636_v8 = vld [vmem:[%s11342_s20 + $0x28] ss:$16 sps:$4 sm:$0xff]  }
  0x4e   :  { %1577 = vmatpush1.bf16.msra.mxu1 %v7551_v9  ;;  %1537 = vmatprep.subr.bf16.mxu0 %v7556_v10  ;;  %v7641_v9 = vld [vmem:[%s11342_s20 + $0x504] ss:$16 sps:$4 sm:$0xff]   ;;  %v7644_v10 = vld [vmem:[%s11342_s20 + $0xc] ss:$16 sps:$4 sm:$0xff]  }
  0x4f   :  { %1578 = vmatprep.subr.bf16.mxu1 %v7559_v11  ;;  %1608 = vmatprep.mubr.bf16.mxu1 %v8609_v16  ;;  %v7639_v11 = vld [vmem:[%s11342_s20 + $0x500] ss:$16 sps:$4 sm:$0xff]  }
  0x50   :  { %1567 = vmatprep.mubr.bf16.mxu0 %v9009_v35 }
  0x51   :  { %1538 = vmatpush1.bf16.msra.mxu0 %v7554_v12  ;;  %v7642_v12 = vld [vmem:[%s11342_s20 + $0x8] ss:$16 sps:$4 sm:$0xff]  }
  0x52   :  { %1579 = vmatpush1.bf16.msra.mxu1 %v7557_v13  ;;  %1539 = vmatprep.subr.bf16.mxu0 %v7562_v14  ;;  %v7649_v13 = vld [vmem:[%s11342_s20 + $0x1ec] ss:$16 sps:$4 sm:$0xff]  }
  0x53   :  { %1580 = vmatprep.subr.bf16.mxu1 %v7565_v15  ;;  %v7652_v14 = vld [vmem:[%s11342_s20 + $0x2ec] ss:$16 sps:$4 sm:$0xff]   ;;  %v9138_v15 = vcombine.low %v9002_v33, %v9002_v33  ;;  %v7674_v33 = vld [vmem:[%s11342_s20 + $0x268] ss:$16 sps:$4 sm:$0xff]  }
  0x55   :  { %1540 = vmatpush1.bf16.msra.mxu0 %v7560_v17  ;;  %v7647_v17 = vld [vmem:[%s11342_s20 + $0x1e8] ss:$16 sps:$4 sm:$0xff]  }
  0x56   :  { %1581 = vmatpush1.bf16.msra.mxu1 %v7563_v18  ;;  %1541 = vmatprep.subr.bf16.mxu0 %v7568_v19  ;;  %v7650_v18 = vld [vmem:[%s11342_s20 + $0x2e8] ss:$16 sps:$4 sm:$0xff]   ;;  %v7655_v19 = vld [vmem:[%s11342_s20 + $0x1cc] ss:$16 sps:$4 sm:$0xff]  }
  0x57   :  { %1582 = vmatprep.subr.bf16.mxu1 %v7571_v20  ;;  %v7658_v20 = vld [vmem:[%s11342_s20 + $0x2cc] ss:$16 sps:$4 sm:$0xff]  }
  0x59   :  { %1542 = vmatpush1.bf16.msra.mxu0 %v7566_v21  ;;  %v7653_v21 = vld [vmem:[%s11342_s20 + $0x1c8] ss:$16 sps:$4 sm:$0xff]  }
  0x5a   :  { %1583 = vmatpush1.bf16.msra.mxu1 %v7569_v22  ;;  %1543 = vmatprep.subr.bf16.mxu0 %v7574_v23  ;;  %v7656_v22 = vld [vmem:[%s11342_s20 + $0x2c8] ss:$16 sps:$4 sm:$0xff]   ;;  %v7661_v23 = vld [vmem:[%s11342_s20 + $0x1ac] ss:$16 sps:$4 sm:$0xff]  }
  0x5b   :  { %1584 = vmatprep.subr.bf16.mxu1 %v7577_v24  ;;  %v7664_v24 = vld [vmem:[%s11342_s20 + $0x2ac] ss:$16 sps:$4 sm:$0xff]  }
  0x5d   :  { %1544 = vmatpush1.bf16.msra.mxu0 %v7572_v25  ;;  %v7659_v25 = vld [vmem:[%s11342_s20 + $0x1a8] ss:$16 sps:$4 sm:$0xff]  }
  0x5e   :  { %1585 = vmatpush1.bf16.msra.mxu1 %v7575_v26  ;;  %1545 = vmatprep.subr.bf16.mxu0 %v7580_v27  ;;  %v7662_v26 = vld [vmem:[%s11342_s20 + $0x2a8] ss:$16 sps:$4 sm:$0xff]   ;;  %v7667_v27 = vld [vmem:[%s11342_s20 + $0x18c] ss:$16 sps:$4 sm:$0xff]  }
  0x5f   :  { %1586 = vmatprep.subr.bf16.mxu1 %v7583_v28  ;;  %v7665_v28 = vld [vmem:[%s11342_s20 + $0x188] ss:$16 sps:$4 sm:$0xff]  }
  0x61   :  { %1546 = vmatpush1.bf16.msra.mxu0 %v7578_v29  ;;  %v7668_v29 = vld [vmem:[%s11342_s20 + $0x288] ss:$16 sps:$4 sm:$0xff]  }
  0x62   :  { %1587 = vmatpush1.bf16.msra.mxu1 %v7581_v30  ;;  %1547 = vmatprep.subr.bf16.mxu0 %v7586_v31  ;;  %v7673_v30 = vld [vmem:[%s11342_s20 + $0x16c] ss:$16 sps:$4 sm:$0xff]  }
  0x63   :  { %1588 = vmatprep.subr.bf16.mxu1 %v7589_v32  ;;  %v7676_v31 = vld [vmem:[%s11342_s20 + $0x26c] ss:$16 sps:$4 sm:$0xff]   ;;  %v7671_v32 = vld [vmem:[%s11342_s20 + $0x168] ss:$16 sps:$4 sm:$0xff]  }
  0x65   :  { %1548 = vmatpush1.bf16.msra.mxu0 %v7584_v34  ;;  %v7679_v34 = vld [vmem:[%s11342_s20 + $0x14c] ss:$16 sps:$4 sm:$0xff]  }
  0x66   :  { %1589 = vmatpush1.bf16.msra.mxu1 %v7587_v36  ;;  %1549 = vmatprep.subr.bf16.mxu0 %v7592_v37  ;;  %v7682_v36 = vld [vmem:[%s11342_s20 + $0x24c] ss:$16 sps:$4 sm:$0xff]   ;;  %v7677_v37 = vld [vmem:[%s11342_s20 + $0x148] ss:$16 sps:$4 sm:$0xff]  }
  0x67   :  { %1590 = vmatprep.subr.bf16.mxu1 %v7595_v38  ;;  %v7680_v38 = vld [vmem:[%s11342_s20 + $0x248] ss:$16 sps:$4 sm:$0xff]  }
  0x69   :  { %1550 = vmatpush1.bf16.msra.mxu0 %v7590_v39  ;;  %v7685_v39 = vld [vmem:[%s11342_s20 + $0x12c] ss:$16 sps:$4 sm:$0xff]  }
  0x6a   :  { %1591 = vmatpush1.bf16.msra.mxu1 %v7593_v40  ;;  %1551 = vmatprep.subr.bf16.mxu0 %v7598_v41  ;;  %v7688_v40 = vld [vmem:[%s11342_s20 + $0x22c] ss:$16 sps:$4 sm:$0xff]   ;;  %v7683_v41 = vld [vmem:[%s11342_s20 + $0x128] ss:$16 sps:$4 sm:$0xff]  }
  0x6b   :  { %1617 = vmatprep.subr.bf16.mxu1 %v7602_v42  ;;  %v7686_v42 = vld [vmem:[%s11342_s20 + $0x228] ss:$16 sps:$4 sm:$0xff]  }
  0x6d   :  { %1609 = vmatmul.mubr.bf16.vlgmr.msra.gmra.mxu1 %v9039_v44  ;;  %1552 = vmatpush2.bf16.msra.mxu0 %v7596_v43  ;;  %v7691_v43 = vld [vmem:[%s11342_s20 + $0x10c] ss:$16 sps:$4 sm:$0xff]  }
  0x6e   :  { %1618 = vmatpush1.bf16.msra.mxu1 %v7600_v45  ;;  %1553 = vmatprep.subr.bf16.mxu0 %v7605_v46  ;;  %v7694_v45 = vld [vmem:[%s11342_s20 + $0x20c] ss:$16 sps:$4 sm:$0xff]   ;;  %v7689_v46 = vld [vmem:[%s11342_s20 + $0x108] ss:$16 sps:$4 sm:$0xff]  }
  0x6f   :  { %1619 = vmatprep.subr.bf16.mxu1 %v7608_v48  ;;  %1649 = vmatprep.mubr.bf16.mxu1 %v8851_v47  ;;  %v7620_v47 = vld [vmem:[%s11342_s20 + $0x8c] ss:$16 sps:$4 sm:$0xff]   ;;  %v7692_v48 = vld [vmem:[%s11342_s20 + $0x208] ss:$16 sps:$4 sm:$0xff]  }
  0x71   :  { %1554 = vmatpush2.bf16.msra.mxu0 %v7603_v49  ;;  %v7697_v49 = vld [vmem:[%s11342_s20 + $0x3ec] ss:$16 sps:$4 sm:$0xff]  }
  0x72   :  { %1620 = vmatpush1.bf16.msra.mxu1 %v7606_v50  ;;  %1555 = vmatprep.subr.bf16.mxu0 %v7611_v52  ;;  %v7700_v50 = vld [vmem:[%s11342_s20 + $0x4ec] ss:$16 sps:$4 sm:$0xff]   ;;  %v7695_v52 = vld [vmem:[%s11342_s20 + $0x3e8] ss:$16 sps:$4 sm:$0xff]  }
  0x73   :  { %1621 = vmatprep.subr.bf16.mxu1 %v7614_v53  ;;  %v7698_v53 = vld [vmem:[%s11342_s20 + $0x4e8] ss:$16 sps:$4 sm:$0xff]  }
  0x75   :  { %1556 = vmatpush2.bf16.msra.mxu0 %v7609_v54  ;;  %v7703_v54 = vld [vmem:[%s11342_s20 + $0x3cc] ss:$16 sps:$4 sm:$0xff]  }
  0x76   :  { %1622 = vmatpush1.bf16.msra.mxu1 %v7612_v55  ;;  %1557 = vmatprep.subr.bf16.mxu0 %v7617_v56  ;;  %v7706_v55 = vld [vmem:[%s11342_s20 + $0x4cc] ss:$16 sps:$4 sm:$0xff]   ;;  %v7701_v56 = vld [vmem:[%s11342_s20 + $0x3c8] ss:$16 sps:$4 sm:$0xff]  }
  0x77   :  { %1623 = vmatprep.subr.bf16.mxu1 %v7620_v47  ;;  %v7704_v47 = vld [vmem:[%s11342_s20 + $0x4c8] ss:$16 sps:$4 sm:$0xff]  }
  0x79   :  { %1558 = vmatpush2.bf16.msra.mxu0 %v7615_v57  ;;  %v7709_v57 = vld [vmem:[%s11342_s20 + $0x3ac] ss:$16 sps:$4 sm:$0xff]  }
  0x7a   :  { %1624 = vmatpush1.bf16.msra.mxu1 %v7618_v58  ;;  %1559 = vmatprep.subr.bf16.mxu0 %v7623_v59  ;;  %v7712_v58 = vld [vmem:[%s11342_s20 + $0x4ac] ss:$16 sps:$4 sm:$0xff]   ;;  %v7707_v59 = vld [vmem:[%s11342_s20 + $0x3a8] ss:$16 sps:$4 sm:$0xff]  }
  0x7b   :  { %1625 = vmatprep.subr.bf16.mxu1 %v7626_v60  ;;  %v7715_v60 = vld [vmem:[%s11342_s20 + $0x38c] ss:$16 sps:$4 sm:$0xff]  }
  0x7d   :  { %1560 = vmatpush2.bf16.msra.mxu0 %v7621_v61  ;;  %v7718_v61 = vld [vmem:[%s11342_s20 + $0x48c] ss:$16 sps:$4 sm:$0xff]  }
  0x7e   :  { %1626 = vmatpush1.bf16.msra.mxu1 %v7624_v62  ;;  %1561 = vmatprep.subr.bf16.mxu0 %v7629_v63  ;;  %v7716_v62 = vld [vmem:[%s11342_s20 + $0x488] ss:$16 sps:$4 sm:$0xff]   ;;  %v7721_v63 = vld [vmem:[%s11342_s20 + $0x36c] ss:$16 sps:$4 sm:$0xff]  }
  0x7f   :  { %1627 = vmatprep.subr.bf16.mxu1 %v7632_v0  ;;  %v7724_v0 = vld [vmem:[%s11342_s20 + $0x46c] ss:$16 sps:$4 sm:$0xff]  }
  0x81   :  { %1562 = vmatpush2.bf16.msra.mxu0 %v7627_v1  ;;  %v7719_v1 = vld [vmem:[%s11342_s20 + $0x368] ss:$16 sps:$4 sm:$0xff]  }
  0x82   :  { %1628 = vmatpush1.bf16.msra.mxu1 %v7630_v2  ;;  %1563 = vmatprep.subr.bf16.mxu0 %v7635_v3  ;;  %v7722_v2 = vld [vmem:[%s11342_s20 + $0x468] ss:$16 sps:$4 sm:$0xff]   ;;  %v7727_v3 = vld [vmem:[%s11342_s20 + $0x34c] ss:$16 sps:$4 sm:$0xff]  }
  0x83   :  { %1629 = vmatprep.subr.bf16.mxu1 %v7638_v4  ;;  %v7730_v4 = vld [vmem:[%s11342_s20 + $0x44c] ss:$16 sps:$4 sm:$0xff]  }
  0x85   :  { %1564 = vmatpush2.bf16.msra.mxu0 %v7633_v5  ;;  %v7725_v5 = vld [vmem:[%s11342_s20 + $0x348] ss:$16 sps:$4 sm:$0xff]  }
  0x86   :  { %1630 = vmatpush1.bf16.msra.mxu1 %v7636_v8  ;;  %1565 = vmatprep.subr.bf16.mxu0 %v7641_v9  ;;  %v7728_v8 = vld [vmem:[%s11342_s20 + $0x448] ss:$16 sps:$4 sm:$0xff]   ;;  %v7733_v9 = vld [vmem:[%s11342_s20 + $0x32c] ss:$16 sps:$4 sm:$0xff]  }
  0x87   :  { %1631 = vmatprep.subr.bf16.mxu1 %v7644_v10  ;;  %v7736_v10 = vld [vmem:[%s11342_s20 + $0x42c] ss:$16 sps:$4 sm:$0xff]  }
  0x89   :  { %1566 = vmatpush2.bf16.msra.mxu0 %v7639_v11  ;;  %v7731_v11 = vld [vmem:[%s11342_s20 + $0x328] ss:$16 sps:$4 sm:$0xff]  }
  0x8a   :  { %1632 = vmatpush1.bf16.msra.mxu1 %v7642_v12  ;;  %1658 = vmatprep.subr.bf16.mxu0 %v7652_v14  ;;  %v7734_v12 = vld [vmem:[%s11342_s20 + $0x428] ss:$16 sps:$4 sm:$0xff]   ;;  %v7742_v14 = vld [vmem:[%s11342_s20 + $0x40c] ss:$16 sps:$4 sm:$0xff]  }
  0x8b   :  { %1633 = vmatprep.subr.bf16.mxu1 %v7649_v13  ;;  %v7739_v13 = vld [vmem:[%s11342_s20 + $0x30c] ss:$16 sps:$4 sm:$0xff]  }
  0x8c   :  { %1568 = vmatmul.mubr.bf16.vlgmr.msra.gmra.mxu0 %v9138_v15 }
  0x8d   :  { %1659 = vmatpush1.bf16.msra.mxu0 %v7650_v18  ;;  %1690 = vmatprep.mubr.bf16.mxu0 %v8862_v51  ;;  %v7670_v51 = vld [vmem:[%s11342_s20 + $0x28c] ss:$16 sps:$4 sm:$0xff]   ;;  %v7740_v18 = vld [vmem:[%s11342_s20 + $0x408] ss:$16 sps:$4 sm:$0xff]  }
  0x8e   :  { %1634 = vmatpush2.bf16.msra.mxu1 %v7647_v17  ;;  %1660 = vmatprep.subr.bf16.mxu0 %v7658_v20  ;;  %v7737_v17 = vld [vmem:[%s11342_s20 + $0x308] ss:$16 sps:$4 sm:$0xff]   ;;  %v7748_v20 = vld [vmem:[%s11342_s20 + $0x6ec] ss:$16 sps:$4 sm:$0xff]  }
  0x8f   :  { %1635 = vmatprep.subr.bf16.mxu1 %v7655_v19  ;;  %v7745_v19 = vld [vmem:[%s11342_s20 + $0x5ec] ss:$16 sps:$4 sm:$0xff]  }
  0x91   :  { %1661 = vmatpush1.bf16.msra.mxu0 %v7656_v22  ;;  %v7746_v22 = vld [vmem:[%s11342_s20 + $0x6e8] ss:$16 sps:$4 sm:$0xff]  }
  0x92   :  { %1636 = vmatpush2.bf16.msra.mxu1 %v7653_v21  ;;  %1662 = vmatprep.subr.bf16.mxu0 %v7664_v24  ;;  %v7743_v21 = vld [vmem:[%s11342_s20 + $0x5e8] ss:$16 sps:$4 sm:$0xff]   ;;  %v7754_v24 = vld [vmem:[%s11342_s20 + $0x6cc] ss:$16 sps:$4 sm:$0xff]  }
  0x93   :  { %1637 = vmatprep.subr.bf16.mxu1 %v7661_v23  ;;  %v7751_v23 = vld [vmem:[%s11342_s20 + $0x5cc] ss:$16 sps:$4 sm:$0xff]  }
  0x95   :  { %1663 = vmatpush1.bf16.msra.mxu0 %v7662_v26  ;;  %v7752_v26 = vld [vmem:[%s11342_s20 + $0x6c8] ss:$16 sps:$4 sm:$0xff]  }
  0x96   :  { %1638 = vmatpush2.bf16.msra.mxu1 %v7659_v25  ;;  %1664 = vmatprep.subr.bf16.mxu0 %v7670_v51  ;;  %v7749_v25 = vld [vmem:[%s11342_s20 + $0x5c8] ss:$16 sps:$4 sm:$0xff]   ;;  %v7760_v51 = vld [vmem:[%s11342_s20 + $0x6ac] ss:$16 sps:$4 sm:$0xff]  }
  0x97   :  { %1639 = vmatprep.subr.bf16.mxu1 %v7667_v27  ;;  %v7757_v27 = vld [vmem:[%s11342_s20 + $0x5ac] ss:$16 sps:$4 sm:$0xff]  }
  0x99   :  { %1665 = vmatpush1.bf16.msra.mxu0 %v7668_v29  ;;  %v7763_v29 = vld [vmem:[%s11342_s20 + $0x58c] ss:$16 sps:$4 sm:$0xff]  }
  0x9a   :  { %1640 = vmatpush2.bf16.msra.mxu1 %v7665_v28  ;;  %1666 = vmatprep.subr.bf16.mxu0 %v7676_v31  ;;  %v7755_v28 = vld [vmem:[%s11342_s20 + $0x5a8] ss:$16 sps:$4 sm:$0xff]  }
  0x9b   :  { %1641 = vmatprep.subr.bf16.mxu1 %v7673_v30  ;;  %v7766_v30 = vld [vmem:[%s11342_s20 + $0x68c] ss:$16 sps:$4 sm:$0xff]   ;;  %v7761_v31 = vld [vmem:[%s11342_s20 + $0x588] ss:$16 sps:$4 sm:$0xff]  }
  0x9d   :  { %1667 = vmatpush1.bf16.msra.mxu0 %v7674_v33  ;;  %v7769_v33 = vld [vmem:[%s11342_s20 + $0x56c] ss:$16 sps:$4 sm:$0xff]  }
  0x9e   :  { %1642 = vmatpush2.bf16.msra.mxu1 %v7671_v32  ;;  %1668 = vmatprep.subr.bf16.mxu0 %v7682_v36  ;;  %v7764_v32 = vld [vmem:[%s11342_s20 + $0x688] ss:$16 sps:$4 sm:$0xff]  }
  0x9f   :  { %1643 = vmatprep.subr.bf16.mxu1 %v7679_v34  ;;  %v7772_v34 = vld [vmem:[%s11342_s20 + $0x66c] ss:$16 sps:$4 sm:$0xff]   ;;  %v7767_v36 = vld [vmem:[%s11342_s20 + $0x568] ss:$16 sps:$4 sm:$0xff]  }
  0xa1   :  { %1669 = vmatpush1.bf16.msra.mxu0 %v7680_v38  ;;  %v7775_v38 = vld [vmem:[%s11342_s20 + $0x54c] ss:$16 sps:$4 sm:$0xff]  }
  0xa2   :  { %1644 = vmatpush2.bf16.msra.mxu1 %v7677_v37  ;;  %1670 = vmatprep.subr.bf16.mxu0 %v7688_v40  ;;  %v7770_v37 = vld [vmem:[%s11342_s20 + $0x668] ss:$16 sps:$4 sm:$0xff]  }
  0xa3   :  { %1645 = vmatprep.subr.bf16.mxu1 %v7685_v39  ;;  %v7778_v39 = vld [vmem:[%s11342_s20 + $0x64c] ss:$16 sps:$4 sm:$0xff]   ;;  %v7773_v40 = vld [vmem:[%s11342_s20 + $0x548] ss:$16 sps:$4 sm:$0xff]  }
  0xa5   :  { %1671 = vmatpush1.bf16.msra.mxu0 %v7686_v42  ;;  %v7781_v42 = vld [vmem:[%s11342_s20 + $0x52c] ss:$16 sps:$4 sm:$0xff]  }
  0xa6   :  { %1646 = vmatpush2.bf16.msra.mxu1 %v7683_v41  ;;  %1672 = vmatprep.subr.bf16.mxu0 %v7694_v45  ;;  %v7776_v41 = vld [vmem:[%s11342_s20 + $0x648] ss:$16 sps:$4 sm:$0xff]  }
  0xa7   :  { %1647 = vmatprep.subr.bf16.mxu1 %v7691_v43  ;;  %v7784_v43 = vld [vmem:[%s11342_s20 + $0x62c] ss:$16 sps:$4 sm:$0xff]   ;;  %v7779_v45 = vld [vmem:[%s11342_s20 + $0x528] ss:$16 sps:$4 sm:$0xff]  }
  0xa9   :  { %1673 = vmatpush1.bf16.msra.mxu0 %v7692_v48  ;;  %v7787_v48 = vld [vmem:[%s11342_s20 + $0x50c] ss:$16 sps:$4 sm:$0xff]  }
  0xaa   :  { %1648 = vmatpush2.bf16.msra.mxu1 %v7689_v46  ;;  %1674 = vmatprep.subr.bf16.mxu0 %v7697_v49  ;;  %v7782_v46 = vld [vmem:[%s11342_s20 + $0x628] ss:$16 sps:$4 sm:$0xff]   ;;  %v7790_v49 = vld [vmem:[%s11342_s20 + $0x60c] ss:$16 sps:$4 sm:$0xff]  }
  0xab   :  { %1699 = vmatprep.subr.bf16.mxu1 %v7700_v50  ;;  %v7785_v50 = vld [vmem:[%s11342_s20 + $0x508] ss:$16 sps:$4 sm:$0xff]  }
  0xad   :  { %1650 = vmatmul.mubr.bf16.vlgmr.msra.gmra.mxu1 %v8920_v6  ;;  %1675 = vmatpush2.bf16.msra.mxu0 %v7695_v52  ;;  %v7710_v6 = vld [vmem:[%s11342_s20 + $0x4a8] ss:$16 sps:$4 sm:$0xff]  }
  0xae   :  { %1700 = vmatpush1.bf16.msra.mxu1 %v7698_v53  ;;  %1676 = vmatprep.subr.bf16.mxu0 %v7703_v54  ;;  %v7788_v52 = vld [vmem:[%s11342_s20 + $0x608] ss:$16 sps:$4 sm:$0xff]   ;;  %v7793_v53 = vld [vmem:[%s11344_s4 + $0xe4] ss:$16 sps:$4 sm:$0xff]   ;;  %v7791_v54 = vld [vmem:[%s11344_s4 + $0xe0] ss:$16 sps:$4 sm:$0xff]  }
  0xaf   :  { %1701 = vmatprep.subr.bf16.mxu1 %v7706_v55  ;;  %1731 = vmatprep.mubr.bf16.mxu1 %v9009_v35  ;;  %v7713_v35 = vld [vmem:[%s11342_s20 + $0x388] ss:$16 sps:$4 sm:$0xff]   ;;  %v7796_v55 = vld [vmem:[%s11344_s4 + $0xc4] ss:$16 sps:$4 sm:$0xff]  }
  0xb1   :  { %1677 = vmatpush2.bf16.msra.mxu0 %v7701_v56  ;;  %v7794_v56 = vld [vmem:[%s11344_s4 + $0xc0] ss:$16 sps:$4 sm:$0xff]  }
  0xb2   :  { %1702 = vmatpush1.bf16.msra.mxu1 %v7704_v47  ;;  %1678 = vmatprep.subr.bf16.mxu0 %v7709_v57  ;;  %v7799_v47 = vld [vmem:[%s11344_s4 + $0xa4] ss:$16 sps:$4 sm:$0xff]   ;;  %v7797_v57 = vld [vmem:[%s11344_s4 + $0xa0] ss:$16 sps:$4 sm:$0xff]  }
  0xb3   :  { %1703 = vmatprep.subr.bf16.mxu1 %v7712_v58  ;;  %v7863_v58 = vld [vmem:[%s11344_s4 + $0x2e0] ss:$16 sps:$4 sm:$0xff]  }
  0xb5   :  { %1679 = vmatpush2.bf16.msra.mxu0 %v7707_v59  ;;  %v7865_v59 = vld [vmem:[%s11344_s4 + $0x2e4] ss:$16 sps:$4 sm:$0xff]  }
  0xb6   :  { %1704 = vmatpush1.bf16.msra.mxu1 %v7710_v6  ;;  %1680 = vmatprep.subr.bf16.mxu0 %v7715_v60  ;;  %v7805_v6 = vld [vmem:[%s11344_s4 + $0x64] ss:$16 sps:$4 sm:$0xff]   ;;  %v7803_v60 = vld [vmem:[%s11344_s4 + $0x60] ss:$16 sps:$4 sm:$0xff]  }
  0xb7   :  { %1705 = vmatprep.subr.bf16.mxu1 %v7718_v61  ;;  %v7869_v61 = vld [vmem:[%s11344_s4 + $0x2c0] ss:$16 sps:$4 sm:$0xff]  }
  0xb9   :  { %1681 = vmatpush2.bf16.msra.mxu0 %v7713_v35  ;;  %v7871_v35 = vld [vmem:[%s11344_s4 + $0x2c4] ss:$16 sps:$4 sm:$0xff]  }
  0xba   :  { %1706 = vmatpush1.bf16.msra.mxu1 %v7716_v62  ;;  %1682 = vmatprep.subr.bf16.mxu0 %v7721_v63  ;;  %v7808_v62 = vld [vmem:[%s11344_s4 + $0x44] ss:$16 sps:$4 sm:$0xff]   ;;  %v7806_v63 = vld [vmem:[%s11344_s4 + $0x40] ss:$16 sps:$4 sm:$0xff]  }
  0xbb   :  { %1707 = vmatprep.subr.bf16.mxu1 %v7724_v0  ;;  %v7875_v0 = vld [vmem:[%s11344_s4 + $0x2a0] ss:$16 sps:$4 sm:$0xff]  }
  0xbd   :  { %1683 = vmatpush2.bf16.msra.mxu0 %v7719_v1  ;;  %v7877_v1 = vld [vmem:[%s11344_s4 + $0x2a4] ss:$16 sps:$4 sm:$0xff]  }
  0xbe   :  { %1708 = vmatpush1.bf16.msra.mxu1 %v7722_v2  ;;  %1684 = vmatprep.subr.bf16.mxu0 %v7727_v3  ;;  %v7811_v2 = vld [vmem:[%s11344_s4 + $0x24] ss:$16 sps:$4 sm:$0xff]   ;;  %v7809_v3 = vld [vmem:[%s11344_s4 + $0x20] ss:$16 sps:$4 sm:$0xff]  }
  0xbf   :  { %1709 = vmatprep.subr.bf16.mxu1 %v7730_v4  ;;  %v7881_v4 = vld [vmem:[%s11344_s4 + $0x280] ss:$16 sps:$4 sm:$0xff]  }
  0xc1   :  { %1685 = vmatpush2.bf16.msra.mxu0 %v7725_v5  ;;  %v7883_v5 = vld [vmem:[%s11344_s4 + $0x284] ss:$16 sps:$4 sm:$0xff]  }
  0xc2   :  { %1710 = vmatpush1.bf16.msra.mxu1 %v7728_v8  ;;  %1686 = vmatprep.subr.bf16.mxu0 %v7733_v9  ;;  %v7814_v8 = vld [vmem:[%s11344_s4 + $0x4] ss:$16 sps:$4 sm:$0xff]   ;;  %v7812_v9 = vld [vmem:[%s11344_s4] ss:$16 sps:$4 sm:$0xff]  }
  0xc3   :  { %1711 = vmatprep.subr.bf16.mxu1 %v7736_v10  ;;  %v7887_v10 = vld [vmem:[%s11344_s4 + $0x260] ss:$16 sps:$4 sm:$0xff]  }
  0xc5   :  { %1687 = vmatpush2.bf16.msra.mxu0 %v7731_v11  ;;  %v7889_v11 = vld [vmem:[%s11344_s4 + $0x264] ss:$16 sps:$4 sm:$0xff]  }
  0xc6   :  { %1712 = vmatpush1.bf16.msra.mxu1 %v7734_v12  ;;  %1688 = vmatprep.subr.bf16.mxu0 %v7739_v13  ;;  %v7817_v12 = vld [vmem:[%s11344_s4 + $0x1e4] ss:$16 sps:$4 sm:$0xff]   ;;  %v7815_v13 = vld [vmem:[%s11344_s4 + $0x1e0] ss:$16 sps:$4 sm:$0xff]  }
  0xc7   :  { %1713 = vmatprep.subr.bf16.mxu1 %v7742_v14  ;;  %v7893_v14 = vld [vmem:[%s11344_s4 + $0x240] ss:$16 sps:$4 sm:$0xff]  }
  0xc9   :  { %1689 = vmatpush2.bf16.msra.mxu0 %v7737_v17  ;;  %v7895_v17 = vld [vmem:[%s11344_s4 + $0x244] ss:$16 sps:$4 sm:$0xff]  }
  0xca   :  { %1714 = vmatpush1.bf16.msra.mxu1 %v7740_v18  ;;  %1740 = vmatprep.subr.bf16.mxu0 %v7748_v20  ;;  %v7820_v18 = vld [vmem:[%s11344_s4 + $0x1c4] ss:$16 sps:$4 sm:$0xff]  }
  0xcb   :  { %1715 = vmatprep.subr.bf16.mxu1 %v7745_v19 }
  0xcc   :  { %1691 = vmatmul.mubr.bf16.vlgmr.msra.gmra.mxu0 %v8922_v7  ;;  %v7758_v7 = vld [vmem:[%s11342_s20 + $0x6a8] ss:$16 sps:$4 sm:$0xff]  }
  0xcd   :  { %1741 = vmatpush1.bf16.msra.mxu0 %v7746_v22  ;;  %1772 = vmatprep.mubr.bf16.mxu0 %v8609_v16 }
  0xce   :  { %1716 = vmatpush2.bf16.msra.mxu1 %v7743_v21  ;;  %1742 = vmatprep.subr.bf16.mxu0 %v7754_v24  ;;  %v7818_v21 = vld [vmem:[%s11344_s4 + $0x1c0] ss:$16 sps:$4 sm:$0xff]   ;;  %v7823_v24 = vld [vmem:[%s11344_s4 + $0x1a4] ss:$16 sps:$4 sm:$0xff]  }
  0xcf   :  { %1717 = vmatprep.subr.bf16.mxu1 %v7751_v23 }
  0xd1   :  { %1743 = vmatpush1.bf16.msra.mxu0 %v7752_v26  ;;  %v7899_v26 = vld [vmem:[%s11344_s4 + $0x220] ss:$16 sps:$4 sm:$0xff]  }
  0xd2   :  { %1718 = vmatpush2.bf16.msra.mxu1 %v7749_v25  ;;  %1744 = vmatprep.subr.bf16.mxu0 %v7760_v51  ;;  %v7901_v25 = vld [vmem:[%s11344_s4 + $0x224] ss:$16 sps:$4 sm:$0xff]  }
  0xd3   :  { %1719 = vmatprep.subr.bf16.mxu1 %v7757_v27 }
  0xd5   :  { %1745 = vmatpush1.bf16.msra.mxu0 %v7758_v7 }
  0xd6   :  { %1720 = vmatpush2.bf16.msra.mxu1 %v7755_v28  ;;  %1746 = vmatprep.subr.bf16.mxu0 %v7766_v30  ;;  %v7821_v28 = vld [vmem:[%s11344_s4 + $0x1a0] ss:$16 sps:$4 sm:$0xff]   ;;  %v7826_v30 = vld [vmem:[%s11344_s4 + $0x184] ss:$16 sps:$4 sm:$0xff]  }
  0xd7   :  { %1721 = vmatprep.subr.bf16.mxu1 %v7763_v29 }
  0xd9   :  { %1747 = vmatpush1.bf16.msra.mxu0 %v7764_v32  ;;  %v7907_v32 = vld [vmem:[%s11344_s4 + $0x204] ss:$16 sps:$4 sm:$0xff]  }
  0xda   :  { %1722 = vmatpush2.bf16.msra.mxu1 %v7761_v31  ;;  %1748 = vmatprep.subr.bf16.mxu0 %v7772_v34  ;;  %v7905_v31 = vld [vmem:[%s11344_s4 + $0x200] ss:$16 sps:$4 sm:$0xff]  }
  0xdb   :  { %1723 = vmatprep.subr.bf16.mxu1 %v7769_v33  ;;  %v7824_v33 = vld [vmem:[%s11344_s4 + $0x180] ss:$16 sps:$4 sm:$0xff]  }
  0xdc   :  { %v7911_v34 = vld [vmem:[%s11344_s4 + $0x3e0] ss:$16 sps:$4 sm:$0xff]  }
  0xdd   :  { %1749 = vmatpush1.bf16.msra.mxu0 %v7770_v37  ;;  %v7829_v37 = vld [vmem:[%s11344_s4 + $0x164] ss:$16 sps:$4 sm:$0xff]  }
  0xde   :  { %1724 = vmatpush2.bf16.msra.mxu1 %v7767_v36  ;;  %1750 = vmatprep.subr.bf16.mxu0 %v7778_v39  ;;  %v7913_v36 = vld [vmem:[%s11344_s4 + $0x3e4] ss:$16 sps:$4 sm:$0xff]   ;;  %v7827_v39 = vld [vmem:[%s11344_s4 + $0x160] ss:$16 sps:$4 sm:$0xff]  }
  0xdf   :  { %1725 = vmatprep.subr.bf16.mxu1 %v7775_v38  ;;  %v7916_v38 = vld [vmem:[%s11344_s4 + $0x3c4] ss:$16 sps:$4 sm:$0xff]  }
  0xe1   :  { %1751 = vmatpush1.bf16.msra.mxu0 %v7776_v41  ;;  %v7832_v41 = vld [vmem:[%s11344_s4 + $0x144] ss:$16 sps:$4 sm:$0xff]  }
  0xe2   :  { %1726 = vmatpush2.bf16.msra.mxu1 %v7773_v40  ;;  %1752 = vmatprep.subr.bf16.mxu0 %v7784_v43  ;;  %v7914_v40 = vld [vmem:[%s11344_s4 + $0x3c0] ss:$16 sps:$4 sm:$0xff]  }
  0xe3   :  { %1727 = vmatprep.subr.bf16.mxu1 %v7781_v42  ;;  %v7919_v42 = vld [vmem:[%s11344_s4 + $0x3a4] ss:$16 sps:$4 sm:$0xff]   ;;  %v7830_v43 = vld [vmem:[%s11344_s4 + $0x140] ss:$16 sps:$4 sm:$0xff]  }
  0xe5   :  { %1753 = vmatpush1.bf16.msra.mxu0 %v7782_v46  ;;  %v7835_v46 = vld [vmem:[%s11344_s4 + $0x124] ss:$16 sps:$4 sm:$0xff]  }
  0xe6   :  { %1728 = vmatpush2.bf16.msra.mxu1 %v7779_v45  ;;  %1754 = vmatprep.subr.bf16.mxu0 %v7790_v49  ;;  %v7917_v45 = vld [vmem:[%s11344_s4 + $0x3a0] ss:$16 sps:$4 sm:$0xff]  }
  0xe7   :  { %1729 = vmatprep.subr.bf16.mxu1 %v7787_v48  ;;  %v7922_v48 = vld [vmem:[%s11344_s4 + $0x384] ss:$16 sps:$4 sm:$0xff]   ;;  %v7833_v49 = vld [vmem:[%s11344_s4 + $0x120] ss:$16 sps:$4 sm:$0xff]  }
  0xe9   :  { %1755 = vmatpush1.bf16.msra.mxu0 %v7788_v52  ;;  %v7838_v52 = vld [vmem:[%s11344_s4 + $0x104] ss:$16 sps:$4 sm:$0xff]  }
  0xea   :  { %1730 = vmatpush2.bf16.msra.mxu1 %v7785_v50  ;;  %2579 = vmatprep.subr.bf16.mxu0 %v7793_v53  ;;  %v7920_v50 = vld [vmem:[%s11344_s4 + $0x380] ss:$16 sps:$4 sm:$0xff]   ;;  %v7925_v53 = vld [vmem:[%s11344_s4 + $0x364] ss:$16 sps:$4 sm:$0xff]  }
  0xeb   :  { %2620 = vmatprep.subr.bf16.mxu1 %v7865_v59  ;;  %v7929_v59 = vld [vmem:[%s11344_s4 + $0x320] ss:$16 sps:$4 sm:$0xff]  }
  0xec   :  { %1773 = vmatmul.mubr.bf16.vlgmr.msra.gmra.mxu0 %v9039_v44  ;;  %v7802_v44 = vld [vmem:[%s11344_s4 + $0x84] ss:$16 sps:$4 sm:$0xff]  }
  0xed   :  { %1732 = vmatmul.mubr.bf16.vlgmr.msra.gmra.mxu1 %v9138_v15  ;;  %2580 = vmatpush1.bf16.msra.mxu0 %v7791_v54  ;;  %v7800_v15 = vld [vmem:[%s11344_s4 + $0x80] ss:$16 sps:$4 sm:$0xff]  }
  0xee   :  { %2581 = vmatprep.subr.bf16.mxu0 %v7796_v55  ;;  %2621 = vmatpush1.bf16.msra.mxu1 %v7863_v58  ;;  %v7836_v54 = vld [vmem:[%s11344_s4 + $0x100] ss:$16 sps:$4 sm:$0xff]   ;;  %v7931_v58 = vld [vmem:[%s11344_s4 + $0x324] ss:$16 sps:$4 sm:$0xff]  }
  0xef   :  { %2622 = vmatprep.subr.bf16.mxu1 %v7871_v35  ;;  %v7923_v55 = vld [vmem:[%s11344_s4 + $0x360] ss:$16 sps:$4 sm:$0xff]  }
  0xf0   :  { %v7932_v35 = vld [vmem:[%s11344_s4 + $0x300] ss:$16 sps:$4 sm:$0xff]  }
  0xf1   :  { %2582 = vmatpush1.bf16.msra.mxu0 %v7794_v56  ;;  %v7841_v56 = vld [vmem:[%s11344_s4 + $0xec] ss:$16 sps:$4 sm:$0xff]  }
  0xf2   :  { %2583 = vmatprep.subr.bf16.mxu0 %v7799_v47  ;;  %2623 = vmatpush1.bf16.msra.mxu1 %v7869_v61  ;;  %v7928_v47 = vld [vmem:[%s11344_s4 + $0x344] ss:$16 sps:$4 sm:$0xff]  }
  0xf3   :  { %2624 = vmatprep.subr.bf16.mxu1 %v7877_v1  ;;  %v7934_v61 = vld [vmem:[%s11344_s4 + $0x304] ss:$16 sps:$4 sm:$0xff]  }
  0xf5   :  { %2584 = vmatpush1.bf16.msra.mxu0 %v7797_v57  ;;  %v7926_v57 = vld [vmem:[%s11344_s4 + $0x340] ss:$16 sps:$4 sm:$0xff]  }
  0xf6   :  { %2585 = vmatprep.subr.bf16.mxu0 %v7802_v44  ;;  %2625 = vmatpush1.bf16.msra.mxu1 %v7875_v0 }
  0xf7   :  { %2626 = vmatprep.subr.bf16.mxu1 %v7883_v5 }
  0xf9   :  { %2586 = vmatpush1.bf16.msra.mxu0 %v7800_v15 }
  0xfa   :  { %2587 = vmatprep.subr.bf16.mxu0 %v7805_v6  ;;  %2627 = vmatpush1.bf16.msra.mxu1 %v7881_v4 }
  0xfb   :  { %2628 = vmatprep.subr.bf16.mxu1 %v7889_v11 }
  0xfd   :  { %2588 = vmatpush1.bf16.msra.mxu0 %v7803_v60 }
  0xfe   :  { %2589 = vmatprep.subr.bf16.mxu0 %v7808_v62  ;;  %2629 = vmatpush1.bf16.msra.mxu1 %v7887_v10  ;;  %v7937_v62 = vld [vmem:[%s11344_s4 + $0x2ec] ss:$16 sps:$4 sm:$0xff]  }
  0xff   :  { %2630 = vmatprep.subr.bf16.mxu1 %v7895_v17 }
 0x101   :  { %2590 = vmatpush1.bf16.msra.mxu0 %v7806_v63  ;;  %v288_v63 = vlaneseq }
 0x102   :  { %2591 = vmatprep.subr.bf16.mxu0 %v7811_v2  ;;  %2631 = vmatpush1.bf16.msra.mxu1 %v7893_v14  ;;  %v9644_v2 = vld [vmem:[%s11345_s26] sm:$0xf] }
 0x103   :  { %2632 = vmatprep.subr.bf16.mxu1 %v7901_v25  ;;  %v9636_v0 = vshrl.u32 %v288_v63, 7 }
 0x105   :  { %2592 = vmatpush1.bf16.msra.mxu0 %v7809_v3  ;;  %v9639_v1 = vsub.s32 0, %v9636_v0  ;;  %v9647_v3 = vsub.s32 1, %v9636_v0  ;;  %v9758_v63 = vsub.s32 3, %v9636_v0 }
 0x106   :  { %2593 = vmatprep.subr.bf16.mxu0 %v7814_v8  ;;  %2633 = vmatpush1.bf16.msra.mxu1 %v7899_v26 }
 0x107   :  { %2634 = vmatprep.subr.bf16.mxu1 %v7907_v32  ;;  %v291_v4 = vrot.slane %v9644_v2, %v9639_v1  ;;  %v295_v5 = vrot.slane %v9644_v2, %v9647_v3  ;;  %v7851_v32 = vld [vmem:[%s11344_s4 + $0x68] ss:$16 sps:$4 sm:$0xff]  }
 0x109   :  { %2594 = vmatpush1.bf16.msra.mxu0 %v7812_v9 }
 0x10a   :  { %2595 = vmatprep.subr.bf16.mxu0 %v7817_v12  ;;  %2635 = vmatpush1.bf16.msra.mxu1 %v7905_v31  ;;  %v7853_v31 = vld [vmem:[%s11344_s4 + $0x6c] ss:$16 sps:$4 sm:$0xff]  }
 0x10b   :  { %2636 = vmatprep.subr.bf16.mxu1 %v7913_v36  ;;  %v7859_v36 = vld [vmem:[%s11344_s4 + $0x2c] ss:$16 sps:$4 sm:$0xff]  }
 0x10c   :  { %v9523_v19 = vpop.f32.mrf.mxu0 }
 0x10d   :  { %v9525_v20 = vpop.f32.mrf.mxu1  ;;  %2596 = vmatpush2.bf16.msra.mxu0 %v7815_v13  ;;  %v1488_v8 = vadd.f32 %v9523_v19, %v291_v4  ;;  %v7839_v19 = vld [vmem:[%s11344_s4 + $0xe8] ss:$16 sps:$4 sm:$0xff]  }
 0x10e   :  { %v9530_v22 = vpop.f32.mrf.mxu0  ;;  %2597 = vmatprep.subr.bf16.mxu0 %v7820_v18  ;;  %2637 = vmatpush2.bf16.msra.mxu1 %v7911_v34  ;;  %v7854_v34 = vld [vmem:[%s11344_s4 + $0x48] ss:$16 sps:$4 sm:$0xff]  }
 0x10f   :  { %v9532_v23 = vpop.f32.mrf.mxu1  ;;  %2638 = vmatprep.subr.bf16.mxu1 %v7916_v38  ;;  %v1490_v9 = vadd.f32 %v9530_v22, %v295_v5  ;;  %v1529_v10 = vadd.f32 %v9525_v20, %v1488_v8  ;;  %v7844_v20 = vld [vmem:[%s11344_s4 + $0xcc] ss:$16 sps:$4 sm:$0xff]   ;;  %v7857_v38 = vld [vmem:[%s11344_s4 + $0x28] ss:$16 sps:$4 sm:$0xff]   ;;  %v303_v5 = vrot.slane %v9644_v2, %v9758_v63 }
 0x110   :  { %v1491_v27 = vpop.f32.mrf.mxu0 }
 0x111   :  { %v1532_v51 = vpop.f32.mrf.mxu1  ;;  %2598 = vmatpush2.bf16.msra.mxu0 %v7818_v21  ;;  %v1531_v12 = vadd.f32 %v9532_v23, %v1490_v9  ;;  %v7842_v23 = vld [vmem:[%s11344_s4 + $0xc8] ss:$16 sps:$4 sm:$0xff]  }
 0x112   :  { %v1492_v7 = vpop.f32.mrf.mxu0  ;;  %2599 = vmatprep.subr.bf16.mxu0 %v7823_v24  ;;  %2639 = vmatpush2.bf16.msra.mxu1 %v7914_v40  ;;  %v7862_v40 = vld [vmem:[%s11344_s4 + $0xc] ss:$16 sps:$4 sm:$0xff]  }
 0x113   :  { %v1533_v29 = vpop.f32.mrf.mxu1  ;;  %2640 = vmatprep.subr.bf16.mxu1 %v7919_v42  ;;  %v7845_v7 = vld [vmem:[%s11344_s4 + $0xa8] ss:$16 sps:$4 sm:$0xff]  }
 0x114   :  { %v7850_v29 = vld [vmem:[%s11344_s4 + $0x8c] ss:$16 sps:$4 sm:$0xff]   ;;  %v7860_v42 = vld [vmem:[%s11344_s4 + $0x8] ss:$16 sps:$4 sm:$0xff]  }
 0x115   :  { %2600 = vmatpush2.bf16.msra.mxu0 %v7821_v28  ;;  %v7847_v28 = vld [vmem:[%s11344_s4 + $0xac] ss:$16 sps:$4 sm:$0xff]  }
 0x116   :  { %2601 = vmatprep.subr.bf16.mxu0 %v7826_v30  ;;  %2641 = vmatpush2.bf16.msra.mxu1 %v7917_v45  ;;  %v7848_v30 = vld [vmem:[%s11344_s4 + $0x88] ss:$16 sps:$4 sm:$0xff]   ;;  %v7868_v45 = vld [vmem:[%s11344_s4 + $0x1ec] ss:$16 sps:$4 sm:$0xff]  }
 0x117   :  { %2642 = vmatprep.subr.bf16.mxu1 %v7922_v48  ;;  %v7874_v48 = vld [vmem:[%s11344_s4 + $0x1cc] ss:$16 sps:$4 sm:$0xff]  }
 0x119   :  { %2602 = vmatpush2.bf16.msra.mxu0 %v7824_v33  ;;  %v7856_v33 = vld [vmem:[%s11344_s4 + $0x4c] ss:$16 sps:$4 sm:$0xff]  }
 0x11a   :  { %2603 = vmatprep.subr.bf16.mxu0 %v7829_v37  ;;  %2643 = vmatpush2.bf16.msra.mxu1 %v7920_v50  ;;  %v7880_v50 = vld [vmem:[%s11344_s4 + $0x1ac] ss:$16 sps:$4 sm:$0xff]  }
 0x11b   :  { %2644 = vmatprep.subr.bf16.mxu1 %v7925_v53  ;;  %v7886_v53 = vld [vmem:[%s11344_s4 + $0x18c] ss:$16 sps:$4 sm:$0xff]  }
 0x11d   :  { %2604 = vmatpush2.bf16.msra.mxu0 %v7827_v39 }
 0x11e   :  { %2605 = vmatprep.subr.bf16.mxu0 %v7832_v41  ;;  %2645 = vmatpush2.bf16.msra.mxu1 %v7923_v55  ;;  %v7892_v55 = vld [vmem:[%s11344_s4 + $0x16c] ss:$16 sps:$4 sm:$0xff]  }
 0x11f   :  { %2646 = vmatprep.subr.bf16.mxu1 %v7928_v47  ;;  %v7898_v47 = vld [vmem:[%s11344_s4 + $0x14c] ss:$16 sps:$4 sm:$0xff]  }
 0x121   :  { %2606 = vmatpush2.bf16.msra.mxu0 %v7830_v43 }
 0x122   :  { %2607 = vmatprep.subr.bf16.mxu0 %v7835_v46  ;;  %2647 = vmatpush2.bf16.msra.mxu1 %v7926_v57  ;;  %v7866_v46 = vld [vmem:[%s11344_s4 + $0x1e8] ss:$16 sps:$4 sm:$0xff]  }
 0x123   :  { %2648 = vmatprep.subr.bf16.mxu1 %v7931_v58  ;;  %v7896_v57 = vld [vmem:[%s11344_s4 + $0x148] ss:$16 sps:$4 sm:$0xff]  }
 0x124   :  { %v7902_v58 = vld [vmem:[%s11344_s4 + $0x128] ss:$16 sps:$4 sm:$0xff]  }
 0x125   :  { %2608 = vmatpush2.bf16.msra.mxu0 %v7833_v49  ;;  %v7872_v49 = vld [vmem:[%s11344_s4 + $0x1c8] ss:$16 sps:$4 sm:$0xff]  }
 0x126   :  { %2609 = vmatprep.subr.bf16.mxu0 %v7838_v52  ;;  %2649 = vmatpush2.bf16.msra.mxu1 %v7929_v59  ;;  %v7878_v52 = vld [vmem:[%s11344_s4 + $0x1a8] ss:$16 sps:$4 sm:$0xff]  }
 0x127   :  { %2650 = vmatprep.subr.bf16.mxu1 %v7934_v61  ;;  %v7908_v61 = vld [vmem:[%s11344_s4 + $0x108] ss:$16 sps:$4 sm:$0xff]  }
 0x129   :  { %2610 = vmatpush2.bf16.msra.mxu0 %v7836_v54  ;;  %v7884_v54 = vld [vmem:[%s11344_s4 + $0x188] ss:$16 sps:$4 sm:$0xff]  }
 0x12a   :  { %2661 = vmatprep.subr.bf16.mxu0 %v7841_v56  ;;  %2651 = vmatpush2.bf16.msra.mxu1 %v7932_v35  ;;  %v7890_v56 = vld [vmem:[%s11344_s4 + $0x168] ss:$16 sps:$4 sm:$0xff]  }
 0x12b   :  { %2702 = vmatprep.subr.bf16.mxu1 %v7937_v62  ;;  %v9755_v62 = vsub.s32 2, %v9636_v0 }
 0x12d   :  { %v1610_v44 = vpop.f32.mrf.mxu1  ;;  %v299_v4 = vrot.slane %v9644_v2, %v9755_v62  ;;  %v7935_v2 = vld [vmem:[%s11344_s4 + $0x2e8] ss:$16 sps:$4 sm:$0xff]  }
 0x12f   :  { %v1612_v15 = vpop.f32.mrf.mxu1 }
 0x131   :  { %v1614_v6 = vpop.f32.mrf.mxu1 }
 0x132   :  { %v7910_v6 = vld [vmem:[%s11344_s4 + $0x10c] ss:$16 sps:$4 sm:$0xff]  }
 0x133   :  { %v1615_v60 = vpop.f32.mrf.mxu1 }
 0x14c   :  { %v1569_v11 = vpop.f32.mrf.mxu0 }
 0x14d   :  { %v1570_v13 = vadd.f32 %v1569_v11, %v1529_v10 }
 0x14e   :  { %v1571_v14 = vpop.f32.mrf.mxu0 }
 0x14f   :  { %v1611_v17 = vadd.f32 %v1610_v44, %v1570_v13  ;;  %v1572_v18 = vadd.f32 %v1571_v14, %v1531_v12  ;;  %v7904_v44 = vld [vmem:[%s11344_s4 + $0x12c] ss:$16 sps:$4 sm:$0xff]  }
 0x150   :  { %v1573_v21 = vpop.f32.mrf.mxu0 }
 0x151   :  { %v1613_v24 = vadd.f32 %v1612_v15, %v1572_v18  ;;  %v1781_v25 = vmax.f32 %v1611_v17, 0.0 }
 0x152   :  { %v1574_v26 = vpop.f32.mrf.mxu0 }
 0x153   :  { %v1782_v27 = vmax.f32 %v1613_v24, 0.0  ;;  %v9660_v22 = vpack.c.bf16 %v1781_v25, %v1781_v25 }
 0x155   :  { %v1786_v51 = vpack.c.bf16 %v1782_v27, %v1782_v27 }
 0x157   :  { %2611 = vmatprep.mubr.bf16.mxu0 %v1786_v51 }
 0x158   :  { %2612 = vmatmul.mubr.bf16.vlgmr.msra.gmra.mxu0 %v9660_v22 }
 0x159   :  { %2662 = vmatpush1.bf16.msra.mxu0 %v7839_v19  ;;  %2693 = vmatprep.mubr.bf16.mxu0 %v1786_v51 }
 0x15a   :  { %2663 = vmatprep.subr.bf16.mxu0 %v7844_v20 }
 0x15d   :  { %2664 = vmatpush1.bf16.msra.mxu0 %v7842_v23 }
 0x15e   :  { %2665 = vmatprep.subr.bf16.mxu0 %v7847_v28 }
 0x161   :  { %2666 = vmatpush1.bf16.msra.mxu0 %v7845_v7  ;;  %v7940_v7 = vld [vmem:[%s11344_s4 + $0x2cc] ss:$16 sps:$4 sm:$0xff]  }
 0x162   :  { %2667 = vmatprep.subr.bf16.mxu0 %v7850_v29  ;;  %v7938_v29 = vld [vmem:[%s11344_s4 + $0x2c8] ss:$16 sps:$4 sm:$0xff]  }
 0x165   :  { %2668 = vmatpush1.bf16.msra.mxu0 %v7848_v30  ;;  %v7943_v30 = vld [vmem:[%s11344_s4 + $0x2ac] ss:$16 sps:$4 sm:$0xff]  }
 0x166   :  { %2669 = vmatprep.subr.bf16.mxu0 %v7853_v31  ;;  %v7941_v31 = vld [vmem:[%s11344_s4 + $0x2a8] ss:$16 sps:$4 sm:$0xff]  }
 0x169   :  { %2670 = vmatpush1.bf16.msra.mxu0 %v7851_v32  ;;  %v7946_v32 = vld [vmem:[%s11344_s4 + $0x28c] ss:$16 sps:$4 sm:$0xff]  }
 0x16a   :  { %2671 = vmatprep.subr.bf16.mxu0 %v7856_v33  ;;  %v7944_v33 = vld [vmem:[%s11344_s4 + $0x288] ss:$16 sps:$4 sm:$0xff]  }
 0x16d   :  { %v1651_v37 = vpop.f32.mrf.mxu1  ;;  %2672 = vmatpush1.bf16.msra.mxu0 %v7854_v34  ;;  %v7949_v34 = vld [vmem:[%s11344_s4 + $0x26c] ss:$16 sps:$4 sm:$0xff]  }
 0x16e   :  { %2673 = vmatprep.subr.bf16.mxu0 %v7859_v36  ;;  %v1652_v8 = vadd.f32 %v1651_v37, %v299_v4  ;;  %v7947_v36 = vld [vmem:[%s11344_s4 + $0x268] ss:$16 sps:$4 sm:$0xff]   ;;  %v7952_v37 = vld [vmem:[%s11344_s4 + $0x24c] ss:$16 sps:$4 sm:$0xff]  }
 0x16f   :  { %v1653_v39 = vpop.f32.mrf.mxu1  ;;  %v7991_v4 = vld [vmem:[%s11319_s6 + $0x58] sm:$0xff]  }
 0x170   :  { %v1654_v9 = vadd.f32 %v1653_v39, %v303_v5  ;;  %v7955_v39 = vld [vmem:[%s11344_s4 + $0x22c] ss:$16 sps:$4 sm:$0xff]   ;;  %v7977_v5 = vld [vmem:[%s11344_s4 + $0x328] ss:$16 sps:$4 sm:$0xff]  }
 0x171   :  { %v1655_v41 = vpop.f32.mrf.mxu1  ;;  %2674 = vmatpush1.bf16.msra.mxu0 %v7857_v38  ;;  %v7950_v38 = vld [vmem:[%s11344_s4 + $0x248] ss:$16 sps:$4 sm:$0xff]  }
 0x172   :  { %2675 = vmatprep.subr.bf16.mxu0 %v7862_v40  ;;  %v7953_v40 = vld [vmem:[%s11344_s4 + $0x228] ss:$16 sps:$4 sm:$0xff]   ;;  %v7958_v41 = vld [vmem:[%s11344_s4 + $0x20c] ss:$16 sps:$4 sm:$0xff]  }
 0x173   :  { %v1656_v43 = vpop.f32.mrf.mxu1 }
 0x174   :  { %v7961_v43 = vld [vmem:[%s11344_s4 + $0x3ec] ss:$16 sps:$4 sm:$0xff]  }
 0x175   :  { %2676 = vmatpush1.bf16.msra.mxu0 %v7860_v42  ;;  %v7956_v42 = vld [vmem:[%s11344_s4 + $0x208] ss:$16 sps:$4 sm:$0xff]  }
 0x176   :  { %2677 = vmatprep.subr.bf16.mxu0 %v7868_v45  ;;  %v7959_v45 = vld [vmem:[%s11344_s4 + $0x3e8] ss:$16 sps:$4 sm:$0xff]  }
 0x179   :  { %2678 = vmatpush2.bf16.msra.mxu0 %v7866_v46  ;;  %v7964_v46 = vld [vmem:[%s11344_s4 + $0x3cc] ss:$16 sps:$4 sm:$0xff]  }
 0x17a   :  { %2679 = vmatprep.subr.bf16.mxu0 %v7874_v48  ;;  %v7962_v48 = vld [vmem:[%s11344_s4 + $0x3c8] ss:$16 sps:$4 sm:$0xff]  }
 0x17d   :  { %2680 = vmatpush2.bf16.msra.mxu0 %v7872_v49  ;;  %v7967_v49 = vld [vmem:[%s11344_s4 + $0x3ac] ss:$16 sps:$4 sm:$0xff]  }
 0x17e   :  { %2681 = vmatprep.subr.bf16.mxu0 %v7880_v50  ;;  %v7965_v50 = vld [vmem:[%s11344_s4 + $0x3a8] ss:$16 sps:$4 sm:$0xff]  }
 0x181   :  { %2682 = vmatpush2.bf16.msra.mxu0 %v7878_v52  ;;  %v7970_v52 = vld [vmem:[%s11344_s4 + $0x38c] ss:$16 sps:$4 sm:$0xff]  }
 0x182   :  { %2683 = vmatprep.subr.bf16.mxu0 %v7886_v53  ;;  %v7968_v53 = vld [vmem:[%s11344_s4 + $0x388] ss:$16 sps:$4 sm:$0xff]  }
 0x185   :  { %2684 = vmatpush2.bf16.msra.mxu0 %v7884_v54  ;;  %v7983_v54 = vld [vmem:[%s11319_s6 + $0x78] sm:$0xff]  }
 0x186   :  { %2685 = vmatprep.subr.bf16.mxu0 %v7892_v55  ;;  %v7973_v55 = vld [vmem:[%s11344_s4 + $0x36c] ss:$16 sps:$4 sm:$0xff]  }
 0x189   :  { %2686 = vmatpush2.bf16.msra.mxu0 %v7890_v56  ;;  %v7984_v56 = vld [vmem:[%s11319_s6 + $0x38] sm:$0xff]  }
 0x18a   :  { %2687 = vmatprep.subr.bf16.mxu0 %v7898_v47  ;;  %v7985_v47 = vld [vmem:[%s11319_s6 + $0x70] sm:$0xff]  }
 0x18c   :  { %v1692_v15 = vpop.f32.mrf.mxu0 }
 0x18d   :  { %2688 = vmatpush2.bf16.msra.mxu0 %v7896_v57  ;;  %v1693_v10 = vadd.f32 %v1692_v15, %v1652_v8  ;;  %v7986_v57 = vld [vmem:[%s11319_s6 + $0x30] sm:$0xff]   ;;  %v7971_v15 = vld [vmem:[%s11344_s4 + $0x368] ss:$16 sps:$4 sm:$0xff]   ;;  %v7982_v8 = vld [vmem:[%s11344_s4 + $0x30c] ss:$16 sps:$4 sm:$0xff]  }
 0x18e   :  { %v1694_v59 = vpop.f32.mrf.mxu0  ;;  %2689 = vmatprep.subr.bf16.mxu0 %v7904_v44  ;;  %v7987_v44 = vld [vmem:[%s11319_s6 + $0x68] sm:$0xff]  }
 0x18f   :  { %v1695_v13 = vadd.f32 %v1694_v59, %v1654_v9  ;;  %v7988_v59 = vld [vmem:[%s11319_s6 + $0x28] sm:$0xff]   ;;  %v7992_v9 = vld [vmem:[%s11319_s6 + $0x18] sm:$0xff]  }
 0x190   :  { %v1696_v60 = vpop.f32.mrf.mxu0 }
 0x191   :  { %2690 = vmatpush2.bf16.msra.mxu0 %v7902_v58  ;;  %v7976_v58 = vld [vmem:[%s11344_s4 + $0x34c] ss:$16 sps:$4 sm:$0xff]   ;;  %v7989_v60 = vld [vmem:[%s11319_s6 + $0x60] sm:$0xff]  }
 0x192   :  { %v1697_v35 = vpop.f32.mrf.mxu0  ;;  %2691 = vmatprep.subr.bf16.mxu0 %v7910_v6  ;;  %v7974_v6 = vld [vmem:[%s11344_s4 + $0x348] ss:$16 sps:$4 sm:$0xff]  }
 0x193   :  { %v7990_v35 = vld [vmem:[%s11319_s6 + $0x20] sm:$0xff]  }
 0x195   :  { %2692 = vmatpush2.bf16.msra.mxu0 %v7908_v61  ;;  %v7979_v61 = vld [vmem:[%s11344_s4 + $0x32c] ss:$16 sps:$4 sm:$0xff]  }
 0x196   :  { %7315 = vmatprep.subr.bf16.mxu0 %v7983_v54 }
 0x198   :  { %2694 = vmatmul.mubr.bf16.vlgmr.msra.gmra.mxu0 %v9660_v22 }
 0x199   :  { %7316 = vmatpush3.bf16.msra.mxu0 %v7984_v56 }
 0x19a   :  { %7317 = vmatprep.subr.bf16.mxu0 %v7985_v47 }
 0x19d   :  { %7318 = vmatpush3.bf16.msra.mxu0 %v7986_v57 }
 0x19e   :  { %7319 = vmatprep.subr.bf16.mxu0 %v7987_v44 }
 0x1a1   :  { %7320 = vmatpush3.bf16.msra.mxu0 %v7988_v59  ;;  %v8001_v59 = vld [vmem:[%s11320_s8 + $0x70] sm:$0xff]  }
 0x1a2   :  { %7321 = vmatprep.subr.bf16.mxu0 %v7989_v60  ;;  %v8003_v60 = vld [vmem:[%s11320_s8 + $0x68] sm:$0xff]  }
 0x1a5   :  { %7322 = vmatpush3.bf16.msra.mxu0 %v7990_v35  ;;  %v8005_v35 = vld [vmem:[%s11320_s8 + $0x60] sm:$0xff]  }
 0x1a6   :  { %7323 = vmatprep.subr.bf16.mxu0 %v7991_v4  ;;  %v8006_v4 = vld [vmem:[%s11320_s8 + $0x20] sm:$0xff]  }
 0x1a9   :  { %7324 = vmatpush3.bf16.msra.mxu0 %v7992_v9  ;;  %v8009_v9 = vld [vmem:[%s11320_s8 + $0x50] sm:$0xff]  }
 0x1ac   :  { %v1774_v12 = vpop.f32.mrf.mxu0 }
 0x1ad   :  { %v1733_v11 = vpop.f32.mrf.mxu1 }
 0x1ae   :  { %v1734_v14 = vadd.f32 %v1733_v11, %v1693_v10  ;;  %v1776_v18 = vpop.f32.mrf.mxu0  ;;  %v7993_v10 = vld [vmem:[%s11319_s6 + $0x50] sm:$0xff]   ;;  %v7980_v11 = vld [vmem:[%s11344_s4 + $0x308] ss:$16 sps:$4 sm:$0xff]  }
 0x1af   :  { %v1735_v17 = vpop.f32.mrf.mxu1  ;;  %7325 = vmatprep.subr.bf16.mxu0 %v7993_v10  ;;  %v8010_v10 = vld [vmem:[%s11320_s8 + $0x10] sm:$0xff]  }
 0x1b0   :  { %v1775_v21 = vadd.f32 %v1774_v12, %v1734_v14  ;;  %v1736_v24 = vadd.f32 %v1735_v17, %v1695_v13  ;;  %v1778_v26 = vpop.f32.mrf.mxu0  ;;  %v7994_v12 = vld [vmem:[%s11319_s6 + $0x10] sm:$0xff]   ;;  %v7995_v13 = vld [vmem:[%s11319_s6 + $0x48] sm:$0xff]   ;;  %v7997_v17 = vld [vmem:[%s11319_s6 + $0x40] sm:$0xff]  }
 0x1b1   :  { %v1737_v25 = vpop.f32.mrf.mxu1  ;;  %7326 = vmatpush3.bf16.msra.mxu0 %v7994_v12  ;;  %v7996_v14 = vld [vmem:[%s11319_s6 + $0x8] sm:$0xff]  }
 0x1b2   :  { %v1777_v27 = vadd.f32 %v1776_v18, %v1736_v24  ;;  %v1783_v51 = vmax.f32 %v1775_v21, 0.0  ;;  %v1779_v22 = vpop.f32.mrf.mxu0  ;;  %7327 = vmatprep.subr.bf16.mxu0 %v7995_v13  ;;  %v7998_v18 = vld [vmem:[%s11319_s6] sm:$0xff]   ;;  %v7999_v21 = vld [vmem:[%s11320_s8 + $0x78] sm:$0xff]   ;;  %v8012_v12 = vld [vmem:[%s11320_s8 + $0x8] sm:$0xff]  }
 0x1b3   :  { %v1738_v19 = vpop.f32.mrf.mxu1  ;;  %v8017_v22 = vld [vmem:[%s11319_s6 + $0xf0] sm:$0xff]   ;;  %v8013_v13 = vld [vmem:[%s11320_s8 + $0x40] sm:$0xff]  }
 0x1b4   :  { %v1784_v20 = vmax.f32 %v1777_v27, 0.0  ;;  %v9767_v28 = vpack.c.bf16 %v1783_v51, %v1783_v51  ;;  %v8015_v51 = vld [vmem:[%s11319_s6 + $0xf8] sm:$0xff]  }
 0x1b5   :  { %7328 = vmatpush3.bf16.msra.mxu0 %v7996_v14  ;;  %v8016_v19 = vld [vmem:[%s11319_s6 + $0xb8] sm:$0xff]   ;;  %v8014_v14 = vld [vmem:[%s11320_s8] sm:$0xff]  }
 0x1b6   :  { %v1788_v23 = vpack.c.bf16 %v1784_v20, %v1784_v20  ;;  %7329 = vmatprep.subr.bf16.mxu0 %v7997_v17  ;;  %v8018_v20 = vld [vmem:[%s11319_s6 + $0xb0] sm:$0xff]  }
 0x1b8   :  { %2652 = vmatprep.mubr.bf16.mxu1 %v1788_v23 }
 0x1b9   :  { %2653 = vmatmul.mubr.bf16.vlgmr.msra.gmra.mxu1 %v9767_v28  ;;  %7330 = vmatpush3.bf16.msra.mxu0 %v7998_v18 }
 0x1ba   :  { %2703 = vmatpush1.bf16.msra.mxu1 %v7935_v2  ;;  %2734 = vmatprep.mubr.bf16.mxu1 %v1788_v23  ;;  %v8019_v23 = vld [vmem:[%s11319_s6 + $0xe8] sm:$0xff]  }
 0x1bb   :  { %2704 = vmatprep.subr.bf16.mxu1 %v7940_v7  ;;  %7359 = vmatprep.subr.bf16.mxu0 %v7999_v21  ;;  %v8020_v2 = vld [vmem:[%s11319_s6 + $0xa8] sm:$0xff]   ;;  %v8022_v7 = vld [vmem:[%s11319_s6 + $0xa0] sm:$0xff]  }
 0x1be   :  { %2705 = vmatpush1.bf16.msra.mxu1 %v7938_v29  ;;  %v8023_v29 = vld [vmem:[%s11319_s6 + $0xd8] sm:$0xff]  }
 0x1bf   :  { %2706 = vmatprep.subr.bf16.mxu1 %v7943_v30  ;;  %v8024_v30 = vld [vmem:[%s11319_s6 + $0x98] sm:$0xff]  }
 0x1c2   :  { %2707 = vmatpush1.bf16.msra.mxu1 %v7941_v31  ;;  %v8025_v31 = vld [vmem:[%s11319_s6 + $0xd0] sm:$0xff]  }
 0x1c3   :  { %2708 = vmatprep.subr.bf16.mxu1 %v7946_v32  ;;  %v8026_v32 = vld [vmem:[%s11319_s6 + $0x90] sm:$0xff]  }
 0x1c6   :  { %2709 = vmatpush1.bf16.msra.mxu1 %v7944_v33  ;;  %v8027_v33 = vld [vmem:[%s11319_s6 + $0xc8] sm:$0xff]  }
 0x1c7   :  { %2710 = vmatprep.subr.bf16.mxu1 %v7949_v34  ;;  %v8028_v34 = vld [vmem:[%s11319_s6 + $0x88] sm:$0xff]  }
 0x1ca   :  { %2711 = vmatpush1.bf16.msra.mxu1 %v7947_v36  ;;  %v8029_v36 = vld [vmem:[%s11319_s6 + $0xc0] sm:$0xff]  }
 0x1cb   :  { %2712 = vmatprep.subr.bf16.mxu1 %v7952_v37  ;;  %v8030_v37 = vld [vmem:[%s11319_s6 + $0x80] sm:$0xff]  }
 0x1ce   :  { %2713 = vmatpush1.bf16.msra.mxu1 %v7950_v38  ;;  %v8031_v38 = vld [vmem:[%s11320_s8 + $0xf8] sm:$0xff]  }
 0x1cf   :  { %2714 = vmatprep.subr.bf16.mxu1 %v7955_v39 }
 0x1d2   :  { %2715 = vmatpush1.bf16.msra.mxu1 %v7953_v40 }
 0x1d3   :  { %2716 = vmatprep.subr.bf16.mxu1 %v7958_v41 }
 0x1d6   :  { %2717 = vmatpush1.bf16.msra.mxu1 %v7956_v42 }
 0x1d7   :  { %2718 = vmatprep.subr.bf16.mxu1 %v7961_v43  ;;  %v1917_v43 = vld [vmem:[%s11321_s5] sm:$0xf] }
 0x1d8   :  { %v1930_v17 = vrot.slane %v1917_v43, %v9755_v62  ;;  %v1934_v18 = vrot.slane %v1917_v43, %v9758_v63 }
 0x1da   :  { %2719 = vmatpush2.bf16.msra.mxu1 %v7959_v45  ;;  %v1922_v45 = vrot.slane %v1917_v43, %v9639_v1 }
 0x1db   :  { %2720 = vmatprep.subr.bf16.mxu1 %v7964_v46  ;;  %v1926_v46 = vrot.slane %v1917_v43, %v9647_v3  ;;  %v8046_v43 = vld [vmem:[%s11320_s8 + $0x80] sm:$0xff]  }
 0x1de   :  { %2721 = vmatpush2.bf16.msra.mxu1 %v7962_v48 }
 0x1df   :  { %2722 = vmatprep.subr.bf16.mxu1 %v7967_v49 }
 0x1e2   :  { %2723 = vmatpush2.bf16.msra.mxu1 %v7965_v50 }
 0x1e3   :  { %2724 = vmatprep.subr.bf16.mxu1 %v7970_v52 }
 0x1e6   :  { %2725 = vmatpush2.bf16.msra.mxu1 %v7968_v53 }
 0x1e7   :  { %2726 = vmatprep.subr.bf16.mxu1 %v7973_v55 }
 0x1ea   :  { %2727 = vmatpush2.bf16.msra.mxu1 %v7971_v15  ;;  %v8000_v15 = vld [vmem:[%s11320_s8 + $0x38] sm:$0xff]  }
 0x1eb   :  { %2728 = vmatprep.subr.bf16.mxu1 %v7976_v58 }
 0x1ee   :  { %2729 = vmatpush2.bf16.msra.mxu1 %v7974_v6  ;;  %v8002_v6 = vld [vmem:[%s11320_s8 + $0x30] sm:$0xff]  }
 0x1ef   :  { %2730 = vmatprep.subr.bf16.mxu1 %v7979_v61  ;;  %v8004_v61 = vld [vmem:[%s11320_s8 + $0x28] sm:$0xff]  }
 0x1f2   :  { %2731 = vmatpush2.bf16.msra.mxu1 %v7977_v5  ;;  %v8007_v5 = vld [vmem:[%s11320_s8 + $0x58] sm:$0xff]  }
 0x1f3   :  { %2732 = vmatprep.subr.bf16.mxu1 %v7982_v8  ;;  %v8008_v8 = vld [vmem:[%s11320_s8 + $0x18] sm:$0xff]  }
 0x1f6   :  { %2733 = vmatpush2.bf16.msra.mxu1 %v7980_v11  ;;  %v8011_v11 = vld [vmem:[%s11320_s8 + $0x48] sm:$0xff]  }
 0x1f7   :  { %7337 = vmatprep.subr.bf16.mxu1 %v8015_v51 }
 0x1f9   :  { %2735 = vmatmul.mubr.bf16.vlgmr.msra.gmra.mxu1 %v9767_v28  ;;  %v8021_v28 = vld [vmem:[%s11319_s6 + $0xe0] sm:$0xff]  }
 0x1fa   :  { %7338 = vmatpush3.bf16.msra.mxu1 %v8016_v19 }
 0x1fb   :  { %7339 = vmatprep.subr.bf16.mxu1 %v8017_v22 }
 0x1fe   :  { %7340 = vmatpush3.bf16.msra.mxu1 %v8018_v20 }
 0x1ff   :  { %7341 = vmatprep.subr.bf16.mxu1 %v8019_v23 }
 0x202   :  { %7342 = vmatpush3.bf16.msra.mxu1 %v8020_v2 }
 0x203   :  { %7343 = vmatprep.subr.bf16.mxu1 %v8021_v28  ;;  %v8032_v28 = vld [vmem:[%s11320_s8 + $0xb8] sm:$0xff]  }
 0x206   :  { %7344 = vmatpush3.bf16.msra.mxu1 %v8022_v7 }
 0x207   :  { %7345 = vmatprep.subr.bf16.mxu1 %v8023_v29  ;;  %v8033_v29 = vld [vmem:[%s11320_s8 + $0xf0] sm:$0xff]  }
 0x20a   :  { %7346 = vmatpush3.bf16.msra.mxu1 %v8024_v30  ;;  %v8034_v30 = vld [vmem:[%s11320_s8 + $0xb0] sm:$0xff]  }
 0x20b   :  { %7347 = vmatprep.subr.bf16.mxu1 %v8025_v31  ;;  %v8035_v31 = vld [vmem:[%s11320_s8 + $0xe8] sm:$0xff]  }
 0x20e   :  { %7348 = vmatpush3.bf16.msra.mxu1 %v8026_v32  ;;  %v8036_v32 = vld [vmem:[%s11320_s8 + $0xa8] sm:$0xff]  }
 0x20f   :  { %7349 = vmatprep.subr.bf16.mxu1 %v8027_v33  ;;  %v8037_v33 = vld [vmem:[%s11320_s8 + $0xe0] sm:$0xff]  }
 0x212   :  { %7350 = vmatpush3.bf16.msra.mxu1 %v8028_v34  ;;  %v8038_v34 = vld [vmem:[%s11320_s8 + $0xa0] sm:$0xff]  }
 0x213   :  { %7351 = vmatprep.subr.bf16.mxu1 %v8029_v36  ;;  %v8039_v36 = vld [vmem:[%s11320_s8 + $0xd8] sm:$0xff]  }
 0x216   :  { %7352 = vmatpush3.bf16.msra.mxu1 %v8030_v37  ;;  %v8040_v37 = vld [vmem:[%s11320_s8 + $0x98] sm:$0xff]  }
 0x217   :  { %7381 = vmatprep.subr.bf16.mxu1 %v8031_v38  ;;  %v8041_v38 = vld [vmem:[%s11320_s8 + $0xd0] sm:$0xff]  }
 0x218   :  { %v2613_v24 = vpop.f32.mrf.mxu0 }
 0x219   :  { %v2614_v48 = vadd.f32 %v2613_v24, %v1922_v45  ;;  %v8047_v45 = vld [vmem:[%s11322_s10 + $0xe0] ss:$16 sps:$4 sm:$0xff]  }
 0x21a   :  { %v2615_v25 = vpop.f32.mrf.mxu0 }
 0x21b   :  { %v2616_v50 = vadd.f32 %v2615_v25, %v1926_v46  ;;  %v8049_v46 = vld [vmem:[%s11322_s10 + $0xe4] ss:$16 sps:$4 sm:$0xff]  }
 0x21c   :  { %v2617_v26 = vpop.f32.mrf.mxu0 }
 0x21e   :  { %v2618_v27 = vpop.f32.mrf.mxu0 }
 0x258   :  { %v2695_v39 = vpop.f32.mrf.mxu0 }
 0x259   :  { %v2696_v21 = vadd.f32 %v2695_v39, %v1930_v17  ;;  %v8042_v39 = vld [vmem:[%s11320_s8 + $0x90] sm:$0xff]   ;;  %v8092_v17 = vld [vmem:[%s11322_s10 + $0x8] ss:$16 sps:$4 sm:$0xff]  }
 0x25a   :  { %v2697_v40 = vpop.f32.mrf.mxu0 }
 0x25b   :  { %v2698_v25 = vadd.f32 %v2697_v40, %v1934_v18  ;;  %v8043_v40 = vld [vmem:[%s11320_s8 + $0xc8] sm:$0xff]  }
 0x25c   :  { %v2699_v41 = vpop.f32.mrf.mxu0  ;;  %v8094_v18 = vld [vmem:[%s11322_s10 + $0xc] ss:$16 sps:$4 sm:$0xff]  }
 0x25d   :  { %v8044_v41 = vld [vmem:[%s11320_s8 + $0x88] sm:$0xff]  }
 0x25e   :  { %v2700_v42 = vpop.f32.mrf.mxu0 }
 0x25f   :  { %v8045_v42 = vld [vmem:[%s11320_s8 + $0xc0] sm:$0xff]  }
 0x279   :  { %v2654_v49 = vpop.f32.mrf.mxu1 }
 0x27a   :  { %v2655_v52 = vadd.f32 %v2654_v49, %v2614_v48  ;;  %v8050_v48 = vld [vmem:[%s11322_s10 + $0xe8] ss:$16 sps:$4 sm:$0xff]   ;;  %v8052_v49 = vld [vmem:[%s11322_s10 + $0xec] ss:$16 sps:$4 sm:$0xff]  }
 0x27b   :  { %v2656_v53 = vpop.f32.mrf.mxu1 }
 0x27c   :  { %v2657_v54 = vadd.f32 %v2656_v53, %v2616_v50  ;;  %v2743_v55 = vmax.f32 %v2655_v52, 0.0  ;;  %v8058_v50 = vld [vmem:[%s11322_s10 + $0xcc] ss:$16 sps:$4 sm:$0xff]   ;;  %v8053_v52 = vld [vmem:[%s11322_s10 + $0xc0] ss:$16 sps:$4 sm:$0xff]  }
 0x27d   :  { %v2658_v56 = vpop.f32.mrf.mxu1  ;;  %v8056_v53 = vld [vmem:[%s11322_s10 + $0xc8] ss:$16 sps:$4 sm:$0xff]  }
 0x27e   :  { %v2744_v47 = vmax.f32 %v2657_v54, 0.0  ;;  %v2747_v58 = vpack.c.bf16 %v2743_v55, %v2743_v55  ;;  %v8061_v54 = vld [vmem:[%s11322_s10 + $0xa4] ss:$16 sps:$4 sm:$0xff]   ;;  %v8064_v55 = vld [vmem:[%s11322_s10 + $0xac] ss:$16 sps:$4 sm:$0xff]  }
 0x27f   :  { %v2659_v57 = vpop.f32.mrf.mxu1  ;;  %v8059_v56 = vld [vmem:[%s11322_s10 + $0xa0] ss:$16 sps:$4 sm:$0xff]  }
 0x280   :  { %v2748_v44 = vpack.c.bf16 %v2744_v47, %v2744_v47  ;;  %v8062_v47 = vld [vmem:[%s11322_s10 + $0xa8] ss:$16 sps:$4 sm:$0xff]   ;;  %v8067_v57 = vld [vmem:[%s11322_s10 + $0x84] ss:$16 sps:$4 sm:$0xff]  }
 0x282   :  { %3046 = vmatprep.mubr.bf16.mxu0 %v2748_v44 }
 0x283   :  { %3047 = vmatmul.mubr.bf16.vlgmr.msra.gmra.mxu0 %v2747_v58 }
 0x284   :  { %7360 = vmatpush3.bf16.msra.mxu0 %v8000_v15  ;;  %3389 = vmatprep.mubr.bf16.mxu0 %v2748_v44  ;;  %v8070_v44 = vld [vmem:[%s11322_s10 + $0x8c] ss:$16 sps:$4 sm:$0xff]   ;;  %v8065_v15 = vld [vmem:[%s11322_s10 + $0x80] ss:$16 sps:$4 sm:$0xff]  }
 0x285   :  { %7361 = vmatprep.subr.bf16.mxu0 %v8001_v59  ;;  %v8073_v59 = vld [vmem:[%s11322_s10 + $0x64] ss:$16 sps:$4 sm:$0xff]  }
 0x288   :  { %7362 = vmatpush3.bf16.msra.mxu0 %v8002_v6  ;;  %v8076_v6 = vld [vmem:[%s11322_s10 + $0x6c] ss:$16 sps:$4 sm:$0xff]  }
 0x289   :  { %7363 = vmatprep.subr.bf16.mxu0 %v8003_v60  ;;  %v8071_v60 = vld [vmem:[%s11322_s10 + $0x60] ss:$16 sps:$4 sm:$0xff]  }
 0x28c   :  { %7364 = vmatpush3.bf16.msra.mxu0 %v8004_v61  ;;  %v8074_v61 = vld [vmem:[%s11322_s10 + $0x68] ss:$16 sps:$4 sm:$0xff]  }
 0x28d   :  { %7365 = vmatprep.subr.bf16.mxu0 %v8005_v35  ;;  %v8079_v35 = vld [vmem:[%s11322_s10 + $0x44] ss:$16 sps:$4 sm:$0xff]  }
 0x290   :  { %7366 = vmatpush3.bf16.msra.mxu0 %v8006_v4  ;;  %v8082_v4 = vld [vmem:[%s11322_s10 + $0x4c] ss:$16 sps:$4 sm:$0xff]  }
 0x291   :  { %7367 = vmatprep.subr.bf16.mxu0 %v8007_v5  ;;  %v8077_v5 = vld [vmem:[%s11322_s10 + $0x40] ss:$16 sps:$4 sm:$0xff]  }
 0x294   :  { %7368 = vmatpush3.bf16.msra.mxu0 %v8008_v8  ;;  %v8080_v8 = vld [vmem:[%s11322_s10 + $0x48] ss:$16 sps:$4 sm:$0xff]  }
 0x295   :  { %7369 = vmatprep.subr.bf16.mxu0 %v8009_v9  ;;  %v8085_v9 = vld [vmem:[%s11322_s10 + $0x24] ss:$16 sps:$4 sm:$0xff]  }
 0x298   :  { %7370 = vmatpush3.bf16.msra.mxu0 %v8010_v10  ;;  %v8088_v10 = vld [vmem:[%s11322_s10 + $0x2c] ss:$16 sps:$4 sm:$0xff]  }
 0x299   :  { %7371 = vmatprep.subr.bf16.mxu0 %v8011_v11  ;;  %v8083_v11 = vld [vmem:[%s11322_s10 + $0x20] ss:$16 sps:$4 sm:$0xff]  }
 0x29c   :  { %7372 = vmatpush3.bf16.msra.mxu0 %v8012_v12  ;;  %v8086_v12 = vld [vmem:[%s11322_s10 + $0x28] ss:$16 sps:$4 sm:$0xff]  }
 0x29d   :  { %7373 = vmatprep.subr.bf16.mxu0 %v8013_v13  ;;  %v8089_v13 = vld [vmem:[%s11322_s10] ss:$16 sps:$4 sm:$0xff]  }
 0x2a0   :  { %7374 = vmatpush3.bf16.msra.mxu0 %v8014_v14  ;;  %v8091_v14 = vld [vmem:[%s11322_s10 + $0x4] ss:$16 sps:$4 sm:$0xff]  }
 0x2a1   :  { %3660 = vmatprep.subr.bf16.mxu0 %v8049_v46 }
 0x2a3   :  { %3390 = vmatmul.mubr.bf16.vlgmr.msra.gmra.mxu0 %v2747_v58  ;;  %v8068_v58 = vld [vmem:[%s11322_s10 + $0x88] ss:$16 sps:$4 sm:$0xff]  }
 0x2a4   :  { %3692 = vmatprep.mubr.bf16.mxu0 %v8609_v16  ;;  %3661 = vmatpush1.bf16.msra.mxu0 %v8047_v45 }
 0x2b9   :  { %v2736_v24 = vpop.f32.mrf.mxu1 }
 0x2ba   :  { %v2737_v26 = vadd.f32 %v2736_v24, %v2696_v21  ;;  %v8097_v21 = vld [vmem:[%s11323_s12 + $0xe4] ss:$16 sps:$4 sm:$0xff]  }
 0x2bb   :  { %v2738_v27 = vpop.f32.mrf.mxu1 }
 0x2bc   :  { %v2739_v51 = vadd.f32 %v2738_v27, %v2698_v25  ;;  %v2745_v19 = vmax.f32 %v2737_v26, 0.0  ;;  %v8100_v25 = vld [vmem:[%s11323_s12 + $0x2e4] ss:$16 sps:$4 sm:$0xff]  }
 0x2bd   :  { %v2740_v22 = vpop.f32.mrf.mxu1 }
 0x2be   :  { %v2746_v20 = vmax.f32 %v2739_v51, 0.0  ;;  %v2749_v7 = vpack.c.bf16 %v2745_v19, %v2745_v19 }
 0x2bf   :  { %v2741_v23 = vpop.f32.mrf.mxu1 }
 0x2c0   :  { %v2750_v2 = vpack.c.bf16 %v2746_v20, %v2746_v20 }
 0x2c2   :  { %3086 = vmatprep.mubr.bf16.mxu1 %v2750_v2 }
 0x2c3   :  { %3087 = vmatmul.mubr.bf16.vlgmr.msra.gmra.mxu1 %v2749_v7 }
 0x2c4   :  { %7382 = vmatpush3.bf16.msra.mxu1 %v8032_v28  ;;  %3429 = vmatprep.mubr.bf16.mxu1 %v2750_v2  ;;  %v6865_v28 = vld [vmem:[%s11324_s7] ss:$0 sm:$0xff] }
 0x2c5   :  { %7383 = vmatprep.subr.bf16.mxu1 %v8033_v29 }
 0x2c8   :  { %7384 = vmatpush3.bf16.msra.mxu1 %v8034_v30 }
 0x2c9   :  { %7385 = vmatprep.subr.bf16.mxu1 %v8035_v31 }
 0x2cc   :  { %7386 = vmatpush3.bf16.msra.mxu1 %v8036_v32 }
 0x2cd   :  { %7387 = vmatprep.subr.bf16.mxu1 %v8037_v33 }
 0x2d0   :  { %7388 = vmatpush3.bf16.msra.mxu1 %v8038_v34 }
 0x2d1   :  { %7389 = vmatprep.subr.bf16.mxu1 %v8039_v36 }
 0x2d4   :  { %7390 = vmatpush3.bf16.msra.mxu1 %v8040_v37  ;;  %v6898_v37 = vld [vmem:[%s11326_s9] ss:$0 sm:$0xff] }
 0x2d5   :  { %7391 = vmatprep.subr.bf16.mxu1 %v8041_v38 }
 0x2d8   :  { %7392 = vmatpush3.bf16.msra.mxu1 %v8042_v39 }
 0x2d9   :  { %7393 = vmatprep.subr.bf16.mxu1 %v8043_v40 }
 0x2dc   :  { %7394 = vmatpush3.bf16.msra.mxu1 %v8044_v41 }
 0x2dd   :  { %7395 = vmatprep.subr.bf16.mxu1 %v8045_v42 }
 0x2e0   :  { %7396 = vmatpush3.bf16.msra.mxu1 %v8046_v43 }
 0x2e1   :  { %3701 = vmatprep.subr.bf16.mxu1 %v8052_v49 }
 0x2e3   :  { %3430 = vmatmul.mubr.bf16.vlgmr.msra.gmra.mxu1 %v2749_v7 }
 0x2e4   :  { %3733 = vmatprep.mubr.bf16.mxu1 %v8609_v16  ;;  %3702 = vmatpush1.bf16.msra.mxu1 %v8050_v48  ;;  %v8055_v16 = vld [vmem:[%s11322_s10 + $0xc4] ss:$16 sps:$4 sm:$0xff]  }
 0x2e5   :  { %3662 = vmatprep.subr.bf16.mxu0 %v8055_v16  ;;  %3703 = vmatprep.subr.bf16.mxu1 %v8058_v50  ;;  %v3441_v48 = vld [vmem:[%s11327_s1] sm:$0xff] }
 0x2e6   :  { %3663 = vmatpush1.bf16.msra.mxu0 %v8053_v52  ;;  %v8095_v52 = vld [vmem:[%s11323_s12 + $0xe0] ss:$16 sps:$4 sm:$0xff]  }
 0x2e7   :  { %3664 = vmatprep.subr.bf16.mxu0 %v8061_v54 }
 0x2e8   :  { %3704 = vmatpush1.bf16.msra.mxu1 %v8056_v53  ;;  %v8098_v53 = vld [vmem:[%s11323_s12 + $0x2e0] ss:$16 sps:$4 sm:$0xff]  }
 0x2e9   :  { %3705 = vmatprep.subr.bf16.mxu1 %v8064_v55  ;;  %v8103_v55 = vld [vmem:[%s11323_s12 + $0xc4] ss:$16 sps:$4 sm:$0xff]  }
 0x2ea   :  { %3665 = vmatpush1.bf16.msra.mxu0 %v8059_v56  ;;  %v8106_v56 = vld [vmem:[%s11323_s12 + $0x2c4] ss:$16 sps:$4 sm:$0xff]  }
 0x2eb   :  { %3666 = vmatprep.subr.bf16.mxu0 %v8067_v57  ;;  %v8104_v57 = vld [vmem:[%s11323_s12 + $0x2c0] ss:$16 sps:$4 sm:$0xff]  }
 0x2ec   :  { %3706 = vmatpush1.bf16.msra.mxu1 %v8062_v47  ;;  %v8101_v47 = vld [vmem:[%s11323_s12 + $0xc0] ss:$16 sps:$4 sm:$0xff]  }
 0x2ed   :  { %3707 = vmatprep.subr.bf16.mxu1 %v8070_v44  ;;  %v8109_v44 = vld [vmem:[%s11323_s12 + $0xa4] ss:$16 sps:$4 sm:$0xff]  }
 0x2ee   :  { %3667 = vmatpush1.bf16.msra.mxu0 %v8065_v15  ;;  %v8112_v15 = vld [vmem:[%s11323_s12 + $0x2a4] ss:$16 sps:$4 sm:$0xff]  }
 0x2ef   :  { %3668 = vmatprep.subr.bf16.mxu0 %v8073_v59  ;;  %v8110_v59 = vld [vmem:[%s11323_s12 + $0x2a0] ss:$16 sps:$4 sm:$0xff]  }
 0x2f0   :  { %3708 = vmatpush1.bf16.msra.mxu1 %v8068_v58  ;;  %v8107_v58 = vld [vmem:[%s11323_s12 + $0xa0] ss:$16 sps:$4 sm:$0xff]  }
 0x2f1   :  { %3709 = vmatprep.subr.bf16.mxu1 %v8076_v6  ;;  %v8115_v6 = vld [vmem:[%s11323_s12 + $0x84] ss:$16 sps:$4 sm:$0xff]  }
 0x2f2   :  { %3669 = vmatpush1.bf16.msra.mxu0 %v8071_v60  ;;  %v8118_v60 = vld [vmem:[%s11323_s12 + $0x284] ss:$16 sps:$4 sm:$0xff]  }
 0x2f3   :  { %3670 = vmatprep.subr.bf16.mxu0 %v8079_v35  ;;  %v8116_v35 = vld [vmem:[%s11323_s12 + $0x280] ss:$16 sps:$4 sm:$0xff]  }
 0x2f4   :  { %3710 = vmatpush1.bf16.msra.mxu1 %v8074_v61  ;;  %v8113_v61 = vld [vmem:[%s11323_s12 + $0x80] ss:$16 sps:$4 sm:$0xff]  }
 0x2f5   :  { %3711 = vmatprep.subr.bf16.mxu1 %v8082_v4  ;;  %v8121_v4 = vld [vmem:[%s11323_s12 + $0x64] ss:$16 sps:$4 sm:$0xff]  }
 0x2f6   :  { %3671 = vmatpush1.bf16.msra.mxu0 %v8077_v5  ;;  %v8124_v5 = vld [vmem:[%s11323_s12 + $0x264] ss:$16 sps:$4 sm:$0xff]  }
 0x2f7   :  { %3672 = vmatprep.subr.bf16.mxu0 %v8085_v9  ;;  %v8122_v9 = vld [vmem:[%s11323_s12 + $0x260] ss:$16 sps:$4 sm:$0xff]  }
 0x2f8   :  { %3712 = vmatpush1.bf16.msra.mxu1 %v8080_v8  ;;  %v8119_v8 = vld [vmem:[%s11323_s12 + $0x60] ss:$16 sps:$4 sm:$0xff]  }
 0x2f9   :  { %3713 = vmatprep.subr.bf16.mxu1 %v8088_v10  ;;  %v8127_v10 = vld [vmem:[%s11323_s12 + $0x44] ss:$16 sps:$4 sm:$0xff]  }
 0x2fa   :  { %3673 = vmatpush1.bf16.msra.mxu0 %v8083_v11  ;;  %v8130_v11 = vld [vmem:[%s11323_s12 + $0x244] ss:$16 sps:$4 sm:$0xff]  }
 0x2fb   :  { %3674 = vmatprep.subr.bf16.mxu0 %v8091_v14  ;;  %v8133_v14 = vld [vmem:[%s11323_s12 + $0x24] ss:$16 sps:$4 sm:$0xff]  }
 0x2fc   :  { %3714 = vmatpush1.bf16.msra.mxu1 %v8086_v12  ;;  %v8125_v12 = vld [vmem:[%s11323_s12 + $0x40] ss:$16 sps:$4 sm:$0xff]  }
 0x2fd   :  { %3715 = vmatprep.subr.bf16.mxu1 %v8094_v18  ;;  %v8131_v18 = vld [vmem:[%s11323_s12 + $0x20] ss:$16 sps:$4 sm:$0xff]  }
 0x2fe   :  { %3675 = vmatpush1.bf16.msra.mxu0 %v8089_v13  ;;  %v8128_v13 = vld [vmem:[%s11323_s12 + $0x240] ss:$16 sps:$4 sm:$0xff]  }
 0x2ff   :  { %4540 = vmatprep.subr.bf16.mxu0 %v8097_v21  ;;  %v8134_v21 = vld [vmem:[%s11323_s12 + $0x220] ss:$16 sps:$4 sm:$0xff]  }
 0x300   :  { %3716 = vmatpush1.bf16.msra.mxu1 %v8092_v17  ;;  %v8136_v17 = vld [vmem:[%s11323_s12 + $0x224] ss:$16 sps:$4 sm:$0xff]  }
 0x301   :  { %4581 = vmatprep.subr.bf16.mxu1 %v8100_v25  ;;  %v8142_v25 = vld [vmem:[%s11323_s12 + $0x204] ss:$16 sps:$4 sm:$0xff]  }
 0x343   :  { %v7331_v24 = vpop.f32.mrf.mxu0 }
 0x345   :  { %v7332_v26 = vpop.f32.mrf.mxu0 }
 0x346   :  { %v7333_v2 = vadd.f32 %v7332_v26, %v7331_v24  ;;  %v8139_v24 = vld [vmem:[%s11323_s12 + $0x4] ss:$16 sps:$4 sm:$0xff]   ;;  %v8137_v26 = vld [vmem:[%s11323_s12] ss:$16 sps:$4 sm:$0xff]  }
 0x347   :  { %v7334_v27 = vpop.f32.mrf.mxu0 }
 0x348   :  { %v3049_v30 = vadd.f32 %v7333_v2, %v6865_v28  ;;  %v8140_v27 = vld [vmem:[%s11323_s12 + $0x200] ss:$16 sps:$4 sm:$0xff]   ;;  %v8154_v2 = vld [vmem:[%s11323_s12 + $0x3c4] ss:$16 sps:$4 sm:$0xff]  }
 0x349   :  { %v7335_v51 = vpop.f32.mrf.mxu0  ;;  %v8149_v28 = vld [vmem:[%s11323_s12 + $0x1c0] ss:$16 sps:$4 sm:$0xff]  }
 0x34a   :  { %v8145_v51 = vld [vmem:[%s11323_s12 + $0x1e4] ss:$16 sps:$4 sm:$0xff]  }
 0x363   :  { %v7375_v19 = vpop.f32.mrf.mxu0 }
 0x365   :  { %v7376_v22 = vpop.f32.mrf.mxu0 }
 0x366   :  { %v7377_v36 = vadd.f32 %v7376_v22, %v7375_v19  ;;  %v8148_v19 = vld [vmem:[%s11323_s12 + $0x3e4] ss:$16 sps:$4 sm:$0xff]   ;;  %v8143_v22 = vld [vmem:[%s11323_s12 + $0x1e0] ss:$16 sps:$4 sm:$0xff]  }
 0x367   :  { %v7378_v20 = vpop.f32.mrf.mxu0 }
 0x368   :  { %v3392_v40 = vadd.f32 %v7377_v36, %v6898_v37  ;;  %v8146_v20 = vld [vmem:[%s11323_s12 + $0x3e0] ss:$16 sps:$4 sm:$0xff]  }
 0x369   :  { %v7379_v23 = vpop.f32.mrf.mxu0  ;;  %v8161_v36 = vld [vmem:[%s11323_s12 + $0x180] ss:$16 sps:$4 sm:$0xff]  }
 0x36a   :  { %v8151_v23 = vld [vmem:[%s11323_s12 + $0x1c4] ss:$16 sps:$4 sm:$0xff]   ;;  %v8164_v37 = vld [vmem:[%s11323_s12 + $0x380] ss:$16 sps:$4 sm:$0xff]  }
 0x383   :  { %v7353_v7 = vpop.f32.mrf.mxu1 }
 0x385   :  { %v7354_v29 = vpop.f32.mrf.mxu1 }
 0x386   :  { %v7355_v31 = vadd.f32 %v7354_v29, %v7353_v7  ;;  %v8152_v7 = vld [vmem:[%s11323_s12 + $0x3c0] ss:$16 sps:$4 sm:$0xff]   ;;  %v8157_v29 = vld [vmem:[%s11323_s12 + $0x1a4] ss:$16 sps:$4 sm:$0xff]  }
 0x387   :  { %v7356_v32 = vpop.f32.mrf.mxu1 }
 0x388   :  { %v3089_v33 = vadd.f32 %v7355_v31, %v3049_v30  ;;  %v8160_v30 = vld [vmem:[%s11323_s12 + $0x3a4] ss:$16 sps:$4 sm:$0xff]   ;;  %v8155_v31 = vld [vmem:[%s11323_s12 + $0x1a0] ss:$16 sps:$4 sm:$0xff]  }
 0x389   :  { %v7357_v34 = vpop.f32.mrf.mxu1  ;;  %v8158_v32 = vld [vmem:[%s11323_s12 + $0x3a0] ss:$16 sps:$4 sm:$0xff]  }
 0x38a   :  { %3439 = vst [vmem:[%s11325_s16] sm:$0xff] %v3089_v33  ;;  %v8166_v34 = vld [vmem:[%s11323_s12 + $0x384] ss:$16 sps:$4 sm:$0xff]  }
 0x3a3   :  { %v7397_v38 = vpop.f32.mrf.mxu1 }
 0x3a5   :  { %v7398_v39 = vpop.f32.mrf.mxu1 }
 0x3a6   :  { %v7399_v41 = vadd.f32 %v7398_v39, %v7397_v38  ;;  %v8169_v38 = vld [vmem:[%s11323_s12 + $0x164] ss:$16 sps:$4 sm:$0xff]  }
 0x3a7   :  { %v7400_v42 = vpop.f32.mrf.mxu1  ;;  %v8172_v39 = vld [vmem:[%s11323_s12 + $0x364] ss:$16 sps:$4 sm:$0xff]  }
 0x3a8   :  { %v3432_v43 = vadd.f32 %v7399_v41, %v3392_v40  ;;  %v8167_v40 = vld [vmem:[%s11323_s12 + $0x160] ss:$16 sps:$4 sm:$0xff]   ;;  %v8175_v42 = vld [vmem:[%s11323_s12 + $0x144] ss:$16 sps:$4 sm:$0xff]  }
 0x3a9   :  { %v7401_v45 = vpop.f32.mrf.mxu1  ;;  %v8170_v41 = vld [vmem:[%s11323_s12 + $0x360] ss:$16 sps:$4 sm:$0xff]  }
 0x3aa   :  { %v3437_v46 = vmul.f32 1.442695, %v3432_v43  ;;  %v8178_v43 = vld [vmem:[%s11323_s12 + $0x344] ss:$16 sps:$4 sm:$0xff]   ;;  %v8173_v45 = vld [vmem:[%s11323_s12 + $0x140] ss:$16 sps:$4 sm:$0xff]  }
 0x3ac   :  { %8607 = vpow2.f32 %v3437_v46  ;;  %v8176_v46 = vld [vmem:[%s11323_s12 + $0x340] ss:$16 sps:$4 sm:$0xff]  }
 0x3b9   :  { %v8608_v49 = vpop.eup %8607 }
 0x3ba   :  { %3440 = vst [vmem:[%s11328_s17] sm:$0xff] %v8608_v49  ;;  %v3442_v16 = vmul.f32 %v8608_v49, %v3441_v48  ;;  %v8181_v48 = vld [vmem:[%s11323_s12 + $0x124] ss:$16 sps:$4 sm:$0xff]  }
 0x3bb   :  { %v8184_v49 = vld [vmem:[%s11323_s12 + $0x324] ss:$16 sps:$4 sm:$0xff]  }
 0x3bc   :  { %v3443_v50 = vadd.f32 %v3442_v16, %v3089_v33  ;;  %v8163_v33 = vld [vmem:[%s11323_s12 + $0x184] ss:$16 sps:$4 sm:$0xff]   ;;  %v8179_v16 = vld [vmem:[%s11323_s12 + $0x120] ss:$16 sps:$4 sm:$0xff]  }
 0x3be   :  { %3444 = vst [vmem:[%s11329_s18] sm:$0xff] %v3443_v50  ;;  %v3445_v54 = vpack.c.bf16 %v3443_v50, %v3443_v50  ;;  %v8182_v50 = vld [vmem:[%s11323_s12 + $0x320] ss:$16 sps:$4 sm:$0xff]  }
 0x3c0   :  { %3693 = vmatmul.mubr.bf16.vlgmr.msra.gmra.mxu0 %v3445_v54  ;;  %3734 = vmatmul.mubr.bf16.vlgmr.msra.gmra.mxu1 %v3445_v54  ;;  %v8185_v54 = vld [vmem:[%s11323_s12 + $0x100] ss:$16 sps:$4 sm:$0xff]  }
 0x3c1   :  { %4541 = vmatpush1.bf16.msra.mxu0 %v8095_v52  ;;  %4582 = vmatpush1.bf16.msra.mxu1 %v8098_v53  ;;  %v8187_v52 = vld [vmem:[%s11323_s12 + $0x104] ss:$16 sps:$4 sm:$0xff]  }
 0x3c2   :  { %4542 = vmatprep.subr.bf16.mxu0 %v8103_v55  ;;  %4583 = vmatprep.subr.bf16.mxu1 %v8106_v56  ;;  %v8190_v53 = vld [vmem:[%s11323_s12 + $0x304] ss:$16 sps:$4 sm:$0xff]   ;;  %v8188_v55 = vld [vmem:[%s11323_s12 + $0x300] ss:$16 sps:$4 sm:$0xff]   ;;  %v8193_v56 = vld [vmem:[%s11323_s12 + $0xec] ss:$16 sps:$4 sm:$0xff]  }
 0x3c5   :  { %4543 = vmatpush1.bf16.msra.mxu0 %v8101_v47  ;;  %4584 = vmatpush1.bf16.msra.mxu1 %v8104_v57  ;;  %v8196_v47 = vld [vmem:[%s11323_s12 + $0x2ec] ss:$16 sps:$4 sm:$0xff]   ;;  %v3478_v57 = vld [vmem:[%s11331_s11] sm:$0xf] }
 0x3c6   :  { %4544 = vmatprep.subr.bf16.mxu0 %v8109_v44  ;;  %4585 = vmatprep.subr.bf16.mxu1 %v8112_v15  ;;  %v3483_v44 = vrot.slane %v3478_v57, %v9639_v1  ;;  %v3491_v15 = vrot.slane %v3478_v57, %v9755_v62 }
 0x3c9   :  { %4545 = vmatpush1.bf16.msra.mxu0 %v8107_v58  ;;  %4586 = vmatpush1.bf16.msra.mxu1 %v8110_v59  ;;  %v3487_v58 = vrot.slane %v3478_v57, %v9647_v3  ;;  %v3495_v59 = vrot.slane %v3478_v57, %v9758_v63  ;;  %v8247_v57 = vld [vmem:[%s11323_s12 + $0x1cc] ss:$16 sps:$4 sm:$0xff]  }
 0x3ca   :  { %4546 = vmatprep.subr.bf16.mxu0 %v8115_v6  ;;  %4587 = vmatprep.subr.bf16.mxu1 %v8118_v60 }
 0x3cd   :  { %4547 = vmatpush1.bf16.msra.mxu0 %v8113_v61  ;;  %4588 = vmatpush1.bf16.msra.mxu1 %v8116_v35 }
 0x3ce   :  { %4548 = vmatprep.subr.bf16.mxu0 %v8121_v4  ;;  %4589 = vmatprep.subr.bf16.mxu1 %v8124_v5 }
 0x3d1   :  { %4549 = vmatpush1.bf16.msra.mxu0 %v8119_v8  ;;  %4590 = vmatpush1.bf16.msra.mxu1 %v8122_v9 }
 0x3d2   :  { %4550 = vmatprep.subr.bf16.mxu0 %v8127_v10  ;;  %4591 = vmatprep.subr.bf16.mxu1 %v8130_v11 }
 0x3d5   :  { %4551 = vmatpush1.bf16.msra.mxu0 %v8125_v12  ;;  %4592 = vmatpush1.bf16.msra.mxu1 %v8128_v13 }
 0x3d6   :  { %4552 = vmatprep.subr.bf16.mxu0 %v8133_v14  ;;  %4593 = vmatprep.subr.bf16.mxu1 %v8136_v17 }
 0x3d9   :  { %4553 = vmatpush1.bf16.msra.mxu0 %v8131_v18  ;;  %4594 = vmatpush1.bf16.msra.mxu1 %v8134_v21  ;;  %v8191_v18 = vld [vmem:[%s11323_s12 + $0xe8] ss:$16 sps:$4 sm:$0xff]  }
 0x3da   :  { %4554 = vmatprep.subr.bf16.mxu0 %v8139_v24  ;;  %4595 = vmatprep.subr.bf16.mxu1 %v8142_v25  ;;  %v8194_v21 = vld [vmem:[%s11323_s12 + $0x2e8] ss:$16 sps:$4 sm:$0xff]  }
 0x3dd   :  { %4555 = vmatpush1.bf16.msra.mxu0 %v8137_v26  ;;  %4596 = vmatpush1.bf16.msra.mxu1 %v8140_v27 }
 0x3de   :  { %4556 = vmatprep.subr.bf16.mxu0 %v8145_v51  ;;  %4597 = vmatprep.subr.bf16.mxu1 %v8148_v19  ;;  %v8199_v51 = vld [vmem:[%s11323_s12 + $0xcc] ss:$16 sps:$4 sm:$0xff]  }
 0x3df   :  { %v8202_v19 = vld [vmem:[%s11323_s12 + $0x2cc] ss:$16 sps:$4 sm:$0xff]  }
 0x3e1   :  { %4557 = vmatpush2.bf16.msra.mxu0 %v8143_v22  ;;  %4598 = vmatpush2.bf16.msra.mxu1 %v8146_v20 }
 0x3e2   :  { %4558 = vmatprep.subr.bf16.mxu0 %v8151_v23  ;;  %4599 = vmatprep.subr.bf16.mxu1 %v8154_v2  ;;  %v8197_v23 = vld [vmem:[%s11323_s12 + $0xc8] ss:$16 sps:$4 sm:$0xff]  }
 0x3e3   :  { %v8200_v2 = vld [vmem:[%s11323_s12 + $0x2c8] ss:$16 sps:$4 sm:$0xff]  }
 0x3e5   :  { %4559 = vmatpush2.bf16.msra.mxu0 %v8149_v28  ;;  %4600 = vmatpush2.bf16.msra.mxu1 %v8152_v7  ;;  %v8205_v28 = vld [vmem:[%s11323_s12 + $0xac] ss:$16 sps:$4 sm:$0xff]  }
 0x3e6   :  { %4560 = vmatprep.subr.bf16.mxu0 %v8157_v29  ;;  %4601 = vmatprep.subr.bf16.mxu1 %v8160_v30  ;;  %v8208_v7 = vld [vmem:[%s11323_s12 + $0x2ac] ss:$16 sps:$4 sm:$0xff]   ;;  %v8203_v29 = vld [vmem:[%s11323_s12 + $0xa8] ss:$16 sps:$4 sm:$0xff]  }
 0x3e7   :  { %v8206_v30 = vld [vmem:[%s11323_s12 + $0x2a8] ss:$16 sps:$4 sm:$0xff]  }
 0x3e9   :  { %4561 = vmatpush2.bf16.msra.mxu0 %v8155_v31  ;;  %4602 = vmatpush2.bf16.msra.mxu1 %v8158_v32  ;;  %v8211_v31 = vld [vmem:[%s11323_s12 + $0x8c] ss:$16 sps:$4 sm:$0xff]  }
 0x3ea   :  { %4562 = vmatprep.subr.bf16.mxu0 %v8163_v33  ;;  %4603 = vmatprep.subr.bf16.mxu1 %v8166_v34  ;;  %v8214_v32 = vld [vmem:[%s11323_s12 + $0x28c] ss:$16 sps:$4 sm:$0xff]   ;;  %v8209_v33 = vld [vmem:[%s11323_s12 + $0x88] ss:$16 sps:$4 sm:$0xff]  }
 0x3eb   :  { %v8212_v34 = vld [vmem:[%s11323_s12 + $0x288] ss:$16 sps:$4 sm:$0xff]  }
 0x3ed   :  { %4563 = vmatpush2.bf16.msra.mxu0 %v8161_v36  ;;  %4604 = vmatpush2.bf16.msra.mxu1 %v8164_v37  ;;  %v8217_v36 = vld [vmem:[%s11323_s12 + $0x6c] ss:$16 sps:$4 sm:$0xff]  }
 0x3ee   :  { %4564 = vmatprep.subr.bf16.mxu0 %v8169_v38  ;;  %4605 = vmatprep.subr.bf16.mxu1 %v8172_v39  ;;  %v8220_v37 = vld [vmem:[%s11323_s12 + $0x26c] ss:$16 sps:$4 sm:$0xff]   ;;  %v8215_v38 = vld [vmem:[%s11323_s12 + $0x68] ss:$16 sps:$4 sm:$0xff]  }
 0x3ef   :  { %v8218_v39 = vld [vmem:[%s11323_s12 + $0x268] ss:$16 sps:$4 sm:$0xff]  }
 0x3f1   :  { %4565 = vmatpush2.bf16.msra.mxu0 %v8167_v40  ;;  %4606 = vmatpush2.bf16.msra.mxu1 %v8170_v41  ;;  %v8223_v40 = vld [vmem:[%s11323_s12 + $0x4c] ss:$16 sps:$4 sm:$0xff]  }
 0x3f2   :  { %4566 = vmatprep.subr.bf16.mxu0 %v8175_v42  ;;  %4607 = vmatprep.subr.bf16.mxu1 %v8178_v43  ;;  %v8226_v41 = vld [vmem:[%s11323_s12 + $0x24c] ss:$16 sps:$4 sm:$0xff]   ;;  %v8221_v42 = vld [vmem:[%s11323_s12 + $0x48] ss:$16 sps:$4 sm:$0xff]  }
 0x3f3   :  { %v8224_v43 = vld [vmem:[%s11323_s12 + $0x248] ss:$16 sps:$4 sm:$0xff]  }
 0x3f5   :  { %4567 = vmatpush2.bf16.msra.mxu0 %v8173_v45  ;;  %4608 = vmatpush2.bf16.msra.mxu1 %v8176_v46  ;;  %v8229_v45 = vld [vmem:[%s11323_s12 + $0x2c] ss:$16 sps:$4 sm:$0xff]  }
 0x3f6   :  { %4568 = vmatprep.subr.bf16.mxu0 %v8181_v48  ;;  %4609 = vmatprep.subr.bf16.mxu1 %v8184_v49  ;;  %v8232_v46 = vld [vmem:[%s11323_s12 + $0x22c] ss:$16 sps:$4 sm:$0xff]   ;;  %v8227_v48 = vld [vmem:[%s11323_s12 + $0x28] ss:$16 sps:$4 sm:$0xff]  }
 0x3f7   :  { %v8230_v49 = vld [vmem:[%s11323_s12 + $0x228] ss:$16 sps:$4 sm:$0xff]  }
 0x3f9   :  { %4569 = vmatpush2.bf16.msra.mxu0 %v8179_v16  ;;  %4610 = vmatpush2.bf16.msra.mxu1 %v8182_v50  ;;  %v8235_v16 = vld [vmem:[%s11323_s12 + $0xc] ss:$16 sps:$4 sm:$0xff]  }
 0x3fa   :  { %4570 = vmatprep.subr.bf16.mxu0 %v8187_v52  ;;  %4611 = vmatprep.subr.bf16.mxu1 %v8190_v53  ;;  %v8238_v50 = vld [vmem:[%s11323_s12 + $0x20c] ss:$16 sps:$4 sm:$0xff]   ;;  %v8233_v52 = vld [vmem:[%s11323_s12 + $0x8] ss:$16 sps:$4 sm:$0xff]  }
 0x3fb   :  { %v8236_v53 = vld [vmem:[%s11323_s12 + $0x208] ss:$16 sps:$4 sm:$0xff]  }
 0x3fd   :  { %4571 = vmatpush2.bf16.msra.mxu0 %v8185_v54  ;;  %4612 = vmatpush2.bf16.msra.mxu1 %v8188_v55  ;;  %v8241_v54 = vld [vmem:[%s11323_s12 + $0x1ec] ss:$16 sps:$4 sm:$0xff]  }
 0x3fe   :  { %4622 = vmatprep.subr.bf16.mxu0 %v8193_v56  ;;  %4663 = vmatprep.subr.bf16.mxu1 %v8196_v47  ;;  %v8244_v55 = vld [vmem:[%s11323_s12 + $0x3ec] ss:$16 sps:$4 sm:$0xff]   ;;  %v8239_v56 = vld [vmem:[%s11323_s12 + $0x1e8] ss:$16 sps:$4 sm:$0xff]  }
 0x3ff   :  { %v8242_v47 = vld [vmem:[%s11323_s12 + $0x3e8] ss:$16 sps:$4 sm:$0xff]  }
 0x480   :  { %v3694_v6 = vpop.f32.mrf.mxu0  ;;  %v3735_v60 = vpop.f32.mrf.mxu1 }
 0x481   :  { %v3695_v61 = vadd.f32 %v3694_v6, %v3483_v44  ;;  %v3736_v35 = vadd.f32 %v3735_v60, %v3491_v15  ;;  %v8250_v44 = vld [vmem:[%s11323_s12 + $0x3cc] ss:$16 sps:$4 sm:$0xff]   ;;  %v8245_v15 = vld [vmem:[%s11323_s12 + $0x1c8] ss:$16 sps:$4 sm:$0xff]  }
 0x482   :  { %v3696_v4 = vpop.f32.mrf.mxu0  ;;  %v3737_v5 = vpop.f32.mrf.mxu1  ;;  %v8256_v6 = vld [vmem:[%s11323_s12 + $0x3ac] ss:$16 sps:$4 sm:$0xff]   ;;  %v8251_v60 = vld [vmem:[%s11323_s12 + $0x1a8] ss:$16 sps:$4 sm:$0xff]  }
 0x483   :  { %v3697_v8 = vadd.f32 %v3696_v4, %v3487_v58  ;;  %v3738_v9 = vadd.f32 %v3737_v5, %v3495_v59  ;;  %v3742_v10 = vmax.f32 %v3695_v61, 0.0  ;;  %v3744_v11 = vmax.f32 %v3736_v35, 0.0  ;;  %v8248_v58 = vld [vmem:[%s11323_s12 + $0x3c8] ss:$16 sps:$4 sm:$0xff]   ;;  %v8253_v59 = vld [vmem:[%s11323_s12 + $0x1ac] ss:$16 sps:$4 sm:$0xff]  }
 0x484   :  { %v3698_v12 = vpop.f32.mrf.mxu0  ;;  %v3739_v13 = vpop.f32.mrf.mxu1  ;;  %v8254_v61 = vld [vmem:[%s11323_s12 + $0x3a8] ss:$16 sps:$4 sm:$0xff]   ;;  %v8259_v35 = vld [vmem:[%s11323_s12 + $0x18c] ss:$16 sps:$4 sm:$0xff]  }
 0x485   :  { %v3743_v14 = vmax.f32 %v3697_v8, 0.0  ;;  %v3745_v17 = vmax.f32 %v3738_v9, 0.0  ;;  %v10393_v22 = vpack.c.bf16 %v3742_v10, %v3742_v10  ;;  %v10395_v20 = vpack.c.bf16 %v3744_v11, %v3744_v11  ;;  %v8262_v4 = vld [vmem:[%s11323_s12 + $0x38c] ss:$16 sps:$4 sm:$0xff]   ;;  %v8257_v5 = vld [vmem:[%s11323_s12 + $0x188] ss:$16 sps:$4 sm:$0xff]  }
 0x486   :  { %v3699_v24 = vpop.f32.mrf.mxu0  ;;  %v3740_v25 = vpop.f32.mrf.mxu1  ;;  %v8260_v8 = vld [vmem:[%s11323_s12 + $0x388] ss:$16 sps:$4 sm:$0xff]   ;;  %v8265_v9 = vld [vmem:[%s11323_s12 + $0x16c] ss:$16 sps:$4 sm:$0xff]  }
 0x487   :  { %v3747_v26 = vpack.c.bf16 %v3743_v14, %v3743_v14  ;;  %v3749_v27 = vpack.c.bf16 %v3745_v17, %v3745_v17  ;;  %v8268_v10 = vld [vmem:[%s11323_s12 + $0x36c] ss:$16 sps:$4 sm:$0xff]   ;;  %v8263_v11 = vld [vmem:[%s11323_s12 + $0x168] ss:$16 sps:$4 sm:$0xff]  }
 0x488   :  { %v8266_v12 = vld [vmem:[%s11323_s12 + $0x368] ss:$16 sps:$4 sm:$0xff]   ;;  %v8271_v13 = vld [vmem:[%s11323_s12 + $0x14c] ss:$16 sps:$4 sm:$0xff]  }
 0x489   :  { %4572 = vmatprep.mubr.bf16.mxu0 %v3747_v26  ;;  %4613 = vmatprep.mubr.bf16.mxu1 %v3749_v27  ;;  %v8274_v14 = vld [vmem:[%s11323_s12 + $0x34c] ss:$16 sps:$4 sm:$0xff]   ;;  %v8269_v17 = vld [vmem:[%s11323_s12 + $0x148] ss:$16 sps:$4 sm:$0xff]  }
 0x48a   :  { %4573 = vmatmul.mubr.bf16.vlgmr.msra.gmra.mxu0 %v10393_v22  ;;  %4614 = vmatmul.mubr.bf16.vlgmr.msra.gmra.mxu1 %v10395_v20  ;;  %v8280_v24 = vld [vmem:[%s11323_s12 + $0x32c] ss:$16 sps:$4 sm:$0xff]   ;;  %v8275_v25 = vld [vmem:[%s11323_s12 + $0x128] ss:$16 sps:$4 sm:$0xff]  }
 0x48b   :  { %4623 = vmatpush1.bf16.msra.mxu0 %v8191_v18  ;;  %4664 = vmatpush1.bf16.msra.mxu1 %v8194_v21  ;;  %v8272_v18 = vld [vmem:[%s11323_s12 + $0x348] ss:$16 sps:$4 sm:$0xff]   ;;  %v8277_v21 = vld [vmem:[%s11323_s12 + $0x12c] ss:$16 sps:$4 sm:$0xff]  }
 0x48c   :  { %4654 = vmatprep.mubr.bf16.mxu0 %v3747_v26  ;;  %4695 = vmatprep.mubr.bf16.mxu1 %v3749_v27  ;;  %v8278_v26 = vld [vmem:[%s11323_s12 + $0x328] ss:$16 sps:$4 sm:$0xff]   ;;  %v8283_v27 = vld [vmem:[%s11323_s12 + $0x10c] ss:$16 sps:$4 sm:$0xff]  }
 0x48d   :  { %4624 = vmatprep.subr.bf16.mxu0 %v8199_v51  ;;  %4665 = vmatprep.subr.bf16.mxu1 %v8202_v19  ;;  %v8286_v51 = vld [vmem:[%s11323_s12 + $0x30c] ss:$16 sps:$4 sm:$0xff]   ;;  %v8281_v19 = vld [vmem:[%s11323_s12 + $0x108] ss:$16 sps:$4 sm:$0xff]  }
 0x48f   :  { %4625 = vmatpush1.bf16.msra.mxu0 %v8197_v23  ;;  %4666 = vmatpush1.bf16.msra.mxu1 %v8200_v2  ;;  %v8284_v23 = vld [vmem:[%s11323_s12 + $0x308] ss:$16 sps:$4 sm:$0xff]  }
 0x490   :  { %4626 = vmatprep.subr.bf16.mxu0 %v8205_v28  ;;  %4667 = vmatprep.subr.bf16.mxu1 %v8208_v7  ;;  %v8289_v2 = vld [vmem:[%s11330_s14 + $0x18c] ss:$28 sps:$4 sm:$0xff]   ;;  %v8292_v7 = vld [vmem:[%s11330_s14 + $0x154] ss:$28 sps:$4 sm:$0xff]  }
 0x491   :  { %v8287_v28 = vld [vmem:[%s11330_s14 + $0x188] ss:$28 sps:$4 sm:$0xff]  }
 0x493   :  { %4627 = vmatpush1.bf16.msra.mxu0 %v8203_v29  ;;  %4668 = vmatpush1.bf16.msra.mxu1 %v8206_v30  ;;  %v8290_v29 = vld [vmem:[%s11330_s14 + $0x150] ss:$28 sps:$4 sm:$0xff]   ;;  %v8295_v30 = vld [vmem:[%s11330_s14 + $0x11c] ss:$28 sps:$4 sm:$0xff]  }
 0x494   :  { %4628 = vmatprep.subr.bf16.mxu0 %v8211_v31  ;;  %4669 = vmatprep.subr.bf16.mxu1 %v8214_v32  ;;  %v8293_v31 = vld [vmem:[%s11330_s14 + $0x118] ss:$28 sps:$4 sm:$0xff]   ;;  %v8335_v32 = vld [vmem:[%s11330_s14 + $0x508] ss:$28 sps:$4 sm:$0xff]  }
 0x497   :  { %4629 = vmatpush1.bf16.msra.mxu0 %v8209_v33  ;;  %4670 = vmatpush1.bf16.msra.mxu1 %v8212_v34  ;;  %v8337_v33 = vld [vmem:[%s11330_s14 + $0x50c] ss:$28 sps:$4 sm:$0xff]  }
 0x498   :  { %4630 = vmatprep.subr.bf16.mxu0 %v8217_v36  ;;  %4671 = vmatprep.subr.bf16.mxu1 %v8220_v37  ;;  %v8301_v34 = vld [vmem:[%s11330_s14 + $0xac] ss:$28 sps:$4 sm:$0xff]  }
 0x499   :  { %v8299_v36 = vld [vmem:[%s11330_s14 + $0xa8] ss:$28 sps:$4 sm:$0xff]   ;;  %v8341_v37 = vld [vmem:[%s11330_s14 + $0x4d0] ss:$28 sps:$4 sm:$0xff]  }
 0x49b   :  { %4631 = vmatpush1.bf16.msra.mxu0 %v8215_v38  ;;  %4672 = vmatpush1.bf16.msra.mxu1 %v8218_v39  ;;  %v8343_v38 = vld [vmem:[%s11330_s14 + $0x4d4] ss:$28 sps:$4 sm:$0xff]  }
 0x49c   :  { %4632 = vmatprep.subr.bf16.mxu0 %v8223_v40  ;;  %4673 = vmatprep.subr.bf16.mxu1 %v8226_v41  ;;  %v8304_v39 = vld [vmem:[%s11330_s14 + $0x74] ss:$28 sps:$4 sm:$0xff]  }
 0x49d   :  { %v8302_v40 = vld [vmem:[%s11330_s14 + $0x70] ss:$28 sps:$4 sm:$0xff]   ;;  %v8347_v41 = vld [vmem:[%s11330_s14 + $0x498] ss:$28 sps:$4 sm:$0xff]  }
 0x49f   :  { %4633 = vmatpush1.bf16.msra.mxu0 %v8221_v42  ;;  %4674 = vmatpush1.bf16.msra.mxu1 %v8224_v43  ;;  %v8349_v42 = vld [vmem:[%s11330_s14 + $0x49c] ss:$28 sps:$4 sm:$0xff]  }
 0x4a0   :  { %4634 = vmatprep.subr.bf16.mxu0 %v8229_v45  ;;  %4675 = vmatprep.subr.bf16.mxu1 %v8232_v46  ;;  %v8307_v43 = vld [vmem:[%s11330_s14 + $0x3c] ss:$28 sps:$4 sm:$0xff]  }
 0x4a1   :  { %v8305_v45 = vld [vmem:[%s11330_s14 + $0x38] ss:$28 sps:$4 sm:$0xff]   ;;  %v8353_v46 = vld [vmem:[%s11330_s14 + $0x460] ss:$28 sps:$4 sm:$0xff]  }
 0x4a3   :  { %4635 = vmatpush1.bf16.msra.mxu0 %v8227_v48  ;;  %4676 = vmatpush1.bf16.msra.mxu1 %v8230_v49  ;;  %v8355_v48 = vld [vmem:[%s11330_s14 + $0x464] ss:$28 sps:$4 sm:$0xff]  }
 0x4a4   :  { %4636 = vmatprep.subr.bf16.mxu0 %v8235_v16  ;;  %4677 = vmatprep.subr.bf16.mxu1 %v8238_v50  ;;  %v8310_v49 = vld [vmem:[%s11330_s14 + $0x4] ss:$28 sps:$4 sm:$0xff]  }
 0x4a5   :  { %v8308_v16 = vld [vmem:[%s11330_s14] ss:$28 sps:$4 sm:$0xff]   ;;  %v8359_v50 = vld [vmem:[%s11330_s14 + $0x428] ss:$28 sps:$4 sm:$0xff]  }
 0x4a7   :  { %4637 = vmatpush1.bf16.msra.mxu0 %v8233_v52  ;;  %4678 = vmatpush1.bf16.msra.mxu1 %v8236_v53  ;;  %v8361_v52 = vld [vmem:[%s11330_s14 + $0x42c] ss:$28 sps:$4 sm:$0xff]  }
 0x4a8   :  { %4638 = vmatprep.subr.bf16.mxu0 %v8241_v54  ;;  %4679 = vmatprep.subr.bf16.mxu1 %v8244_v55  ;;  %v8313_v53 = vld [vmem:[%s11330_s14 + $0x34c] ss:$28 sps:$4 sm:$0xff]  }
 0x4a9   :  { %v8311_v54 = vld [vmem:[%s11330_s14 + $0x348] ss:$28 sps:$4 sm:$0xff]   ;;  %v8365_v55 = vld [vmem:[%s11330_s14 + $0x3f0] ss:$28 sps:$4 sm:$0xff]  }
 0x4ab   :  { %4639 = vmatpush2.bf16.msra.mxu0 %v8239_v56  ;;  %4680 = vmatpush2.bf16.msra.mxu1 %v8242_v47  ;;  %v8367_v56 = vld [vmem:[%s11330_s14 + $0x3f4] ss:$28 sps:$4 sm:$0xff]  }
 0x4ac   :  { %4640 = vmatprep.subr.bf16.mxu0 %v8247_v57  ;;  %4681 = vmatprep.subr.bf16.mxu1 %v8250_v44  ;;  %v8316_v47 = vld [vmem:[%s11330_s14 + $0x314] ss:$28 sps:$4 sm:$0xff]  }
 0x4ad   :  { %v8314_v57 = vld [vmem:[%s11330_s14 + $0x310] ss:$28 sps:$4 sm:$0xff]   ;;  %v8371_v44 = vld [vmem:[%s11330_s14 + $0x3b8] ss:$28 sps:$4 sm:$0xff]  }
 0x4af   :  { %4641 = vmatpush2.bf16.msra.mxu0 %v8245_v15  ;;  %4682 = vmatpush2.bf16.msra.mxu1 %v8248_v58  ;;  %v8373_v15 = vld [vmem:[%s11330_s14 + $0x3bc] ss:$28 sps:$4 sm:$0xff]  }
 0x4b0   :  { %4642 = vmatprep.subr.bf16.mxu0 %v8253_v59  ;;  %4683 = vmatprep.subr.bf16.mxu1 %v8256_v6  ;;  %v8319_v58 = vld [vmem:[%s11330_s14 + $0x2dc] ss:$28 sps:$4 sm:$0xff]  }
 0x4b1   :  { %v8317_v59 = vld [vmem:[%s11330_s14 + $0x2d8] ss:$28 sps:$4 sm:$0xff]   ;;  %v8377_v6 = vld [vmem:[%s11330_s14 + $0x380] ss:$28 sps:$4 sm:$0xff]  }
 0x4b3   :  { %4643 = vmatpush2.bf16.msra.mxu0 %v8251_v60  ;;  %4684 = vmatpush2.bf16.msra.mxu1 %v8254_v61  ;;  %v8379_v60 = vld [vmem:[%s11330_s14 + $0x384] ss:$28 sps:$4 sm:$0xff]  }
 0x4b4   :  { %4644 = vmatprep.subr.bf16.mxu0 %v8259_v35  ;;  %4685 = vmatprep.subr.bf16.mxu1 %v8262_v4  ;;  %v8322_v61 = vld [vmem:[%s11330_s14 + $0x2a4] ss:$28 sps:$4 sm:$0xff]  }
 0x4b5   :  { %v8320_v35 = vld [vmem:[%s11330_s14 + $0x2a0] ss:$28 sps:$4 sm:$0xff]   ;;  %v8383_v4 = vld [vmem:[%s11330_s14 + $0x6c8] ss:$28 sps:$4 sm:$0xff]  }
 0x4b7   :  { %4645 = vmatpush2.bf16.msra.mxu0 %v8257_v5  ;;  %4686 = vmatpush2.bf16.msra.mxu1 %v8260_v8  ;;  %v8385_v5 = vld [vmem:[%s11330_s14 + $0x6cc] ss:$28 sps:$4 sm:$0xff]  }
 0x4b8   :  { %4646 = vmatprep.subr.bf16.mxu0 %v8265_v9  ;;  %4687 = vmatprep.subr.bf16.mxu1 %v8268_v10  ;;  %v8325_v8 = vld [vmem:[%s11330_s14 + $0x26c] ss:$28 sps:$4 sm:$0xff]  }
 0x4b9   :  { %v8323_v9 = vld [vmem:[%s11330_s14 + $0x268] ss:$28 sps:$4 sm:$0xff]   ;;  %v8389_v10 = vld [vmem:[%s11330_s14 + $0x690] ss:$28 sps:$4 sm:$0xff]  }
 0x4bb   :  { %4647 = vmatpush2.bf16.msra.mxu0 %v8263_v11  ;;  %4688 = vmatpush2.bf16.msra.mxu1 %v8266_v12  ;;  %v8391_v11 = vld [vmem:[%s11330_s14 + $0x694] ss:$28 sps:$4 sm:$0xff]  }
 0x4bc   :  { %4648 = vmatprep.subr.bf16.mxu0 %v8271_v13  ;;  %4689 = vmatprep.subr.bf16.mxu1 %v8274_v14  ;;  %v8328_v12 = vld [vmem:[%s11330_s14 + $0x234] ss:$28 sps:$4 sm:$0xff]  }
 0x4bd   :  { %v8326_v13 = vld [vmem:[%s11330_s14 + $0x230] ss:$28 sps:$4 sm:$0xff]   ;;  %v8395_v14 = vld [vmem:[%s11330_s14 + $0x658] ss:$28 sps:$4 sm:$0xff]  }
 0x4bf   :  { %4649 = vmatpush2.bf16.msra.mxu0 %v8269_v17  ;;  %4690 = vmatpush2.bf16.msra.mxu1 %v8272_v18  ;;  %v8397_v17 = vld [vmem:[%s11330_s14 + $0x65c] ss:$28 sps:$4 sm:$0xff]  }
 0x4c0   :  { %4650 = vmatprep.subr.bf16.mxu0 %v8277_v21  ;;  %4691 = vmatprep.subr.bf16.mxu1 %v8280_v24  ;;  %v8331_v18 = vld [vmem:[%s11330_s14 + $0x1fc] ss:$28 sps:$4 sm:$0xff]  }
 0x4c1   :  { %v8329_v21 = vld [vmem:[%s11330_s14 + $0x1f8] ss:$28 sps:$4 sm:$0xff]   ;;  %v8401_v24 = vld [vmem:[%s11330_s14 + $0x620] ss:$28 sps:$4 sm:$0xff]  }
 0x4c3   :  { %4651 = vmatpush2.bf16.msra.mxu0 %v8275_v25  ;;  %4692 = vmatpush2.bf16.msra.mxu1 %v8278_v26  ;;  %v8403_v25 = vld [vmem:[%s11330_s14 + $0x624] ss:$28 sps:$4 sm:$0xff]  }
 0x4c4   :  { %4652 = vmatprep.subr.bf16.mxu0 %v8283_v27  ;;  %4693 = vmatprep.subr.bf16.mxu1 %v8286_v51  ;;  %v8334_v26 = vld [vmem:[%s11330_s14 + $0x1c4] ss:$28 sps:$4 sm:$0xff]  }
 0x4c5   :  { %v8332_v27 = vld [vmem:[%s11330_s14 + $0x1c0] ss:$28 sps:$4 sm:$0xff]   ;;  %v8407_v51 = vld [vmem:[%s11330_s14 + $0x5e8] ss:$28 sps:$4 sm:$0xff]  }
 0x4c7   :  { %4653 = vmatpush2.bf16.msra.mxu0 %v8281_v19  ;;  %4694 = vmatpush2.bf16.msra.mxu1 %v8284_v23  ;;  %v8409_v19 = vld [vmem:[%s11330_s14 + $0x5ec] ss:$28 sps:$4 sm:$0xff]   ;;  %v8340_v23 = vld [vmem:[%s11330_s14 + $0x194] ss:$28 sps:$4 sm:$0xff]  }
 0x4c8   :  { %6157 = vmatprep.subr.bf16.mxu0 %v8289_v2  ;;  %6198 = vmatprep.subr.bf16.mxu1 %v8337_v33  ;;  %v8413_v2 = vld [vmem:[%s11330_s14 + $0x5b0] ss:$28 sps:$4 sm:$0xff]  }
 0x4ca   :  { %4655 = vmatmul.mubr.bf16.vlgmr.msra.gmra.mxu0 %v10393_v22  ;;  %4696 = vmatmul.mubr.bf16.vlgmr.msra.gmra.mxu1 %v10395_v20  ;;  %v8298_v22 = vld [vmem:[%s11330_s14 + $0xe4] ss:$28 sps:$4 sm:$0xff]  }
 0x4cb   :  { %6158 = vmatpush1.bf16.msra.mxu0 %v8287_v28  ;;  %v8296_v20 = vld [vmem:[%s11330_s14 + $0xe0] ss:$28 sps:$4 sm:$0xff]   ;;  %6199 = vmatpush1.bf16.msra.mxu1 %v8335_v32  ;;  %v8415_v28 = vld [vmem:[%s11330_s14 + $0x5b4] ss:$28 sps:$4 sm:$0xff]  }
 0x4cc   :  { %6159 = vmatprep.subr.bf16.mxu0 %v8292_v7  ;;  %6200 = vmatprep.subr.bf16.mxu1 %v8343_v38  ;;  %v8421_v7 = vld [vmem:[%s11330_s14 + $0x57c] ss:$28 sps:$4 sm:$0xff]  }
 0x4cf   :  { %6160 = vmatpush1.bf16.msra.mxu0 %v8290_v29  ;;  %6201 = vmatpush1.bf16.msra.mxu1 %v8341_v37  ;;  %v8419_v29 = vld [vmem:[%s11330_s14 + $0x578] ss:$28 sps:$4 sm:$0xff]  }
 0x4d0   :  { %6161 = vmatprep.subr.bf16.mxu0 %v8295_v30  ;;  %6202 = vmatprep.subr.bf16.mxu1 %v8349_v42  ;;  %v8427_v30 = vld [vmem:[%s11330_s14 + $0x544] ss:$28 sps:$4 sm:$0xff]  }
 0x4d3   :  { %6162 = vmatpush1.bf16.msra.mxu0 %v8293_v31  ;;  %6203 = vmatpush1.bf16.msra.mxu1 %v8347_v41  ;;  %v8425_v31 = vld [vmem:[%s11330_s14 + $0x540] ss:$28 sps:$4 sm:$0xff]  }
 0x4d4   :  { %6163 = vmatprep.subr.bf16.mxu0 %v8298_v22  ;;  %6204 = vmatprep.subr.bf16.mxu1 %v8355_v48  ;;  %v8433_v22 = vld [vmem:[%s11330_s14 + $0x514] ss:$28 sps:$4 sm:$0xff]  }
 0x4d7   :  { %6164 = vmatpush1.bf16.msra.mxu0 %v8296_v20  ;;  %6205 = vmatpush1.bf16.msra.mxu1 %v8353_v46  ;;  %v10776_v20 = vld [vmem:[%s11332_s13] sm:$0xf] }
 0x4d8   :  { %6165 = vmatprep.subr.bf16.mxu0 %v8301_v34  ;;  %6206 = vmatprep.subr.bf16.mxu1 %v8361_v52  ;;  %v3883_v32 = vrot.slane %v10776_v20, %v9639_v1  ;;  %v3887_v33 = vrot.slane %v10776_v20, %v9647_v3  ;;  %v8338_v52 = vld [vmem:[%s11330_s14 + $0x190] ss:$28 sps:$4 sm:$0xff]  }
 0x4db   :  { %6166 = vmatpush1.bf16.msra.mxu0 %v8299_v36  ;;  %6207 = vmatpush1.bf16.msra.mxu1 %v8359_v50 }
 0x4dc   :  { %6167 = vmatprep.subr.bf16.mxu0 %v8304_v39  ;;  %6208 = vmatprep.subr.bf16.mxu1 %v8367_v56  ;;  %v8352_v56 = vld [vmem:[%s11330_s14 + $0x124] ss:$28 sps:$4 sm:$0xff]  }
 0x4df   :  { %6168 = vmatpush1.bf16.msra.mxu0 %v8302_v40  ;;  %6209 = vmatpush1.bf16.msra.mxu1 %v8365_v55  ;;  %v8344_v55 = vld [vmem:[%s11330_s14 + $0x158] ss:$28 sps:$4 sm:$0xff]  }
 0x4e0   :  { %6169 = vmatprep.subr.bf16.mxu0 %v8307_v43  ;;  %6210 = vmatprep.subr.bf16.mxu1 %v8373_v15  ;;  %v8364_v15 = vld [vmem:[%s11330_s14 + $0xb4] ss:$28 sps:$4 sm:$0xff]  }
 0x4e3   :  { %6170 = vmatpush1.bf16.msra.mxu0 %v8305_v45  ;;  %6211 = vmatpush1.bf16.msra.mxu1 %v8371_v44  ;;  %v8356_v44 = vld [vmem:[%s11330_s14 + $0xe8] ss:$28 sps:$4 sm:$0xff]  }
 0x4e4   :  { %6171 = vmatprep.subr.bf16.mxu0 %v8310_v49  ;;  %6212 = vmatprep.subr.bf16.mxu1 %v8379_v60  ;;  %v8376_v60 = vld [vmem:[%s11330_s14 + $0x44] ss:$28 sps:$4 sm:$0xff]  }
 0x4e7   :  { %6172 = vmatpush1.bf16.msra.mxu0 %v8308_v16  ;;  %6213 = vmatpush1.bf16.msra.mxu1 %v8377_v6  ;;  %v8368_v6 = vld [vmem:[%s11330_s14 + $0x78] ss:$28 sps:$4 sm:$0xff]  }
 0x4e8   :  { %6173 = vmatprep.subr.bf16.mxu0 %v8313_v53  ;;  %6214 = vmatprep.subr.bf16.mxu1 %v8385_v5  ;;  %v8388_v5 = vld [vmem:[%s11330_s14 + $0x354] ss:$28 sps:$4 sm:$0xff]  }
 0x4eb   :  { %6174 = vmatpush2.bf16.msra.mxu0 %v8311_v54  ;;  %6215 = vmatpush2.bf16.msra.mxu1 %v8383_v4  ;;  %v8346_v54 = vld [vmem:[%s11330_s14 + $0x15c] ss:$28 sps:$4 sm:$0xff]   ;;  %v8380_v4 = vld [vmem:[%s11330_s14 + $0x8] ss:$28 sps:$4 sm:$0xff]  }
 0x4ec   :  { %6175 = vmatprep.subr.bf16.mxu0 %v8316_v47  ;;  %6216 = vmatprep.subr.bf16.mxu1 %v8391_v11  ;;  %v8350_v47 = vld [vmem:[%s11330_s14 + $0x120] ss:$28 sps:$4 sm:$0xff]  }
 0x4ed   :  { %v8400_v11 = vld [vmem:[%s11330_s14 + $0x2e4] ss:$28 sps:$4 sm:$0xff]  }
 0x4ef   :  { %6176 = vmatpush2.bf16.msra.mxu0 %v8314_v57  ;;  %6217 = vmatpush2.bf16.msra.mxu1 %v8389_v10  ;;  %v8358_v57 = vld [vmem:[%s11330_s14 + $0xec] ss:$28 sps:$4 sm:$0xff]   ;;  %v8392_v10 = vld [vmem:[%s11330_s14 + $0x318] ss:$28 sps:$4 sm:$0xff]  }
 0x4f0   :  { %6177 = vmatprep.subr.bf16.mxu0 %v8319_v58  ;;  %6218 = vmatprep.subr.bf16.mxu1 %v8397_v17  ;;  %v8362_v58 = vld [vmem:[%s11330_s14 + $0xb0] ss:$28 sps:$4 sm:$0xff]  }
 0x4f1   :  { %v8412_v17 = vld [vmem:[%s11330_s14 + $0x274] ss:$28 sps:$4 sm:$0xff]  }
 0x4f3   :  { %6178 = vmatpush2.bf16.msra.mxu0 %v8317_v59  ;;  %6219 = vmatpush2.bf16.msra.mxu1 %v8395_v14  ;;  %v8370_v59 = vld [vmem:[%s11330_s14 + $0x7c] ss:$28 sps:$4 sm:$0xff]   ;;  %v8404_v14 = vld [vmem:[%s11330_s14 + $0x2a8] ss:$28 sps:$4 sm:$0xff]  }
 0x4f4   :  { %6179 = vmatprep.subr.bf16.mxu0 %v8322_v61  ;;  %6220 = vmatprep.subr.bf16.mxu1 %v8403_v25  ;;  %v8374_v61 = vld [vmem:[%s11330_s14 + $0x40] ss:$28 sps:$4 sm:$0xff]   ;;  %v8416_v25 = vld [vmem:[%s11330_s14 + $0x238] ss:$28 sps:$4 sm:$0xff]  }
 0x4f7   :  { %6180 = vmatpush2.bf16.msra.mxu0 %v8320_v35  ;;  %6221 = vmatpush2.bf16.msra.mxu1 %v8401_v24  ;;  %v8382_v35 = vld [vmem:[%s11330_s14 + $0xc] ss:$28 sps:$4 sm:$0xff]   ;;  %v3891_v24 = vrot.slane %v10776_v20, %v9755_v62 }
 0x4f8   :  { %6181 = vmatprep.subr.bf16.mxu0 %v8325_v8  ;;  %6222 = vmatprep.subr.bf16.mxu1 %v8409_v19  ;;  %v8386_v8 = vld [vmem:[%s11330_s14 + $0x350] ss:$28 sps:$4 sm:$0xff]  }
 0x4fb   :  { %6182 = vmatpush2.bf16.msra.mxu0 %v8323_v9  ;;  %6223 = vmatpush2.bf16.msra.mxu1 %v8407_v51  ;;  %v8394_v9 = vld [vmem:[%s11330_s14 + $0x31c] ss:$28 sps:$4 sm:$0xff]  }
 0x4fc   :  { %6183 = vmatprep.subr.bf16.mxu0 %v8328_v12  ;;  %6224 = vmatprep.subr.bf16.mxu1 %v8415_v28  ;;  %v8398_v12 = vld [vmem:[%s11330_s14 + $0x2e0] ss:$28 sps:$4 sm:$0xff]  }
 0x4ff   :  { %6184 = vmatpush2.bf16.msra.mxu0 %v8326_v13  ;;  %6225 = vmatpush2.bf16.msra.mxu1 %v8413_v2  ;;  %v8406_v13 = vld [vmem:[%s11330_s14 + $0x2ac] ss:$28 sps:$4 sm:$0xff]   ;;  %v8422_v2 = vld [vmem:[%s11330_s14 + $0x200] ss:$28 sps:$4 sm:$0xff]  }
 0x500   :  { %6185 = vmatprep.subr.bf16.mxu0 %v8331_v18  ;;  %6226 = vmatprep.subr.bf16.mxu1 %v8421_v7  ;;  %v8410_v18 = vld [vmem:[%s11330_s14 + $0x270] ss:$28 sps:$4 sm:$0xff]  }
 0x503   :  { %6186 = vmatpush2.bf16.msra.mxu0 %v8329_v21  ;;  %6227 = vmatpush2.bf16.msra.mxu1 %v8419_v29  ;;  %v8418_v21 = vld [vmem:[%s11330_s14 + $0x23c] ss:$28 sps:$4 sm:$0xff]   ;;  %v8430_v29 = vld [vmem:[%s11330_s14 + $0x1cc] ss:$28 sps:$4 sm:$0xff]  }
 0x504   :  { %6187 = vmatprep.subr.bf16.mxu0 %v8334_v26  ;;  %6228 = vmatprep.subr.bf16.mxu1 %v8427_v30  ;;  %v8424_v26 = vld [vmem:[%s11330_s14 + $0x204] ss:$28 sps:$4 sm:$0xff]  }
 0x507   :  { %6188 = vmatpush2.bf16.msra.mxu0 %v8332_v27  ;;  %6229 = vmatpush2.bf16.msra.mxu1 %v8425_v31  ;;  %v3895_v27 = vrot.slane %v10776_v20, %v9758_v63 }
 0x508   :  { %6239 = vmatprep.subr.bf16.mxu0 %v8340_v23  ;;  %6280 = vmatprep.subr.bf16.mxu1 %v8433_v22 }
 0x54a   :  { %v4574_v34 = vpop.f32.mrf.mxu0  ;;  %v4615_v36 = vpop.f32.mrf.mxu1 }
 0x54b   :  { %v4575_v37 = vadd.f32 %v4574_v34, %v3883_v32 }
 0x54c   :  { %v4576_v38 = vpop.f32.mrf.mxu0  ;;  %v4617_v39 = vpop.f32.mrf.mxu1 }
 0x54d   :  { %v4616_v40 = vadd.f32 %v4615_v36, %v4575_v37  ;;  %v4577_v41 = vadd.f32 %v4576_v38, %v3887_v33  ;;  %v8428_v33 = vld [vmem:[%s11330_s14 + $0x1c8] ss:$28 sps:$4 sm:$0xff]   ;;  %v8436_v38 = vld [vmem:[%s11330_s14 + $0x19c] ss:$28 sps:$4 sm:$0xff]  }
 0x54e   :  { %v4578_v42 = vpop.f32.mrf.mxu0  ;;  %v4619_v43 = vpop.f32.mrf.mxu1 }
 0x54f   :  { %v4618_v45 = vadd.f32 %v4617_v39, %v4577_v41  ;;  %v4704_v46 = vmax.f32 %v4616_v40, 0.0  ;;  %v8431_v41 = vld [vmem:[%s11330_s14 + $0x510] ss:$28 sps:$4 sm:$0xff]   ;;  %v8434_v43 = vld [vmem:[%s11330_s14 + $0x198] ss:$28 sps:$4 sm:$0xff]  }
 0x550   :  { %v4579_v48 = vpop.f32.mrf.mxu0  ;;  %v4620_v49 = vpop.f32.mrf.mxu1 }
 0x551   :  { %v4705_v16 = vmax.f32 %v4618_v45, 0.0  ;;  %v10787_v53 = vpack.c.bf16 %v4704_v46, %v4704_v46  ;;  %v8439_v45 = vld [vmem:[%s11330_s14 + $0x4dc] ss:$28 sps:$4 sm:$0xff]   ;;  %v8442_v46 = vld [vmem:[%s11330_s14 + $0x164] ss:$28 sps:$4 sm:$0xff]  }
 0x552   :  { %v8437_v48 = vld [vmem:[%s11330_s14 + $0x4d8] ss:$28 sps:$4 sm:$0xff]   ;;  %v8440_v49 = vld [vmem:[%s11330_s14 + $0x160] ss:$28 sps:$4 sm:$0xff]  }
 0x553   :  { %v10782_v50 = vpack.c.bf16 %v4705_v16, %v4705_v16  ;;  %v8445_v16 = vld [vmem:[%s11330_s14 + $0x4a4] ss:$28 sps:$4 sm:$0xff]  }
 0x555   :  { %6189 = vmatprep.mubr.bf16.mxu0 %v10782_v50 }
 0x556   :  { %6190 = vmatmul.mubr.bf16.vlgmr.msra.gmra.mxu0 %v10787_v53 }
 0x557   :  { %6240 = vmatpush1.bf16.msra.mxu0 %v8338_v52  ;;  %6271 = vmatprep.mubr.bf16.mxu0 %v10782_v50  ;;  %v8448_v52 = vld [vmem:[%s11330_s14 + $0x12c] ss:$28 sps:$4 sm:$0xff]  }
 0x558   :  { %6241 = vmatprep.subr.bf16.mxu0 %v8346_v54  ;;  %v8443_v54 = vld [vmem:[%s11330_s14 + $0x4a0] ss:$28 sps:$4 sm:$0xff]  }
 0x55b   :  { %6242 = vmatpush1.bf16.msra.mxu0 %v8344_v55  ;;  %v8446_v55 = vld [vmem:[%s11330_s14 + $0x128] ss:$28 sps:$4 sm:$0xff]  }
 0x55c   :  { %6243 = vmatprep.subr.bf16.mxu0 %v8352_v56  ;;  %v8451_v56 = vld [vmem:[%s11330_s14 + $0x46c] ss:$28 sps:$4 sm:$0xff]  }
 0x55f   :  { %6244 = vmatpush1.bf16.msra.mxu0 %v8350_v47  ;;  %v8454_v47 = vld [vmem:[%s11330_s14 + $0xf4] ss:$28 sps:$4 sm:$0xff]  }
 0x560   :  { %6245 = vmatprep.subr.bf16.mxu0 %v8358_v57  ;;  %v8449_v57 = vld [vmem:[%s11330_s14 + $0x468] ss:$28 sps:$4 sm:$0xff]  }
 0x563   :  { %6246 = vmatpush1.bf16.msra.mxu0 %v8356_v44  ;;  %v8452_v44 = vld [vmem:[%s11330_s14 + $0xf0] ss:$28 sps:$4 sm:$0xff]  }
 0x564   :  { %6247 = vmatprep.subr.bf16.mxu0 %v8364_v15  ;;  %v8457_v15 = vld [vmem:[%s11330_s14 + $0x434] ss:$28 sps:$4 sm:$0xff]  }
 0x567   :  { %6248 = vmatpush1.bf16.msra.mxu0 %v8362_v58  ;;  %v8460_v58 = vld [vmem:[%s11330_s14 + $0xbc] ss:$28 sps:$4 sm:$0xff]  }
 0x568   :  { %6249 = vmatprep.subr.bf16.mxu0 %v8370_v59  ;;  %v8455_v59 = vld [vmem:[%s11330_s14 + $0x430] ss:$28 sps:$4 sm:$0xff]  }
 0x56b   :  { %6250 = vmatpush1.bf16.msra.mxu0 %v8368_v6  ;;  %v8458_v6 = vld [vmem:[%s11330_s14 + $0xb8] ss:$28 sps:$4 sm:$0xff]  }
 0x56c   :  { %6251 = vmatprep.subr.bf16.mxu0 %v8376_v60  ;;  %v8463_v60 = vld [vmem:[%s11330_s14 + $0x3fc] ss:$28 sps:$4 sm:$0xff]  }
 0x56f   :  { %6252 = vmatpush1.bf16.msra.mxu0 %v8374_v61  ;;  %v8466_v61 = vld [vmem:[%s11330_s14 + $0x84] ss:$28 sps:$4 sm:$0xff]  }
 0x570   :  { %6253 = vmatprep.subr.bf16.mxu0 %v8382_v35  ;;  %v8461_v35 = vld [vmem:[%s11330_s14 + $0x3f8] ss:$28 sps:$4 sm:$0xff]  }
 0x573   :  { %6254 = vmatpush1.bf16.msra.mxu0 %v8380_v4  ;;  %v8464_v4 = vld [vmem:[%s11330_s14 + $0x80] ss:$28 sps:$4 sm:$0xff]  }
 0x574   :  { %6255 = vmatprep.subr.bf16.mxu0 %v8388_v5  ;;  %v8469_v5 = vld [vmem:[%s11330_s14 + $0x3c4] ss:$28 sps:$4 sm:$0xff]  }
 0x577   :  { %6256 = vmatpush2.bf16.msra.mxu0 %v8386_v8  ;;  %v8472_v8 = vld [vmem:[%s11330_s14 + $0x4c] ss:$28 sps:$4 sm:$0xff]  }
 0x578   :  { %6257 = vmatprep.subr.bf16.mxu0 %v8394_v9  ;;  %v8467_v9 = vld [vmem:[%s11330_s14 + $0x3c0] ss:$28 sps:$4 sm:$0xff]  }
 0x57b   :  { %6258 = vmatpush2.bf16.msra.mxu0 %v8392_v10  ;;  %v8470_v10 = vld [vmem:[%s11330_s14 + $0x48] ss:$28 sps:$4 sm:$0xff]  }
 0x57c   :  { %6259 = vmatprep.subr.bf16.mxu0 %v8400_v11  ;;  %v8475_v11 = vld [vmem:[%s11330_s14 + $0x38c] ss:$28 sps:$4 sm:$0xff]  }
 0x57f   :  { %6260 = vmatpush2.bf16.msra.mxu0 %v8398_v12  ;;  %v8478_v12 = vld [vmem:[%s11330_s14 + $0x14] ss:$28 sps:$4 sm:$0xff]  }
 0x580   :  { %6261 = vmatprep.subr.bf16.mxu0 %v8406_v13  ;;  %v8473_v13 = vld [vmem:[%s11330_s14 + $0x388] ss:$28 sps:$4 sm:$0xff]  }
 0x583   :  { %6262 = vmatpush2.bf16.msra.mxu0 %v8404_v14  ;;  %v8476_v14 = vld [vmem:[%s11330_s14 + $0x10] ss:$28 sps:$4 sm:$0xff]  }
 0x584   :  { %6263 = vmatprep.subr.bf16.mxu0 %v8412_v17  ;;  %v8481_v17 = vld [vmem:[%s11330_s14 + $0x6d4] ss:$28 sps:$4 sm:$0xff]  }
 0x587   :  { %6264 = vmatpush2.bf16.msra.mxu0 %v8410_v18  ;;  %v8484_v18 = vld [vmem:[%s11330_s14 + $0x35c] ss:$28 sps:$4 sm:$0xff]  }
 0x588   :  { %6265 = vmatprep.subr.bf16.mxu0 %v8418_v21  ;;  %v8479_v21 = vld [vmem:[%s11330_s14 + $0x6d0] ss:$28 sps:$4 sm:$0xff]  }
 0x58a   :  { %v4656_v51 = vpop.f32.mrf.mxu0  ;;  %v4697_v19 = vpop.f32.mrf.mxu1 }
 0x58b   :  { %v4657_v23 = vadd.f32 %v4656_v51, %v3891_v24  ;;  %6266 = vmatpush2.bf16.msra.mxu0 %v8416_v25  ;;  %v8482_v24 = vld [vmem:[%s11330_s14 + $0x358] ss:$28 sps:$4 sm:$0xff]   ;;  %v8488_v51 = vld [vmem:[%s11330_s14 + $0x320] ss:$28 sps:$4 sm:$0xff]  }
 0x58c   :  { %v4658_v28 = vpop.f32.mrf.mxu0  ;;  %v4699_v7 = vpop.f32.mrf.mxu1  ;;  %6267 = vmatprep.subr.bf16.mxu0 %v8424_v26  ;;  %v8487_v25 = vld [vmem:[%s11330_s14 + $0x69c] ss:$28 sps:$4 sm:$0xff]   ;;  %v8490_v26 = vld [vmem:[%s11330_s14 + $0x324] ss:$28 sps:$4 sm:$0xff]  }
 0x58d   :  { %v4698_v30 = vadd.f32 %v4697_v19, %v4657_v23  ;;  %v4659_v31 = vadd.f32 %v4658_v28, %v3895_v27  ;;  %v8485_v27 = vld [vmem:[%s11330_s14 + $0x698] ss:$28 sps:$4 sm:$0xff]   ;;  %v8493_v19 = vld [vmem:[%s11330_s14 + $0x664] ss:$28 sps:$4 sm:$0xff]   ;;  %v8496_v23 = vld [vmem:[%s11330_s14 + $0x2ec] ss:$28 sps:$4 sm:$0xff]  }
 0x58e   :  { %v4660_v22 = vpop.f32.mrf.mxu0  ;;  %v4701_v32 = vpop.f32.mrf.mxu1  ;;  %v8494_v28 = vld [vmem:[%s11330_s14 + $0x2e8] ss:$28 sps:$4 sm:$0xff]  }
 0x58f   :  { %v4700_v20 = vadd.f32 %v4699_v7, %v4659_v31  ;;  %6268 = vmatpush2.bf16.msra.mxu0 %v8422_v2  ;;  %v4706_v34 = vmax.f32 %v4698_v30, 0.0  ;;  %v8491_v2 = vld [vmem:[%s11330_s14 + $0x660] ss:$28 sps:$4 sm:$0xff]   ;;  %v8499_v7 = vld [vmem:[%s11330_s14 + $0x62c] ss:$28 sps:$4 sm:$0xff]  }
 0x590   :  { %v4661_v36 = vpop.f32.mrf.mxu0  ;;  %v4702_v37 = vpop.f32.mrf.mxu1  ;;  %6269 = vmatprep.subr.bf16.mxu0 %v8430_v29  ;;  %v8502_v29 = vld [vmem:[%s11330_s14 + $0x2b4] ss:$28 sps:$4 sm:$0xff]   ;;  %v8497_v30 = vld [vmem:[%s11330_s14 + $0x628] ss:$28 sps:$4 sm:$0xff]   ;;  %v8508_v32 = vld [vmem:[%s11330_s14 + $0x27c] ss:$28 sps:$4 sm:$0xff]  }
 0x591   :  { %v4707_v39 = vmax.f32 %v4700_v20, 0.0  ;;  %v10894_v42 = vpack.c.bf16 %v4706_v34, %v4706_v34  ;;  %v8500_v31 = vld [vmem:[%s11330_s14 + $0x2b0] ss:$28 sps:$4 sm:$0xff]   ;;  %v8511_v34 = vld [vmem:[%s11330_s14 + $0x5bc] ss:$28 sps:$4 sm:$0xff]  }
 0x592   :  { %v8505_v22 = vld [vmem:[%s11330_s14 + $0x5f4] ss:$28 sps:$4 sm:$0xff]   ;;  %v8514_v36 = vld [vmem:[%s11330_s14 + $0x244] ss:$28 sps:$4 sm:$0xff]  }
 0x593   :  { %v10889_v40 = vpack.c.bf16 %v4707_v39, %v4707_v39  ;;  %6270 = vmatpush2.bf16.msra.mxu0 %v8428_v33  ;;  %v8503_v20 = vld [vmem:[%s11330_s14 + $0x5f0] ss:$28 sps:$4 sm:$0xff]   ;;  %v8506_v33 = vld [vmem:[%s11330_s14 + $0x278] ss:$28 sps:$4 sm:$0xff]   ;;  %v8517_v39 = vld [vmem:[%s11330_s14 + $0x584] ss:$28 sps:$4 sm:$0xff]  }
 0x594   :  { %6321 = vmatprep.subr.bf16.mxu0 %v8436_v38  ;;  %v8509_v37 = vld [vmem:[%s11330_s14 + $0x5b8] ss:$28 sps:$4 sm:$0xff]   ;;  %v8512_v38 = vld [vmem:[%s11330_s14 + $0x240] ss:$28 sps:$4 sm:$0xff]  }
 0x595   :  { %6230 = vmatprep.mubr.bf16.mxu1 %v10889_v40 }
 0x596   :  { %6231 = vmatmul.mubr.bf16.vlgmr.msra.gmra.mxu1 %v10894_v42  ;;  %6272 = vmatmul.mubr.bf16.vlgmr.msra.gmra.mxu0 %v10787_v53 }
 0x597   :  { %6281 = vmatpush1.bf16.msra.mxu1 %v8431_v41  ;;  %6312 = vmatprep.mubr.bf16.mxu1 %v10889_v40  ;;  %v8520_v41 = vld [vmem:[%s11330_s14 + $0x20c] ss:$28 sps:$4 sm:$0xff]  }
 0x598   :  { %6322 = vmatpush1.bf16.msra.mxu0 %v8434_v43  ;;  %6353 = vmatprep.mubr.bf16.mxu0 %v10782_v50  ;;  %v8515_v43 = vld [vmem:[%s11330_s14 + $0x580] ss:$28 sps:$4 sm:$0xff]  }
 0x599   :  { %6282 = vmatprep.subr.bf16.mxu1 %v8439_v45  ;;  %6323 = vmatprep.subr.bf16.mxu0 %v8442_v46  ;;  %v8518_v45 = vld [vmem:[%s11330_s14 + $0x208] ss:$28 sps:$4 sm:$0xff]  }
 0x59a   :  { %v8523_v46 = vld [vmem:[%s11330_s14 + $0x54c] ss:$28 sps:$4 sm:$0xff]  }
 0x59b   :  { %6283 = vmatpush1.bf16.msra.mxu1 %v8437_v48  ;;  %v8526_v48 = vld [vmem:[%s11330_s14 + $0x1d4] ss:$28 sps:$4 sm:$0xff]  }
 0x59c   :  { %6324 = vmatpush1.bf16.msra.mxu0 %v8440_v49  ;;  %6284 = vmatprep.subr.bf16.mxu1 %v8445_v16  ;;  %v8521_v49 = vld [vmem:[%s11330_s14 + $0x548] ss:$28 sps:$4 sm:$0xff]   ;;  %v8524_v16 = vld [vmem:[%s11330_s14 + $0x1d0] ss:$28 sps:$4 sm:$0xff]  }
 0x59d   :  { %6325 = vmatprep.subr.bf16.mxu0 %v8448_v52  ;;  %v8529_v52 = vld [vmem:[%s11330_s14 + $0x51c] ss:$28 sps:$4 sm:$0xff]  }
 0x59f   :  { %6285 = vmatpush1.bf16.msra.mxu1 %v8443_v54  ;;  %v8530_v54 = vld [vmem:[%s11330_s14 + $0x360] ss:$28 sps:$4 sm:$0xff]  }
 0x5a0   :  { %6326 = vmatpush1.bf16.msra.mxu0 %v8446_v55  ;;  %6286 = vmatprep.subr.bf16.mxu1 %v8451_v56  ;;  %v8527_v55 = vld [vmem:[%s11330_s14 + $0x518] ss:$28 sps:$4 sm:$0xff]   ;;  %v8531_v56 = vld [vmem:[%s11330_s14 + $0x1a0] ss:$28 sps:$4 sm:$0xff]  }
 0x5a1   :  { %6327 = vmatprep.subr.bf16.mxu0 %v8454_v47  ;;  %v8534_v47 = vld [vmem:[%s11330_s14 + $0x4e4] ss:$28 sps:$4 sm:$0xff]  }
 0x5a3   :  { %6287 = vmatpush1.bf16.msra.mxu1 %v8449_v57  ;;  %v8535_v57 = vld [vmem:[%s11330_s14 + $0x328] ss:$28 sps:$4 sm:$0xff]  }
 0x5a4   :  { %6328 = vmatpush1.bf16.msra.mxu0 %v8452_v44  ;;  %6288 = vmatprep.subr.bf16.mxu1 %v8457_v15  ;;  %v8532_v44 = vld [vmem:[%s11330_s14 + $0x4e0] ss:$28 sps:$4 sm:$0xff]   ;;  %v8536_v15 = vld [vmem:[%s11330_s14 + $0x168] ss:$28 sps:$4 sm:$0xff]  }
 0x5a5   :  { %6329 = vmatprep.subr.bf16.mxu0 %v8460_v58  ;;  %v8539_v58 = vld [vmem:[%s11330_s14 + $0x4ac] ss:$28 sps:$4 sm:$0xff]  }
 0x5a7   :  { %6289 = vmatpush1.bf16.msra.mxu1 %v8455_v59  ;;  %v8540_v59 = vld [vmem:[%s11330_s14 + $0x2f0] ss:$28 sps:$4 sm:$0xff]  }
 0x5a8   :  { %6330 = vmatpush1.bf16.msra.mxu0 %v8458_v6  ;;  %6290 = vmatprep.subr.bf16.mxu1 %v8463_v60  ;;  %v8537_v6 = vld [vmem:[%s11330_s14 + $0x4a8] ss:$28 sps:$4 sm:$0xff]   ;;  %v8541_v60 = vld [vmem:[%s11330_s14 + $0x130] ss:$28 sps:$4 sm:$0xff]  }
 0x5a9   :  { %6331 = vmatprep.subr.bf16.mxu0 %v8466_v61  ;;  %v8545_v61 = vld [vmem:[%s11330_s14 + $0x2b8] ss:$28 sps:$4 sm:$0xff]  }
 0x5ab   :  { %6291 = vmatpush1.bf16.msra.mxu1 %v8461_v35  ;;  %v8542_v35 = vld [vmem:[%s11330_s14 + $0x470] ss:$28 sps:$4 sm:$0xff]  }
 0x5ac   :  { %6332 = vmatpush1.bf16.msra.mxu0 %v8464_v4  ;;  %6292 = vmatprep.subr.bf16.mxu1 %v8469_v5  ;;  %v8546_v4 = vld [vmem:[%s11330_s14 + $0xf8] ss:$28 sps:$4 sm:$0xff]  }
 0x5ad   :  { %6333 = vmatprep.subr.bf16.mxu0 %v8472_v8  ;;  %v8549_v5 = vld [vmem:[%s11330_s14 + $0x43c] ss:$28 sps:$4 sm:$0xff]  }
 0x5ae   :  { %v8550_v8 = vld [vmem:[%s11330_s14 + $0x280] ss:$28 sps:$4 sm:$0xff]  }
 0x5af   :  { %6293 = vmatpush1.bf16.msra.mxu1 %v8467_v9  ;;  %v8547_v9 = vld [vmem:[%s11330_s14 + $0x438] ss:$28 sps:$4 sm:$0xff]  }
 0x5b0   :  { %6334 = vmatpush1.bf16.msra.mxu0 %v8470_v10  ;;  %6294 = vmatprep.subr.bf16.mxu1 %v8475_v11  ;;  %v8551_v10 = vld [vmem:[%s11330_s14 + $0xc0] ss:$28 sps:$4 sm:$0xff]  }
 0x5b1   :  { %6335 = vmatprep.subr.bf16.mxu0 %v8478_v12  ;;  %v8554_v11 = vld [vmem:[%s11330_s14 + $0x404] ss:$28 sps:$4 sm:$0xff]  }
 0x5b2   :  { %v8555_v12 = vld [vmem:[%s11330_s14 + $0x248] ss:$28 sps:$4 sm:$0xff]  }
 0x5b3   :  { %6295 = vmatpush1.bf16.msra.mxu1 %v8473_v13  ;;  %v8552_v13 = vld [vmem:[%s11330_s14 + $0x400] ss:$28 sps:$4 sm:$0xff]  }
 0x5b4   :  { %6336 = vmatpush1.bf16.msra.mxu0 %v8476_v14  ;;  %6296 = vmatprep.subr.bf16.mxu1 %v8481_v17  ;;  %v8556_v14 = vld [vmem:[%s11330_s14 + $0x88] ss:$28 sps:$4 sm:$0xff]  }
 0x5b5   :  { %6337 = vmatprep.subr.bf16.mxu0 %v8484_v18  ;;  %v8559_v17 = vld [vmem:[%s11330_s14 + $0x3cc] ss:$28 sps:$4 sm:$0xff]  }
 0x5b6   :  { %v8560_v18 = vld [vmem:[%s11330_s14 + $0x210] ss:$28 sps:$4 sm:$0xff]  }
 0x5b7   :  { %6297 = vmatpush2.bf16.msra.mxu1 %v8479_v21  ;;  %v8557_v21 = vld [vmem:[%s11330_s14 + $0x3c8] ss:$28 sps:$4 sm:$0xff]  }
 0x5b8   :  { %6338 = vmatpush2.bf16.msra.mxu0 %v8482_v24  ;;  %6298 = vmatprep.subr.bf16.mxu1 %v8487_v25  ;;  %v8561_v24 = vld [vmem:[%s11330_s14 + $0x50] ss:$28 sps:$4 sm:$0xff]  }
 0x5b9   :  { %6339 = vmatprep.subr.bf16.mxu0 %v8490_v26  ;;  %v8564_v25 = vld [vmem:[%s11330_s14 + $0x394] ss:$28 sps:$4 sm:$0xff]  }
 0x5ba   :  { %v8565_v26 = vld [vmem:[%s11330_s14 + $0x1d8] ss:$28 sps:$4 sm:$0xff]  }
 0x5bb   :  { %6299 = vmatpush2.bf16.msra.mxu1 %v8485_v27  ;;  %v8562_v27 = vld [vmem:[%s11330_s14 + $0x390] ss:$28 sps:$4 sm:$0xff]  }
 0x5bc   :  { %6340 = vmatpush2.bf16.msra.mxu0 %v8488_v51  ;;  %6300 = vmatprep.subr.bf16.mxu1 %v8493_v19  ;;  %v8566_v51 = vld [vmem:[%s11330_s14 + $0x18] ss:$28 sps:$4 sm:$0xff]  }
 0x5bd   :  { %6341 = vmatprep.subr.bf16.mxu0 %v8496_v23  ;;  %v8569_v19 = vld [vmem:[%s11330_s14 + $0x6dc] ss:$28 sps:$4 sm:$0xff]  }
 0x5be   :  { %v8567_v23 = vld [vmem:[%s11330_s14 + $0x6d8] ss:$28 sps:$4 sm:$0xff]  }
 0x5bf   :  { %6301 = vmatpush2.bf16.msra.mxu1 %v8491_v2  ;;  %v8572_v2 = vld [vmem:[%s11330_s14 + $0x6a4] ss:$28 sps:$4 sm:$0xff]  }
 0x5c0   :  { %6342 = vmatpush2.bf16.msra.mxu0 %v8494_v28  ;;  %6302 = vmatprep.subr.bf16.mxu1 %v8499_v7  ;;  %v8570_v28 = vld [vmem:[%s11330_s14 + $0x6a0] ss:$28 sps:$4 sm:$0xff]   ;;  %v8575_v7 = vld [vmem:[%s11330_s14 + $0x66c] ss:$28 sps:$4 sm:$0xff]  }
 0x5c1   :  { %6343 = vmatprep.subr.bf16.mxu0 %v8502_v29  ;;  %v8573_v29 = vld [vmem:[%s11330_s14 + $0x668] ss:$28 sps:$4 sm:$0xff]  }
 0x5c3   :  { %6303 = vmatpush2.bf16.msra.mxu1 %v8497_v30  ;;  %v8578_v30 = vld [vmem:[%s11330_s14 + $0x634] ss:$28 sps:$4 sm:$0xff]  }
 0x5c4   :  { %6344 = vmatpush2.bf16.msra.mxu0 %v8500_v31  ;;  %6304 = vmatprep.subr.bf16.mxu1 %v8505_v22  ;;  %v8581_v31 = vld [vmem:[%s11330_s14 + $0x5fc] ss:$28 sps:$4 sm:$0xff]  }
 0x5c5   :  { %6345 = vmatprep.subr.bf16.mxu0 %v8508_v32  ;;  %v8579_v22 = vld [vmem:[%s11330_s14 + $0x5f8] ss:$28 sps:$4 sm:$0xff]   ;;  %v8584_v32 = vld [vmem:[%s11330_s14 + $0x5c4] ss:$28 sps:$4 sm:$0xff]  }
 0x5c7   :  { %6305 = vmatpush2.bf16.msra.mxu1 %v8503_v20  ;;  %v8582_v20 = vld [vmem:[%s11330_s14 + $0x5c0] ss:$28 sps:$4 sm:$0xff]  }
 0x5c8   :  { %6346 = vmatpush2.bf16.msra.mxu0 %v8506_v33  ;;  %6306 = vmatprep.subr.bf16.mxu1 %v8511_v34  ;;  %v8587_v33 = vld [vmem:[%s11330_s14 + $0x58c] ss:$28 sps:$4 sm:$0xff]  }
 0x5c9   :  { %6347 = vmatprep.subr.bf16.mxu0 %v8514_v36  ;;  %v8585_v34 = vld [vmem:[%s11330_s14 + $0x588] ss:$28 sps:$4 sm:$0xff]   ;;  %v8590_v36 = vld [vmem:[%s11330_s14 + $0x554] ss:$28 sps:$4 sm:$0xff]  }
 0x5cb   :  { %6307 = vmatpush2.bf16.msra.mxu1 %v8509_v37  ;;  %v8588_v37 = vld [vmem:[%s11330_s14 + $0x550] ss:$28 sps:$4 sm:$0xff]  }
 0x5cc   :  { %6348 = vmatpush2.bf16.msra.mxu0 %v8512_v38  ;;  %6308 = vmatprep.subr.bf16.mxu1 %v8517_v39  ;;  %v8591_v38 = vld [vmem:[%s11330_s14 + $0x6e0] ss:$28 sps:$4 sm:$0xff]  }
 0x5cd   :  { %6349 = vmatprep.subr.bf16.mxu0 %v8520_v41  ;;  %v8592_v39 = vld [vmem:[%s11330_s14 + $0x520] ss:$28 sps:$4 sm:$0xff]   ;;  %v8593_v41 = vld [vmem:[%s11330_s14 + $0x6a8] ss:$28 sps:$4 sm:$0xff]  }
 0x5cf   :  { %6309 = vmatpush2.bf16.msra.mxu1 %v8515_v43 }
 0x5d0   :  { %6350 = vmatpush2.bf16.msra.mxu0 %v8518_v45  ;;  %6310 = vmatprep.subr.bf16.mxu1 %v8523_v46  ;;  %v8594_v45 = vld [vmem:[%s11330_s14 + $0x4e8] ss:$28 sps:$4 sm:$0xff]  }
 0x5d1   :  { %6351 = vmatprep.subr.bf16.mxu0 %v8526_v48  ;;  %v8595_v48 = vld [vmem:[%s11330_s14 + $0x670] ss:$28 sps:$4 sm:$0xff]  }
 0x5d3   :  { %6311 = vmatpush2.bf16.msra.mxu1 %v8521_v49 }
 0x5d4   :  { %6352 = vmatpush2.bf16.msra.mxu0 %v8524_v16  ;;  %6362 = vmatprep.subr.bf16.mxu1 %v8529_v52  ;;  %v8596_v16 = vld [vmem:[%s11330_s14 + $0x4b0] ss:$28 sps:$4 sm:$0xff]  }
 0x5d5   :  { %7403 = vmatprep.subr.bf16.mxu0 %v8530_v54  ;;  %v8598_v54 = vld [vmem:[%s11330_s14 + $0x478] ss:$28 sps:$4 sm:$0xff]  }
 0x5d6   :  { %6313 = vmatmul.mubr.bf16.vlgmr.msra.gmra.mxu1 %v10894_v42 }
 0x5d7   :  { %6354 = vmatmul.mubr.bf16.vlgmr.msra.gmra.mxu0 %v10787_v53  ;;  %6363 = vmatpush1.bf16.msra.mxu1 %v8527_v55  ;;  %v8599_v55 = vld [vmem:[%s11330_s14 + $0x600] ss:$28 sps:$4 sm:$0xff]  }
 0x5d8   :  { %6394 = vmatprep.mubr.bf16.mxu1 %v10889_v40  ;;  %7404 = vmatpush3.bf16.msra.mxu0 %v8531_v56  ;;  %v8600_v56 = vld [vmem:[%s11330_s14 + $0x440] ss:$28 sps:$4 sm:$0xff]  }
 0x5d9   :  { %6435 = vmatprep.mubr.bf16.mxu0 %v10782_v50  ;;  %6364 = vmatprep.subr.bf16.mxu1 %v8534_v47  ;;  %v8544_v50 = vld [vmem:[%s11330_s14 + $0x474] ss:$28 sps:$4 sm:$0xff]   ;;  %v8601_v47 = vld [vmem:[%s11330_s14 + $0x5c8] ss:$28 sps:$4 sm:$0xff]  }
 0x5da   :  { %7405 = vmatprep.subr.bf16.mxu0 %v8535_v57  ;;  %v8602_v57 = vld [vmem:[%s11330_s14 + $0x408] ss:$28 sps:$4 sm:$0xff]  }
 0x5db   :  { %6365 = vmatpush1.bf16.msra.mxu1 %v8532_v44  ;;  %v8603_v44 = vld [vmem:[%s11330_s14 + $0x590] ss:$28 sps:$4 sm:$0xff]  }
 0x5dc   :  { %7406 = vmatpush3.bf16.msra.mxu0 %v8536_v15  ;;  %6366 = vmatprep.subr.bf16.mxu1 %v8539_v58  ;;  %v8604_v15 = vld [vmem:[%s11330_s14 + $0x3d0] ss:$28 sps:$4 sm:$0xff]   ;;  %v8605_v58 = vld [vmem:[%s11330_s14 + $0x558] ss:$28 sps:$4 sm:$0xff]  }
 0x5dd   :  { %7407 = vmatprep.subr.bf16.mxu0 %v8540_v59  ;;  %v8606_v59 = vld [vmem:[%s11330_s14 + $0x398] ss:$28 sps:$4 sm:$0xff]  }
 0x5df   :  { %6367 = vmatpush1.bf16.msra.mxu1 %v8537_v6  ;;  %v4968_v6 = vld [vmem:[%s11333_s15] sm:$0xff] }
 0x5e0   :  { %7408 = vmatpush3.bf16.msra.mxu0 %v8541_v60  ;;  %6368 = vmatprep.subr.bf16.mxu1 %v8544_v50  ;;  %v4973_v60 = vrot.slane %v4968_v6, %v9639_v1  ;;  %v4977_v50 = vrot.slane %v4968_v6, %v9647_v3 }
 0x5e1   :  { %7409 = vmatprep.subr.bf16.mxu0 %v8545_v61 }
 0x5e3   :  { %6369 = vmatpush1.bf16.msra.mxu1 %v8542_v35 }
 0x5e4   :  { %7410 = vmatpush3.bf16.msra.mxu0 %v8546_v4  ;;  %6370 = vmatprep.subr.bf16.mxu1 %v8549_v5 }
 0x5e5   :  { %7411 = vmatprep.subr.bf16.mxu0 %v8550_v8 }
 0x5e7   :  { %6371 = vmatpush1.bf16.msra.mxu1 %v8547_v9 }
 0x5e8   :  { %7412 = vmatpush3.bf16.msra.mxu0 %v8551_v10  ;;  %6372 = vmatprep.subr.bf16.mxu1 %v8554_v11 }
 0x5e9   :  { %7413 = vmatprep.subr.bf16.mxu0 %v8555_v12 }
 0x5eb   :  { %6373 = vmatpush1.bf16.msra.mxu1 %v8552_v13  ;;  %v4981_v13 = vrot.slane %v4968_v6, %v9755_v62 }
 0x5ec   :  { %7414 = vmatpush3.bf16.msra.mxu0 %v8556_v14  ;;  %6374 = vmatprep.subr.bf16.mxu1 %v8559_v17  ;;  %v4985_v14 = vrot.slane %v4968_v6, %v9758_v63 }
 0x5ed   :  { %7415 = vmatprep.subr.bf16.mxu0 %v8560_v18 }
 0x5ef   :  { %6375 = vmatpush1.bf16.msra.mxu1 %v8557_v21 }
 0x5f0   :  { %7416 = vmatpush3.bf16.msra.mxu0 %v8561_v24  ;;  %6376 = vmatprep.subr.bf16.mxu1 %v8564_v25 }
 0x5f1   :  { %7417 = vmatprep.subr.bf16.mxu0 %v8565_v26 }
 0x5f3   :  { %6377 = vmatpush1.bf16.msra.mxu1 %v8562_v27 }
 0x5f4   :  { %7418 = vmatpush3.bf16.msra.mxu0 %v8566_v51  ;;  %6378 = vmatprep.subr.bf16.mxu1 %v8569_v19 }
 0x5f7   :  { %6379 = vmatpush2.bf16.msra.mxu1 %v8567_v23  ;;  %6436 = vmatmul.mubr.bf16.vlgmr.msra.gmra.mxu0 %v10787_v53  ;;  %v8576_v53 = vld [vmem:[%s11330_s14 + $0x630] ss:$28 sps:$4 sm:$0xff]  }
 0x5f8   :  { %6380 = vmatprep.subr.bf16.mxu1 %v8572_v2 }
 0x5fb   :  { %6381 = vmatpush2.bf16.msra.mxu1 %v8570_v28 }
 0x5fc   :  { %6382 = vmatprep.subr.bf16.mxu1 %v8575_v7 }
 0x5ff   :  { %6383 = vmatpush2.bf16.msra.mxu1 %v8573_v29 }
 0x600   :  { %6384 = vmatprep.subr.bf16.mxu1 %v8578_v30  ;;  %v4988_v30 = vsub.s32 4, %v9636_v0 }
 0x603   :  { %6385 = vmatpush2.bf16.msra.mxu1 %v8576_v53  ;;  %v4992_v53 = vsub.s32 5, %v9636_v0 }
 0x604   :  { %6386 = vmatprep.subr.bf16.mxu1 %v8581_v31  ;;  %v4989_v31 = vrot.slane %v4968_v6, %v4988_v30 }
 0x607   :  { %6387 = vmatpush2.bf16.msra.mxu1 %v8579_v22  ;;  %v4993_v22 = vrot.slane %v4968_v6, %v4992_v53 }
 0x608   :  { %6388 = vmatprep.subr.bf16.mxu1 %v8584_v32 }
 0x60b   :  { %6389 = vmatpush2.bf16.msra.mxu1 %v8582_v20 }
 0x60c   :  { %6390 = vmatprep.subr.bf16.mxu1 %v8587_v33 }
 0x60f   :  { %6391 = vmatpush2.bf16.msra.mxu1 %v8585_v34 }
 0x610   :  { %6392 = vmatprep.subr.bf16.mxu1 %v8590_v36 }
 0x613   :  { %6393 = vmatpush2.bf16.msra.mxu1 %v8588_v37 }
 0x614   :  { %7425 = vmatprep.subr.bf16.mxu1 %v8591_v38 }
 0x616   :  { %6395 = vmatmul.mubr.bf16.vlgmr.msra.gmra.mxu1 %v10894_v42  ;;  %v6191_v43 = vpop.f32.mrf.mxu0 }
 0x617   :  { %7426 = vmatpush3.bf16.msra.mxu1 %v8592_v39  ;;  %6475 = vmatprep.mubr.bf16.mxu1 %v10889_v40  ;;  %v8597_v40 = vld [vmem:[%s11330_s14 + $0x638] ss:$28 sps:$4 sm:$0xff]   ;;  %v6192_v61 = vadd.f32 %v6191_v43, %v4973_v60 }
 0x618   :  { %v6193_v46 = vpop.f32.mrf.mxu0  ;;  %7427 = vmatprep.subr.bf16.mxu1 %v8593_v41  ;;  %v4996_v41 = vsub.s32 6, %v9636_v0 }
 0x619   :  { %v6194_v5 = vadd.f32 %v6193_v46, %v4977_v50 }
 0x61a   :  { %v6195_v49 = vpop.f32.mrf.mxu0  ;;  %v4997_v43 = vrot.slane %v4968_v6, %v4996_v41 }
 0x61b   :  { %7428 = vmatpush3.bf16.msra.mxu1 %v8594_v45 }
 0x61c   :  { %v6196_v52 = vpop.f32.mrf.mxu0  ;;  %7429 = vmatprep.subr.bf16.mxu1 %v8595_v48 }
 0x61f   :  { %7430 = vmatpush3.bf16.msra.mxu1 %v8596_v16 }
 0x620   :  { %7431 = vmatprep.subr.bf16.mxu1 %v8597_v40 }
 0x623   :  { %7432 = vmatpush3.bf16.msra.mxu1 %v8598_v54 }
 0x624   :  { %7433 = vmatprep.subr.bf16.mxu1 %v8599_v55 }
 0x627   :  { %7434 = vmatpush3.bf16.msra.mxu1 %v8600_v56 }
 0x628   :  { %7435 = vmatprep.subr.bf16.mxu1 %v8601_v47 }
 0x62b   :  { %7436 = vmatpush3.bf16.msra.mxu1 %v8602_v57 }
 0x62c   :  { %7437 = vmatprep.subr.bf16.mxu1 %v8603_v44 }
 0x62f   :  { %7438 = vmatpush3.bf16.msra.mxu1 %v8604_v15 }
 0x630   :  { %7439 = vmatprep.subr.bf16.mxu1 %v8605_v58 }
 0x633   :  { %7440 = vmatpush3.bf16.msra.mxu1 %v8606_v59 }
 0x636   :  { %6476 = vmatmul.mubr.bf16.vlgmr.msra.gmra.mxu1 %v10894_v42 }
 0x656   :  { %v6232_v35 = vpop.f32.mrf.mxu1  ;;  %v6273_v4 = vpop.f32.mrf.mxu0 }
 0x657   :  { %v6233_v8 = vadd.f32 %v6232_v35, %v6192_v61  ;;  %v6274_v17 = vadd.f32 %v6273_v4, %v4981_v13 }
 0x658   :  { %v6234_v9 = vpop.f32.mrf.mxu1  ;;  %v6275_v10 = vpop.f32.mrf.mxu0 }
 0x659   :  { %6483 = vst [vmem:[%s11334_s19] sm:$0xff] %v6233_v8  ;;  %v6235_v42 = vadd.f32 %v6234_v9, %v6194_v5  ;;  %v6276_v21 = vadd.f32 %v6275_v10, %v4985_v14 }
 0x65a   :  { %v6236_v11 = vpop.f32.mrf.mxu1  ;;  %v6277_v12 = vpop.f32.mrf.mxu0 }
 0x65b   :  { %6484 = vst [vmem:[%s11334_s19 + $0x8] sm:$0xff] %v6235_v42 }
 0x65c   :  { %v6237_v1 = vpop.f32.mrf.mxu1  ;;  %v6278_v3 = vpop.f32.mrf.mxu0 }
 0x696   :  { %v6314_v18 = vpop.f32.mrf.mxu1 }
 0x697   :  { %v6315_v24 = vadd.f32 %v6314_v18, %v6274_v17  ;;  %v6355_v25 = vpop.f32.mrf.mxu0 }
 0x698   :  { %v6316_v26 = vpop.f32.mrf.mxu1  ;;  %v6356_v32 = vadd.f32 %v6355_v25, %v4989_v31 }
 0x699   :  { %6485 = vst [vmem:[%s11334_s19 + $0x10] sm:$0xff] %v6315_v24  ;;  %v6317_v27 = vadd.f32 %v6316_v26, %v6276_v21  ;;  %v6357_v51 = vpop.f32.mrf.mxu0 }
 0x69a   :  { %v6318_v19 = vpop.f32.mrf.mxu1  ;;  %v6358_v33 = vadd.f32 %v6357_v51, %v4993_v22 }
 0x69b   :  { %6486 = vst [vmem:[%s11334_s19 + $0x18] sm:$0xff] %v6317_v27  ;;  %v6359_v62 = vpop.f32.mrf.mxu0 }
 0x69c   :  { %v6319_v23 = vpop.f32.mrf.mxu1 }
 0x69d   :  { %v6360_v63 = vpop.f32.mrf.mxu0 }
 0x6b7   :  { %v7419_v2 = vpop.f32.mrf.mxu0 }
 0x6b9   :  { %v7420_v28 = vpop.f32.mrf.mxu0 }
 0x6ba   :  { %v7421_v45 = vadd.f32 %v7420_v28, %v7419_v2 }
 0x6bb   :  { %v7422_v7 = vpop.f32.mrf.mxu0 }
 0x6bc   :  { %v6438_v49 = vadd.f32 %v7421_v45, %v4997_v43 }
 0x6bd   :  { %v7423_v29 = vpop.f32.mrf.mxu0 }
 0x6d6   :  { %v6396_v20 = vpop.f32.mrf.mxu1 }
 0x6d7   :  { %v6397_v34 = vadd.f32 %v6396_v20, %v6356_v32 }
 0x6d8   :  { %v6398_v36 = vpop.f32.mrf.mxu1 }
 0x6d9   :  { %6487 = vst [vmem:[%s11334_s19 + $0x20] sm:$0xff] %v6397_v34  ;;  %v6399_v37 = vadd.f32 %v6398_v36, %v6358_v33 }
 0x6da   :  { %v6400_v38 = vpop.f32.mrf.mxu1 }
 0x6db   :  { %6488 = vst [vmem:[%s11334_s19 + $0x28] sm:$0xff] %v6399_v37 }
 0x6dc   :  { %v6401_v39 = vpop.f32.mrf.mxu1 }
 0x6f6   :  { %v7441_v46 = vpop.f32.mrf.mxu1 }
 0x6f8   :  { %v7442_v48 = vpop.f32.mrf.mxu1 }
 0x6f9   :  { %v7443_v16 = vadd.f32 %v7442_v48, %v7441_v46 }
 0x6fa   :  { %v7444_v52 = vpop.f32.mrf.mxu1 }
 0x6fb   :  { %v6478_v40 = vadd.f32 %v7443_v16, %v6438_v49 }
 0x6fc   :  { %v7445_v54 = vpop.f32.mrf.mxu1 }
 0x6fd   :  { %6489 = vst [vmem:[%s11334_s19 + $0x30] sm:$0xff] %v6478_v40 }

</bundles_post_ra>
